<compile_context>
chip_gen: v6e
topology: v6e:2x2x1
jax: 0.10.0
libtpu: 0.0.40
codegen_flags: <defaults>
</compile_context>

<pallas_src>
import jax
import jax.numpy as jnp
from jax.experimental import pallas as pl
from jax.experimental.pallas import tpu as pltpu

_EPS = 1e-5
_LANE = 128


def _detect_vmem_limit():
    cap = 128 * 1024 * 1024
    try:
        cap = int(pltpu.get_tpu_info().vmem_capacity_bytes)
    except Exception:
        pass
    return max(32 * 1024 * 1024, min(int(cap * 0.85), 100 * 1024 * 1024))


_VMEM_LIMIT = _detect_vmem_limit()


# ----------------------------- small helpers ---------------------------------
def _round_up(n, m):
    return ((n + m - 1) // m) * m


def _pad_to(a, shape):
    return jnp.pad(a, [(0, t - s) for s, t in zip(a.shape, shape)])


def _pick_tile(total, target, mult=8):
    """Largest tile <= target that divides `total` (multiple of `mult`)."""
    t = min(target, total)
    t -= t % mult
    while t >= mult:
        if total % t == 0:
            return t
        t -= mult
    return total


def _bn_scale_bias(stats, gamma, beta, count):
    """Fold training-mode BN (batch mean / biased var) into scale & bias.
    Note: E[x^2]-E[x]^2 in f32 from per-tile partials; fine at these scales."""
    mean = stats[0:1] / count
    var = jnp.maximum(stats[1:2] / count - mean * mean, 0.0)
    scale = gamma * jax.lax.rsqrt(var + _EPS)
    return scale, beta - mean * scale


def _cparams(sem):
    return pltpu.CompilerParams(dimension_semantics=sem,
                                vmem_limit_bytes=_VMEM_LIMIT)


# ----------------------------- Pallas kernels ---------------------------------
def _stage_a_kernel(x_ref, w1_ref, b1_ref, h1_ref, st1_ref):
    """conv1 (1x1) + per-tile bn1 stats.  h1 is stored in bf16."""
    h1 = (jnp.dot(x_ref[...], w1_ref[...], preferred_element_type=jnp.float32)
          + b1_ref[...])
    h1_ref[...] = h1.astype(h1_ref.dtype)
    st1_ref[0] = jnp.concatenate(
        [jnp.sum(h1, axis=0, keepdims=True),
         jnp.sum(h1 * h1, axis=0, keepdims=True)], axis=0)


def _make_stage_b_kernel(H, W, C1p):
    """bn1-apply + relu + conv2 (3x3, pad 1) + per-image bn2 stats."""
    def kernel(h1_ref, s1_ref, c1_ref, w2_ref, b2_ref, h2_ref, st2_ref):
        # bn1 apply + relu on the whole image (f32 math, bf16 MXU operand).
        act = jnp.maximum(
            h1_ref[0].astype(jnp.float32) * s1_ref[...] + c1_ref[...], 0.0
        ).astype(jnp.bfloat16)                                # (H, W, C1p)
        # conv2's zero padding applies to the post-relu activation; build the
        # (H+2, W+2, C1p) padded slab in VMEM (no HBM round trip).
        zrow = jnp.zeros((1, W, C1p), jnp.bfloat16)
        act = jnp.concatenate([zrow, act, zrow], axis=0)      # (H+2, W, C1p)
        zcol = jnp.zeros((H + 2, 1, C1p), jnp.bfloat16)
        act = jnp.concatenate([zcol, act, zcol], axis=1)      # (H+2, W+2, C1p)

        # 3x3 conv as 3 MXU calls: the 3 dx taps of each dy row are fused into
        # one matmul with contraction K = 3*C1p.
        acc = jnp.zeros((H * W, C1p), jnp.float32)
        for dy in range(3):
            win = jnp.concatenate(
                [act[dy:dy + H, dx:dx + W, :] for dx in range(3)], axis=-1)
            acc = acc + jnp.dot(win.reshape(H * W, 3 * C1p), w2_ref[dy],
                                preferred_element_type=jnp.float32)
        h2 = acc + b2_ref[...]
        h2_ref[0] = h2.astype(h2_ref.dtype)
        st2_ref[0] = jnp.concatenate(
            [jnp.sum(h2, axis=0, keepdims=True),
             jnp.sum(h2 * h2, axis=0, keepdims=True)], axis=0)
    return kernel


def _stage_c_kernel(h2_ref, s2_ref, c2_ref, w3_ref, b3_ref, h3_ref, st3_ref):
    """bn2-apply + relu + conv3 (1x1) + per-tile bn3 stats."""
    a2 = jnp.maximum(
        h2_ref[...].astype(jnp.float32) * s2_ref[...] + c2_ref[...], 0.0)
    h3 = (jnp.dot(a2.astype(jnp.bfloat16), w3_ref[...],
                  preferred_element_type=jnp.float32) + b3_ref[...])
    h3_ref[...] = h3
    st3_ref[0] = jnp.concatenate(
        [jnp.sum(h3, axis=0, keepdims=True),
         jnp.sum(h3 * h3, axis=0, keepdims=True)], axis=0)


def _stage_d_kernel(h3_ref, x_ref, ws_ref, bs_ref, s3_ref, c3_ref, y_ref):
    """shortcut 1x1 conv (recomputed here; MXU otherwise idle) + bn3-apply +
    residual add + relu."""
    sc = (jnp.dot(x_ref[...], ws_ref[...], preferred_element_type=jnp.float32)
          + bs_ref[...])
    y_ref[...] = jnp.maximum(
        h3_ref[...] * s3_ref[...] + c3_ref[...] + sc, 0.0)


# ----------------------------- public wrapper ---------------------------------
@jax.jit
def my_bottleneck(x_nchw, params):
    (w1, b1, g1, be1, w2, b2, g2, be2, w3, b3, g3, be3, ws, bs) = params
    N, Cin, H, W = x_nchw.shape
    C1 = w1.shape[1]
    C4 = ws.shape[1]
    M = N * H * W
    Cip, C1p, C4p = (_round_up(c, _LANE) for c in (Cin, C1, C4))
    f32, bf16 = jnp.float32, jnp.bfloat16

    # Layout glue: NCHW -> (M, C) channels-last, channels zero-padded to 128.
    x2d = jnp.transpose(x_nchw, (0, 2, 3, 1)).reshape(M, Cin).astype(f32)
    xp = _pad_to(x2d, (M, Cip)).astype(bf16)
    w1p = _pad_to(w1, (Cip, C1p)).astype(bf16)
    wsp = _pad_to(ws, (Cip, C4p)).astype(bf16)
    w2p = _pad_to(w2, (3, 3, C1p, C1p)).astype(bf16).reshape(3, 3 * C1p, C1p)
    w3p = _pad_to(w3, (C1p, C4p)).astype(bf16)
    b1p = _pad_to(b1, (1, C1p)).astype(f32)
    b2p = _pad_to(b2, (1, C1p)).astype(f32)
    b3p = _pad_to(b3, (1, C4p)).astype(f32)
    bsp = _pad_to(bs, (1, C4p)).astype(f32)
    g1p, be1p = _pad_to(g1, (1, C1p)), _pad_to(be1, (1, C1p))
    g2p, be2p = _pad_to(g2, (1, C1p)), _pad_to(be2, (1, C1p))
    g3p, be3p = _pad_to(g3, (1, C4p)), _pad_to(be3, (1, C4p))

    # -------- stage A: conv1 (1x1) + bn1 partial stats -------------------------
    TMA = _pick_tile(M, 512)
    GA = M // TMA
    h1, st1 = pl.pallas_call(
        _stage_a_kernel,
        grid=(GA,),
        in_specs=[
            pl.BlockSpec((TMA, Cip), lambda i: (i, 0)),
            pl.BlockSpec((Cip, C1p), lambda i: (0, 0)),
            pl.BlockSpec((1, C1p), lambda i: (0, 0)),
        ],
        out_specs=(
            pl.BlockSpec((TMA, C1p), lambda i: (i, 0)),
            pl.BlockSpec((1, 2, C1p), lambda i: (i, 0, 0)),
        ),
        out_shape=(
            jax.ShapeDtypeStruct((M, C1p), bf16),
            jax.ShapeDtypeStruct((GA, 2, C1p), f32),
        ),
        compiler_params=_cparams(("parallel",)),
        cost_estimate=pl.CostEstimate(
            flops=2 * M * Cip * C1p, transcendentals=0,
            bytes_accessed=M * Cip * 2 + M * C1p * 2 + Cip * C1p * 2
            + GA * 2 * C1p * 4),
    )(xp, w1p, b1p)
    scale1, bias1 = _bn_scale_bias(jnp.sum(st1, axis=0), g1p, be1p, M)

    # -------- stage B: conv2 (3x3) on whole-image blocks + bn2 partial stats ---
    h2, st2 = pl.pallas_call(
        _make_stage_b_kernel(H, W, C1p),
        grid=(N,),
        in_specs=[
            pl.BlockSpec((1, H, W, C1p), lambda n: (n, 0, 0, 0)),
            pl.BlockSpec((1, C1p), lambda n: (0, 0)),
            pl.BlockSpec((1, C1p), lambda n: (0, 0)),
            pl.BlockSpec((3, 3 * C1p, C1p), lambda n: (0, 0, 0)),
            pl.BlockSpec((1, C1p), lambda n: (0, 0)),
        ],
        out_specs=(
            pl.BlockSpec((1, H * W, C1p), lambda n: (n, 0, 0)),
            pl.BlockSpec((1, 2, C1p), lambda n: (n, 0, 0)),
        ),
        out_shape=(
            jax.ShapeDtypeStruct((N, H * W, C1p), bf16),
            jax.ShapeDtypeStruct((N, 2, C1p), f32),
        ),
        compiler_params=_cparams(("parallel",)),
        cost_estimate=pl.CostEstimate(
            flops=2 * M * 9 * C1p * C1p, transcendentals=0,
            bytes_accessed=2 * M * C1p * 2 + 9 * C1p * C1p * 2
            + N * 2 * C1p * 4),
    )(h1.reshape(N, H, W, C1p), scale1, bias1, w2p, b2p)
    scale2, bias2 = _bn_scale_bias(jnp.sum(st2, axis=0), g2p, be2p, M)

    # -------- stage C: bn2 apply + relu + conv3 (1x1) + bn3 partial stats ------
    TMC = _pick_tile(M, 512)
    GC = M // TMC
    h3, st3 = pl.pallas_call(
        _stage_c_kernel,
        grid=(GC,),
        in_specs=[
            pl.BlockSpec((TMC, C1p), lambda i: (i, 0)),
            pl.BlockSpec((1, C1p), lambda i: (0, 0)),
            pl.BlockSpec((1, C1p), lambda i: (0, 0)),
            pl.BlockSpec((C1p, C4p), lambda i: (0, 0)),
            pl.BlockSpec((1, C4p), lambda i: (0, 0)),
        ],
        out_specs=(
            pl.BlockSpec((TMC, C4p), lambda i: (i, 0)),
            pl.BlockSpec((1, 2, C4p), lambda i: (i, 0, 0)),
        ),
        out_shape=(
            jax.ShapeDtypeStruct((M, C4p), f32),
            jax.ShapeDtypeStruct((GC, 2, C4p), f32),
        ),
        compiler_params=_cparams(("parallel",)),
        cost_estimate=pl.CostEstimate(
            flops=2 * M * C1p * C4p, transcendentals=0,
            bytes_accessed=M * C1p * 2 + M * C4p * 4 + C1p * C4p * 2),
    )(h2.reshape(M, C1p), scale2, bias2, w3p, b3p)
    scale3, bias3 = _bn_scale_bias(jnp.sum(st3, axis=0), g3p, be3p, M)

    # -------- stage D: shortcut conv + bn3 apply + residual add + relu ---------
    TMD = _pick_tile(M, 512)
    GD = M // TMD
    y2d = pl.pallas_call(
        _stage_d_kernel,
        grid=(GD,),
        in_specs=[
            pl.BlockSpec((TMD, C4p), lambda i: (i, 0)),     # h3
            pl.BlockSpec((TMD, Cip), lambda i: (i, 0)),     # x (bf16)
            pl.BlockSpec((Cip, C4p), lambda i: (0, 0)),     # ws
            pl.BlockSpec((1, C4p), lambda i: (0, 0)),       # bs
            pl.BlockSpec((1, C4p), lambda i: (0, 0)),       # scale3
            pl.BlockSpec((1, C4p), lambda i: (0, 0)),       # bias3
        ],
        out_specs=pl.BlockSpec((TMD, C4p), lambda i: (i, 0)),
        out_shape=jax.ShapeDtypeStruct((M, C4p), f32),
        compiler_params=_cparams(("parallel",)),
        cost_estimate=pl.CostEstimate(
            flops=2 * M * Cip * C4p + 4 * M * C4p, transcendentals=0,
            bytes_accessed=2 * M * C4p * 4 + M * Cip * 2 + Cip * C4p * 2),
    )(h3, xp, wsp, bsp, scale3, bias3)

    return jnp.transpose(y2d[:, :C4].reshape(N, H, W, C4), (0, 3, 1, 2))


# ----------------------------- parameters & reference -------------------------
def init_params(key, in_channels, out_channels):
    """Synthetic parameters matching the module's shapes (channels-last conv
    weights: 1x1 convs as (Cin, Cout), the 3x3 conv as HWIO)."""
    C1 = out_channels
    C4 = out_channels * 4          # expansion = 4
    ks = jax.random.split(key, 8)
    f32 = jnp.float32
    w1 = jax.random.normal(ks[0], (in_channels, C1), f32) / jnp.sqrt(in_channels)
    b1 = jax.random.normal(ks[1], (1, C1), f32) * 0.01
    w2 = jax.random.normal(ks[2], (3, 3, C1, C1), f32) / jnp.sqrt(9 * C1)
    b2 = jax.random.normal(ks[3], (1, C1), f32) * 0.01
    w3 = jax.random.normal(ks[4], (C1, C4), f32) / jnp.sqrt(C1)
    b3 = jax.random.normal(ks[5], (1, C4), f32) * 0.01
    ws = jax.random.normal(ks[6], (in_channels, C4), f32) / jnp.sqrt(in_channels)
    bs = jax.random.normal(ks[7], (1, C4), f32) * 0.01
    g1, be1 = jnp.ones((1, C1), f32), jnp.zeros((1, C1), f32)
    g2, be2 = jnp.ones((1, C1), f32), jnp.zeros((1, C1), f32)
    g3, be3 = jnp.ones((1, C4), f32), jnp.zeros((1, C4), f32)
    return (w1, b1, g1, be1, w2, b2, g2, be2, w3, b3, g3, be3, ws, bs)


def reference_pipeline(x_nchw, params, bf16_rounding=True):
    """Pure-JAX reference.  With bf16_rounding=True the bf16 rounding points
    match the kernel pipeline (conv inputs and stored h1/h2); with False it is
    the exact f32 semantics of the PyTorch module (training-mode BN)."""
    (w1, b1, g1, be1, w2, b2, g2, be2, w3, b3, g3, be3, ws, bs) = params
    f32 = jnp.float32
    P = jax.lax.Precision.HIGHEST
    q = ((lambda a: a.astype(jnp.bfloat16)) if bf16_rounding
         else (lambda a: a.astype(f32)))
    x = jnp.transpose(x_nchw, (0, 2, 3, 1)).astype(f32)
    xq = q(x)

    def bn_fold(h, g, be):
        m = jnp.mean(h, axis=(0, 1, 2))
        v = jnp.maximum(jnp.mean(h * h, axis=(0, 1, 2)) - m * m, 0.0)
        s = g.reshape(-1) * jax.lax.rsqrt(v + _EPS)
        return s, be.reshape(-1) - m * s

    h1 = jnp.einsum('nhwc,cd->nhwd', xq, q(w1), precision=P,
                    preferred_element_type=f32) + b1.reshape(1, 1, 1, -1)
    s1, c1 = bn_fold(h1, g1, be1)
    a1 = jnp.maximum(q(h1).astype(f32) * s1 + c1, 0.0)

    h2 = jax.lax.conv_general_dilated(
        q(a1), q(w2), (1, 1), 'SAME',
        dimension_numbers=('NHWC', 'HWIO', 'NHWC'),
        precision=P, preferred_element_type=f32) + b2.reshape(1, 1, 1, -1)
    s2, c2 = bn_fold(h2, g2, be2)
    a2 = jnp.maximum(q(h2).astype(f32) * s2 + c2, 0.0)

    h3 = jnp.einsum('nhwc,cd->nhwd', q(a2), q(w3), precision=P,
                    preferred_element_type=f32) + b3.reshape(1, 1, 1, -1)
    s3, c3 = bn_fold(h3, g3, be3)

    sc = jnp.einsum('nhwc,cd->nhwd', xq, q(ws), precision=P,
                    preferred_element_type=f32) + bs.reshape(1, 1, 1, -1)
    y = jnp.maximum(h3 * s3 + c3 + sc, 0.0)
    return jnp.transpose(y, (0, 3, 1, 2))


if __name__ == "__main__":
    key = jax.random.PRNGKey(0)
    kx, kp = jax.random.split(key)
    # small shapes: batch=2, in_channels=4, out_channels=8 (-> 32 out), 16x16
    x = jax.random.normal(kx, (2, 4, 16, 16), jnp.float32)       # NCHW like PyTorch
    params = init_params(kp, in_channels=4, out_channels=8)

    y = jax.block_until_ready(my_bottleneck(x, params))
    assert y.shape == (2, 32, 16, 16), y.shape

    # Strict check vs a reference with matching bf16 rounding points.
    y_bf = reference_pipeline(x, params, bf16_rounding=True)
    err = float(jnp.max(jnp.abs(y - y_bf)))
    assert err < 3e-2, f"max abs error vs bf16-matched reference: {err}"

    # Loose sanity check vs the full-f32 reference (bounds the bf16 effect).
    y_f32 = reference_pipeline(x, params, bf16_rounding=False)
    err32 = float(jnp.max(jnp.abs(y - y_f32)))
    assert err32 < 5e-1, f"max abs error vs f32 reference: {err32}"

    print("KERNEL_OK")
</pallas_src>

<mosaic_0001>
module attributes {stable_mosaic.version = 11 : i64} {
  func.func @_stage_a_kernel(%arg0: i32, %arg1: memref<512x128xbf16, #tpu.memory_space<vmem>>, %arg2: memref<128x128xbf16, #tpu.memory_space<vmem>>, %arg3: memref<1x128xf32, #tpu.memory_space<vmem>>, %arg4: memref<512x128xbf16, #tpu.memory_space<vmem>>, %arg5: memref<1x2x128xf32, #tpu.memory_space<vmem>>) attributes {dimension_semantics = [#tpu.dimension_semantics<parallel>], iteration_bounds = array<i64: 1>, scalar_prefetch = 0 : i64, scratch_operands = 0 : i64, tpu.core_type = #tpu.core_type<tc>, window_params = [{transform_indices = @transform_0, window_bounds = array<i64: 512, 128>}, {pipeline_mode = #tpu.pipeline_mode<synchronous>, transform_indices = @transform_1, window_bounds = array<i64: 128, 128>}, {pipeline_mode = #tpu.pipeline_mode<synchronous>, transform_indices = @transform_2, window_bounds = array<i64: 1, 128>}, {transform_indices = @transform_3, window_bounds = array<i64: 512, 128>}, {transform_indices = @transform_4, window_bounds = array<i64: 1, 2, 128>}]} {
    %c0 = arith.constant 0 : index
    %c0_0 = arith.constant 0 : index
    %0 = vector.load %arg1[%c0, %c0_0] : memref<512x128xbf16, #tpu.memory_space<vmem>>, vector<512x128xbf16>
    %c0_1 = arith.constant 0 : index
    %c0_2 = arith.constant 0 : index
    %1 = vector.load %arg2[%c0_1, %c0_2] : memref<128x128xbf16, #tpu.memory_space<vmem>>, vector<128x128xbf16>
    %cst = arith.constant dense<0.000000e+00> : vector<512x128xf32>
    %2 = tpu.matmul %0, %1, %cst {dimension_numbers = #tpu.dot_dimension_numbers<[1], [0], [0], [1], [0, 0, 1, 1], [], []>} : vector<512x128xbf16>, vector<128x128xbf16>, vector<512x128xf32> -> vector<512x128xf32>
    %c0_3 = arith.constant 0 : index
    %c0_4 = arith.constant 0 : index
    %3 = vector.load %arg3[%c0_3, %c0_4] : memref<1x128xf32, #tpu.memory_space<vmem>>, vector<1x128xf32>
    %4 = vector.broadcast %3 : vector<1x128xf32> to vector<512x128xf32>
    %5 = arith.addf %2, %4 : vector<512x128xf32>
    %6 = arith.truncf %5 : vector<512x128xf32> to vector<512x128xbf16>
    %c0_5 = arith.constant 0 : index
    %c0_6 = arith.constant 0 : index
    %7 = vector.load %arg4[%c0_5, %c0_6] : memref<512x128xbf16, #tpu.memory_space<vmem>>, vector<512x128xbf16>
    tpu.vector_store %arg4[%c0_5, %c0_6], %6 {strides = array<i32>} : memref<512x128xbf16, #tpu.memory_space<vmem>>, vector<512x128xbf16>,
    %cst_7 = arith.constant dense<0.000000e+00> : vector<128xf32>
    %8 = vector.multi_reduction <add>, %5, %cst_7 [0] : vector<512x128xf32> to vector<128xf32>
    %9 = vector.shape_cast %8 : vector<128xf32> to vector<1x128xf32>
    %10 = arith.mulf %5, %5 : vector<512x128xf32>
    %cst_8 = arith.constant dense<0.000000e+00> : vector<128xf32>
    %11 = vector.multi_reduction <add>, %10, %cst_8 [0] : vector<512x128xf32> to vector<128xf32>
    %12 = vector.shape_cast %11 : vector<128xf32> to vector<1x128xf32>
    %13 = tpu.concatenate %9, %12 in 0 : vector<1x128xf32>, vector<1x128xf32> -> vector<2x128xf32>
    %c0_9 = arith.constant 0 : index
    %c0_10 = arith.constant 0 : index
    %c0_11 = arith.constant 0 : index
    %14 = vector.load %arg5[%c0_9, %c0_10, %c0_11] : memref<1x2x128xf32, #tpu.memory_space<vmem>>, vector<1x2x128xf32>
    %15 = vector.shape_cast %14 : vector<1x2x128xf32> to vector<2x128xf32>
    %16 = vector.shape_cast %13 : vector<2x128xf32> to vector<1x2x128xf32>
    tpu.vector_store %arg5[%c0_9, %c0_10, %c0_11], %16 {strides = array<i32>} : memref<1x2x128xf32, #tpu.memory_space<vmem>>, vector<1x2x128xf32>,
    return
  }
  func.func @transform_0(%arg0: i32) -> (i32, i32) {
    %c0_i32 = arith.constant 0 : i32
    %c0_i32_0 = arith.constant 0 : i32
    return %arg0, %c0_i32 : i32, i32
  }
  func.func @transform_1(%arg0: i32) -> (i32, i32) {
    %c0_i32 = arith.constant 0 : i32
    %c0_i32_0 = arith.constant 0 : i32
    %c0_i32_1 = arith.constant 0 : i32
    return %c0_i32, %c0_i32_0 : i32, i32
  }
  func.func @transform_2(%arg0: i32) -> (i32, i32) {
    %c0_i32 = arith.constant 0 : i32
    %c0_i32_0 = arith.constant 0 : i32
    %c0_i32_1 = arith.constant 0 : i32
    return %c0_i32, %c0_i32_0 : i32, i32
  }
  func.func @transform_3(%arg0: i32) -> (i32, i32) {
    %c0_i32 = arith.constant 0 : i32
    %c0_i32_0 = arith.constant 0 : i32
    return %arg0, %c0_i32 : i32, i32
  }
  func.func @transform_4(%arg0: i32) -> (i32, i32, i32) {
    %c0_i32 = arith.constant 0 : i32
    %c0_i32_0 = arith.constant 0 : i32
    %c0_i32_1 = arith.constant 0 : i32
    return %arg0, %c0_i32, %c0_i32_0 : i32, i32, i32
  }
}

module attributes {stable_mosaic.version = 11 : i64} {
  func.func @_stage_c_kernel(%arg0: i32, %arg1: memref<512x128xbf16, #tpu.memory_space<vmem>>, %arg2: memref<1x128xf32, #tpu.memory_space<vmem>>, %arg3: memref<1x128xf32, #tpu.memory_space<vmem>>, %arg4: memref<128x128xbf16, #tpu.memory_space<vmem>>, %arg5: memref<1x128xf32, #tpu.memory_space<vmem>>, %arg6: memref<512x128xf32, #tpu.memory_space<vmem>>, %arg7: memref<1x2x128xf32, #tpu.memory_space<vmem>>) attributes {dimension_semantics = [#tpu.dimension_semantics<parallel>], iteration_bounds = array<i64: 1>, scalar_prefetch = 0 : i64, scratch_operands = 0 : i64, tpu.core_type = #tpu.core_type<tc>, window_params = [{transform_indices = @transform_0, window_bounds = array<i64: 512, 128>}, {pipeline_mode = #tpu.pipeline_mode<synchronous>, transform_indices = @transform_1, window_bounds = array<i64: 1, 128>}, {pipeline_mode = #tpu.pipeline_mode<synchronous>, transform_indices = @transform_2, window_bounds = array<i64: 1, 128>}, {pipeline_mode = #tpu.pipeline_mode<synchronous>, transform_indices = @transform_3, window_bounds = array<i64: 128, 128>}, {pipeline_mode = #tpu.pipeline_mode<synchronous>, transform_indices = @transform_4, window_bounds = array<i64: 1, 128>}, {transform_indices = @transform_5, window_bounds = array<i64: 512, 128>}, {transform_indices = @transform_6, window_bounds = array<i64: 1, 2, 128>}]} {
    %c0 = arith.constant 0 : index
    %c0_0 = arith.constant 0 : index
    %0 = vector.load %arg1[%c0, %c0_0] : memref<512x128xbf16, #tpu.memory_space<vmem>>, vector<512x128xbf16>
    %1 = arith.extf %0 : vector<512x128xbf16> to vector<512x128xf32>
    %c0_1 = arith.constant 0 : index
    %c0_2 = arith.constant 0 : index
    %2 = vector.load %arg2[%c0_1, %c0_2] : memref<1x128xf32, #tpu.memory_space<vmem>>, vector<1x128xf32>
    %3 = vector.broadcast %2 : vector<1x128xf32> to vector<512x128xf32>
    %4 = arith.mulf %1, %3 : vector<512x128xf32>
    %c0_3 = arith.constant 0 : index
    %c0_4 = arith.constant 0 : index
    %5 = vector.load %arg3[%c0_3, %c0_4] : memref<1x128xf32, #tpu.memory_space<vmem>>, vector<1x128xf32>
    %6 = vector.broadcast %5 : vector<1x128xf32> to vector<512x128xf32>
    %7 = arith.addf %4, %6 : vector<512x128xf32>
    %cst = arith.constant 0.000000e+00 : f32
    %8 = vector.broadcast %cst : f32 to vector<512x128xf32>
    %9 = arith.maximumf %7, %8 : vector<512x128xf32>
    %10 = arith.truncf %9 : vector<512x128xf32> to vector<512x128xbf16>
    %c0_5 = arith.constant 0 : index
    %c0_6 = arith.constant 0 : index
    %11 = vector.load %arg4[%c0_5, %c0_6] : memref<128x128xbf16, #tpu.memory_space<vmem>>, vector<128x128xbf16>
    %cst_7 = arith.constant dense<0.000000e+00> : vector<512x128xf32>
    %12 = tpu.matmul %10, %11, %cst_7 {dimension_numbers = #tpu.dot_dimension_numbers<[1], [0], [0], [1], [0, 0, 1, 1], [], []>} : vector<512x128xbf16>, vector<128x128xbf16>, vector<512x128xf32> -> vector<512x128xf32>
    %c0_8 = arith.constant 0 : index
    %c0_9 = arith.constant 0 : index
    %13 = vector.load %arg5[%c0_8, %c0_9] : memref<1x128xf32, #tpu.memory_space<vmem>>, vector<1x128xf32>
    %14 = vector.broadcast %13 : vector<1x128xf32> to vector<512x128xf32>
    %15 = arith.addf %12, %14 : vector<512x128xf32>
    %c0_10 = arith.constant 0 : index
    %c0_11 = arith.constant 0 : index
    %16 = vector.load %arg6[%c0_10, %c0_11] : memref<512x128xf32, #tpu.memory_space<vmem>>, vector<512x128xf32>
    tpu.vector_store %arg6[%c0_10, %c0_11], %15 {strides = array<i32>} : memref<512x128xf32, #tpu.memory_space<vmem>>, vector<512x128xf32>,
    %cst_12 = arith.constant dense<0.000000e+00> : vector<128xf32>
    %17 = vector.multi_reduction <add>, %15, %cst_12 [0] : vector<512x128xf32> to vector<128xf32>
    %18 = vector.shape_cast %17 : vector<128xf32> to vector<1x128xf32>
    %19 = arith.mulf %15, %15 : vector<512x128xf32>
    %cst_13 = arith.constant dense<0.000000e+00> : vector<128xf32>
    %20 = vector.multi_reduction <add>, %19, %cst_13 [0] : vector<512x128xf32> to vector<128xf32>
    %21 = vector.shape_cast %20 : vector<128xf32> to vector<1x128xf32>
    %22 = tpu.concatenate %18, %21 in 0 : vector<1x128xf32>, vector<1x128xf32> -> vector<2x128xf32>
    %c0_14 = arith.constant 0 : index
    %c0_15 = arith.constant 0 : index
    %c0_16 = arith.constant 0 : index
    %23 = vector.load %arg7[%c0_14, %c0_15, %c0_16] : memref<1x2x128xf32, #tpu.memory_space<vmem>>, vector<1x2x128xf32>
    %24 = vector.shape_cast %23 : vector<1x2x128xf32> to vector<2x128xf32>
    %25 = vector.shape_cast %22 : vector<2x128xf32> to vector<1x2x128xf32>
    tpu.vector_store %arg7[%c0_14, %c0_15, %c0_16], %25 {strides = array<i32>} : memref<1x2x128xf32, #tpu.memory_space<vmem>>, vector<1x2x128xf32>,
    return
  }
  func.func @transform_0(%arg0: i32) -> (i32, i32) {
    %c0_i32 = arith.constant 0 : i32
    %c0_i32_0 = arith.constant 0 : i32
    return %arg0, %c0_i32 : i32, i32
  }
  func.func @transform_1(%arg0: i32) -> (i32, i32) {
    %c0_i32 = arith.constant 0 : i32
    %c0_i32_0 = arith.constant 0 : i32
    %c0_i32_1 = arith.constant 0 : i32
    return %c0_i32, %c0_i32_0 : i32, i32
  }
  func.func @transform_2(%arg0: i32) -> (i32, i32) {
    %c0_i32 = arith.constant 0 : i32
    %c0_i32_0 = arith.constant 0 : i32
    %c0_i32_1 = arith.constant 0 : i32
    return %c0_i32, %c0_i32_0 : i32, i32
  }
  func.func @transform_3(%arg0: i32) -> (i32, i32) {
    %c0_i32 = arith.constant 0 : i32
    %c0_i32_0 = arith.constant 0 : i32
    %c0_i32_1 = arith.constant 0 : i32
    return %c0_i32, %c0_i32_0 : i32, i32
  }
  func.func @transform_4(%arg0: i32) -> (i32, i32) {
    %c0_i32 = arith.constant 0 : i32
    %c0_i32_0 = arith.constant 0 : i32
    %c0_i32_1 = arith.constant 0 : i32
    return %c0_i32, %c0_i32_0 : i32, i32
  }
  func.func @transform_5(%arg0: i32) -> (i32, i32) {
    %c0_i32 = arith.constant 0 : i32
    %c0_i32_0 = arith.constant 0 : i32
    return %arg0, %c0_i32 : i32, i32
  }
  func.func @transform_6(%arg0: i32) -> (i32, i32, i32) {
    %c0_i32 = arith.constant 0 : i32
    %c0_i32_0 = arith.constant 0 : i32
    %c0_i32_1 = arith.constant 0 : i32
    return %arg0, %c0_i32, %c0_i32_0 : i32, i32, i32
  }
}

module attributes {stable_mosaic.version = 11 : i64} {
  func.func @kernel(%arg0: i32, %arg1: memref<1x16x16x128xbf16, #tpu.memory_space<vmem>>, %arg2: memref<1x128xf32, #tpu.memory_space<vmem>>, %arg3: memref<1x128xf32, #tpu.memory_space<vmem>>, %arg4: memref<3x384x128xbf16, #tpu.memory_space<vmem>>, %arg5: memref<1x128xf32, #tpu.memory_space<vmem>>, %arg6: memref<1x256x128xbf16, #tpu.memory_space<vmem>>, %arg7: memref<1x2x128xf32, #tpu.memory_space<vmem>>) attributes {dimension_semantics = [#tpu.dimension_semantics<parallel>], iteration_bounds = array<i64: 2>, scalar_prefetch = 0 : i64, scratch_operands = 0 : i64, tpu.core_type = #tpu.core_type<tc>, window_params = [{transform_indices = @transform_0, window_bounds = array<i64: 1, 16, 16, 128>}, {pipeline_mode = #tpu.pipeline_mode<synchronous>, transform_indices = @transform_1, window_bounds = array<i64: 1, 128>}, {pipeline_mode = #tpu.pipeline_mode<synchronous>, transform_indices = @transform_2, window_bounds = array<i64: 1, 128>}, {pipeline_mode = #tpu.pipeline_mode<synchronous>, transform_indices = @transform_3, window_bounds = array<i64: 3, 384, 128>}, {pipeline_mode = #tpu.pipeline_mode<synchronous>, transform_indices = @transform_4, window_bounds = array<i64: 1, 128>}, {transform_indices = @transform_5, window_bounds = array<i64: 1, 256, 128>}, {transform_indices = @transform_6, window_bounds = array<i64: 1, 2, 128>}]} {
    %c0 = arith.constant 0 : index
    %c0_0 = arith.constant 0 : index
    %c0_1 = arith.constant 0 : index
    %c0_2 = arith.constant 0 : index
    %0 = vector.load %arg1[%c0, %c0_0, %c0_1, %c0_2] : memref<1x16x16x128xbf16, #tpu.memory_space<vmem>>, vector<1x16x16x128xbf16>
    %1 = vector.shape_cast %0 : vector<1x16x16x128xbf16> to vector<16x16x128xbf16>
    %2 = arith.extf %1 : vector<16x16x128xbf16> to vector<16x16x128xf32>
    %c0_3 = arith.constant 0 : index
    %c0_4 = arith.constant 0 : index
    %3 = vector.load %arg2[%c0_3, %c0_4] : memref<1x128xf32, #tpu.memory_space<vmem>>, vector<1x128xf32>
    %4 = vector.shape_cast %3 : vector<1x128xf32> to vector<1x1x128xf32>
    %5 = vector.broadcast %4 : vector<1x1x128xf32> to vector<16x16x128xf32>
    %6 = arith.mulf %2, %5 : vector<16x16x128xf32>
    %c0_5 = arith.constant 0 : index
    %c0_6 = arith.constant 0 : index
    %7 = vector.load %arg3[%c0_5, %c0_6] : memref<1x128xf32, #tpu.memory_space<vmem>>, vector<1x128xf32>
    %8 = vector.shape_cast %7 : vector<1x128xf32> to vector<1x1x128xf32>
    %9 = vector.broadcast %8 : vector<1x1x128xf32> to vector<16x16x128xf32>
    %10 = arith.addf %6, %9 : vector<16x16x128xf32>
    %cst = arith.constant 0.000000e+00 : f32
    %11 = vector.broadcast %cst : f32 to vector<16x16x128xf32>
    %12 = arith.maximumf %10, %11 : vector<16x16x128xf32>
    %13 = arith.truncf %12 : vector<16x16x128xf32> to vector<16x16x128xbf16>
    %cst_7 = arith.constant 0.000000e+00 : bf16
    %14 = vector.broadcast %cst_7 : bf16 to vector<1x16x128xbf16>
    %15 = tpu.concatenate %14, %13, %14 in 0 : vector<1x16x128xbf16>, vector<16x16x128xbf16>, vector<1x16x128xbf16> -> vector<18x16x128xbf16>
    %cst_8 = arith.constant 0.000000e+00 : bf16
    %16 = vector.broadcast %cst_8 : bf16 to vector<18x1x128xbf16>
    %17 = tpu.concatenate %16, %15, %16 in 1 : vector<18x1x128xbf16>, vector<18x16x128xbf16>, vector<18x1x128xbf16> -> vector<18x18x128xbf16>
    %cst_9 = arith.constant 0.000000e+00 : f32
    %18 = vector.broadcast %cst_9 : f32 to vector<256x128xf32>
    %19 = vector.extract_strided_slice %17 {offsets = [0, 0, 0], sizes = [16, 16, 128], strides = [1, 1, 1]} : vector<18x18x128xbf16> to vector<16x16x128xbf16>
    %20 = vector.extract_strided_slice %17 {offsets = [0, 1, 0], sizes = [16, 16, 128], strides = [1, 1, 1]} : vector<18x18x128xbf16> to vector<16x16x128xbf16>
    %21 = vector.extract_strided_slice %17 {offsets = [0, 2, 0], sizes = [16, 16, 128], strides = [1, 1, 1]} : vector<18x18x128xbf16> to vector<16x16x128xbf16>
    %22 = tpu.concatenate %19, %20, %21 in 2 : vector<16x16x128xbf16>, vector<16x16x128xbf16>, vector<16x16x128xbf16> -> vector<16x16x384xbf16>
    %23 = vector.shape_cast %22 : vector<16x16x384xbf16> to vector<256x384xbf16>
    %c0_10 = arith.constant 0 : index
    %c0_11 = arith.constant 0 : index
    %c0_12 = arith.constant 0 : index
    %24 = vector.load %arg4[%c0_10, %c0_11, %c0_12] : memref<3x384x128xbf16, #tpu.memory_space<vmem>>, vector<1x384x128xbf16>
    %25 = vector.shape_cast %24 : vector<1x384x128xbf16> to vector<384x128xbf16>
    %cst_13 = arith.constant dense<0.000000e+00> : vector<256x128xf32>
    %26 = tpu.matmul %23, %25, %cst_13 {dimension_numbers = #tpu.dot_dimension_numbers<[1], [0], [0], [1], [0, 0, 1, 1], [], []>} : vector<256x384xbf16>, vector<384x128xbf16>, vector<256x128xf32> -> vector<256x128xf32>
    %27 = arith.addf %18, %26 : vector<256x128xf32>
    %28 = vector.extract_strided_slice %17 {offsets = [1, 0, 0], sizes = [16, 16, 128], strides = [1, 1, 1]} : vector<18x18x128xbf16> to vector<16x16x128xbf16>
    %29 = vector.extract_strided_slice %17 {offsets = [1, 1, 0], sizes = [16, 16, 128], strides = [1, 1, 1]} : vector<18x18x128xbf16> to vector<16x16x128xbf16>
    %30 = vector.extract_strided_slice %17 {offsets = [1, 2, 0], sizes = [16, 16, 128], strides = [1, 1, 1]} : vector<18x18x128xbf16> to vector<16x16x128xbf16>
    %31 = tpu.concatenate %28, %29, %30 in 2 : vector<16x16x128xbf16>, vector<16x16x128xbf16>, vector<16x16x128xbf16> -> vector<16x16x384xbf16>
    %32 = vector.shape_cast %31 : vector<16x16x384xbf16> to vector<256x384xbf16>
    %c1 = arith.constant 1 : index
    %c0_14 = arith.constant 0 : index
    %c0_15 = arith.constant 0 : index
    %33 = vector.load %arg4[%c1, %c0_14, %c0_15] : memref<3x384x128xbf16, #tpu.memory_space<vmem>>, vector<1x384x128xbf16>
    %34 = vector.shape_cast %33 : vector<1x384x128xbf16> to vector<384x128xbf16>
    %cst_16 = arith.constant dense<0.000000e+00> : vector<256x128xf32>
    %35 = tpu.matmul %32, %34, %cst_16 {dimension_numbers = #tpu.dot_dimension_numbers<[1], [0], [0], [1], [0, 0, 1, 1], [], []>} : vector<256x384xbf16>, vector<384x128xbf16>, vector<256x128xf32> -> vector<256x128xf32>
    %36 = arith.addf %27, %35 : vector<256x128xf32>
    %37 = vector.extract_strided_slice %17 {offsets = [2, 0, 0], sizes = [16, 16, 128], strides = [1, 1, 1]} : vector<18x18x128xbf16> to vector<16x16x128xbf16>
    %38 = vector.extract_strided_slice %17 {offsets = [2, 1, 0], sizes = [16, 16, 128], strides = [1, 1, 1]} : vector<18x18x128xbf16> to vector<16x16x128xbf16>
    %39 = vector.extract_strided_slice %17 {offsets = [2, 2, 0], sizes = [16, 16, 128], strides = [1, 1, 1]} : vector<18x18x128xbf16> to vector<16x16x128xbf16>
    %40 = tpu.concatenate %37, %38, %39 in 2 : vector<16x16x128xbf16>, vector<16x16x128xbf16>, vector<16x16x128xbf16> -> vector<16x16x384xbf16>
    %41 = vector.shape_cast %40 : vector<16x16x384xbf16> to vector<256x384xbf16>
    %c2 = arith.constant 2 : index
    %c0_17 = arith.constant 0 : index
    %c0_18 = arith.constant 0 : index
    %42 = vector.load %arg4[%c2, %c0_17, %c0_18] : memref<3x384x128xbf16, #tpu.memory_space<vmem>>, vector<1x384x128xbf16>
    %43 = vector.shape_cast %42 : vector<1x384x128xbf16> to vector<384x128xbf16>
    %cst_19 = arith.constant dense<0.000000e+00> : vector<256x128xf32>
    %44 = tpu.matmul %41, %43, %cst_19 {dimension_numbers = #tpu.dot_dimension_numbers<[1], [0], [0], [1], [0, 0, 1, 1], [], []>} : vector<256x384xbf16>, vector<384x128xbf16>, vector<256x128xf32> -> vector<256x128xf32>
    %45 = arith.addf %36, %44 : vector<256x128xf32>
    %c0_20 = arith.constant 0 : index
    %c0_21 = arith.constant 0 : index
    %46 = vector.load %arg5[%c0_20, %c0_21] : memref<1x128xf32, #tpu.memory_space<vmem>>, vector<1x128xf32>
    %47 = vector.broadcast %46 : vector<1x128xf32> to vector<256x128xf32>
    %48 = arith.addf %45, %47 : vector<256x128xf32>
    %49 = arith.truncf %48 : vector<256x128xf32> to vector<256x128xbf16>
    %c0_22 = arith.constant 0 : index
    %c0_23 = arith.constant 0 : index
    %c0_24 = arith.constant 0 : index
    %50 = vector.load %arg6[%c0_22, %c0_23, %c0_24] : memref<1x256x128xbf16, #tpu.memory_space<vmem>>, vector<1x256x128xbf16>
    %51 = vector.shape_cast %50 : vector<1x256x128xbf16> to vector<256x128xbf16>
    %52 = vector.shape_cast %49 : vector<256x128xbf16> to vector<1x256x128xbf16>
    tpu.vector_store %arg6[%c0_22, %c0_23, %c0_24], %52 {strides = array<i32>} : memref<1x256x128xbf16, #tpu.memory_space<vmem>>, vector<1x256x128xbf16>,
    %cst_25 = arith.constant dense<0.000000e+00> : vector<128xf32>
    %53 = vector.multi_reduction <add>, %48, %cst_25 [0] : vector<256x128xf32> to vector<128xf32>
    %54 = vector.shape_cast %53 : vector<128xf32> to vector<1x128xf32>
    %55 = arith.mulf %48, %48 : vector<256x128xf32>
    %cst_26 = arith.constant dense<0.000000e+00> : vector<128xf32>
    %56 = vector.multi_reduction <add>, %55, %cst_26 [0] : vector<256x128xf32> to vector<128xf32>
    %57 = vector.shape_cast %56 : vector<128xf32> to vector<1x128xf32>
    %58 = tpu.concatenate %54, %57 in 0 : vector<1x128xf32>, vector<1x128xf32> -> vector<2x128xf32>
    %c0_27 = arith.constant 0 : index
    %c0_28 = arith.constant 0 : index
    %c0_29 = arith.constant 0 : index
    %59 = vector.load %arg7[%c0_27, %c0_28, %c0_29] : memref<1x2x128xf32, #tpu.memory_space<vmem>>, vector<1x2x128xf32>
    %60 = vector.shape_cast %59 : vector<1x2x128xf32> to vector<2x128xf32>
    %61 = vector.shape_cast %58 : vector<2x128xf32> to vector<1x2x128xf32>
    tpu.vector_store %arg7[%c0_27, %c0_28, %c0_29], %61 {strides = array<i32>} : memref<1x2x128xf32, #tpu.memory_space<vmem>>, vector<1x2x128xf32>,
    return
  }
  func.func @transform_0(%arg0: i32) -> (i32, i32, i32, i32) {
    %c0_i32 = arith.constant 0 : i32
    %c0_i32_0 = arith.constant 0 : i32
    %c0_i32_1 = arith.constant 0 : i32
    %c0_i32_2 = arith.constant 0 : i32
    return %arg0, %c0_i32, %c0_i32_0, %c0_i32_1 : i32, i32, i32, i32
  }
  func.func @transform_1(%arg0: i32) -> (i32, i32) {
    %c0_i32 = arith.constant 0 : i32
    %c0_i32_0 = arith.constant 0 : i32
    %c0_i32_1 = arith.constant 0 : i32
    return %c0_i32, %c0_i32_0 : i32, i32
  }
  func.func @transform_2(%arg0: i32) -> (i32, i32) {
    %c0_i32 = arith.constant 0 : i32
    %c0_i32_0 = arith.constant 0 : i32
    %c0_i32_1 = arith.constant 0 : i32
    return %c0_i32, %c0_i32_0 : i32, i32
  }
  func.func @transform_3(%arg0: i32) -> (i32, i32, i32) {
    %c0_i32 = arith.constant 0 : i32
    %c0_i32_0 = arith.constant 0 : i32
    %c0_i32_1 = arith.constant 0 : i32
    %c0_i32_2 = arith.constant 0 : i32
    return %c0_i32, %c0_i32_0, %c0_i32_1 : i32, i32, i32
  }
  func.func @transform_4(%arg0: i32) -> (i32, i32) {
    %c0_i32 = arith.constant 0 : i32
    %c0_i32_0 = arith.constant 0 : i32
    %c0_i32_1 = arith.constant 0 : i32
    return %c0_i32, %c0_i32_0 : i32, i32
  }
  func.func @transform_5(%arg0: i32) -> (i32, i32, i32) {
    %c0_i32 = arith.constant 0 : i32
    %c0_i32_0 = arith.constant 0 : i32
    %c0_i32_1 = arith.constant 0 : i32
    return %arg0, %c0_i32, %c0_i32_0 : i32, i32, i32
  }
  func.func @transform_6(%arg0: i32) -> (i32, i32, i32) {
    %c0_i32 = arith.constant 0 : i32
    %c0_i32_0 = arith.constant 0 : i32
    %c0_i32_1 = arith.constant 0 : i32
    return %arg0, %c0_i32, %c0_i32_0 : i32, i32, i32
  }
}

module attributes {stable_mosaic.version = 11 : i64} {
  func.func @_stage_d_kernel(%arg0: i32, %arg1: memref<512x128xf32, #tpu.memory_space<vmem>>, %arg2: memref<512x128xbf16, #tpu.memory_space<vmem>>, %arg3: memref<128x128xbf16, #tpu.memory_space<vmem>>, %arg4: memref<1x128xf32, #tpu.memory_space<vmem>>, %arg5: memref<1x128xf32, #tpu.memory_space<vmem>>, %arg6: memref<1x128xf32, #tpu.memory_space<vmem>>, %arg7: memref<512x128xf32, #tpu.memory_space<vmem>>) attributes {dimension_semantics = [#tpu.dimension_semantics<parallel>], iteration_bounds = array<i64: 1>, scalar_prefetch = 0 : i64, scratch_operands = 0 : i64, tpu.core_type = #tpu.core_type<tc>, window_params = [{transform_indices = @transform_0, window_bounds = array<i64: 512, 128>}, {transform_indices = @transform_1, window_bounds = array<i64: 512, 128>}, {pipeline_mode = #tpu.pipeline_mode<synchronous>, transform_indices = @transform_2, window_bounds = array<i64: 128, 128>}, {pipeline_mode = #tpu.pipeline_mode<synchronous>, transform_indices = @transform_3, window_bounds = array<i64: 1, 128>}, {pipeline_mode = #tpu.pipeline_mode<synchronous>, transform_indices = @transform_4, window_bounds = array<i64: 1, 128>}, {pipeline_mode = #tpu.pipeline_mode<synchronous>, transform_indices = @transform_5, window_bounds = array<i64: 1, 128>}, {transform_indices = @transform_6, window_bounds = array<i64: 512, 128>}]} {
    %c0 = arith.constant 0 : index
    %c0_0 = arith.constant 0 : index
    %0 = vector.load %arg2[%c0, %c0_0] : memref<512x128xbf16, #tpu.memory_space<vmem>>, vector<512x128xbf16>
    %c0_1 = arith.constant 0 : index
    %c0_2 = arith.constant 0 : index
    %1 = vector.load %arg3[%c0_1, %c0_2] : memref<128x128xbf16, #tpu.memory_space<vmem>>, vector<128x128xbf16>
    %cst = arith.constant dense<0.000000e+00> : vector<512x128xf32>
    %2 = tpu.matmul %0, %1, %cst {dimension_numbers = #tpu.dot_dimension_numbers<[1], [0], [0], [1], [0, 0, 1, 1], [], []>} : vector<512x128xbf16>, vector<128x128xbf16>, vector<512x128xf32> -> vector<512x128xf32>
    %c0_3 = arith.constant 0 : index
    %c0_4 = arith.constant 0 : index
    %3 = vector.load %arg4[%c0_3, %c0_4] : memref<1x128xf32, #tpu.memory_space<vmem>>, vector<1x128xf32>
    %4 = vector.broadcast %3 : vector<1x128xf32> to vector<512x128xf32>
    %5 = arith.addf %2, %4 : vector<512x128xf32>
    %c0_5 = arith.constant 0 : index
    %c0_6 = arith.constant 0 : index
    %6 = vector.load %arg1[%c0_5, %c0_6] : memref<512x128xf32, #tpu.memory_space<vmem>>, vector<512x128xf32>
    %c0_7 = arith.constant 0 : index
    %c0_8 = arith.constant 0 : index
    %7 = vector.load %arg5[%c0_7, %c0_8] : memref<1x128xf32, #tpu.memory_space<vmem>>, vector<1x128xf32>
    %8 = vector.broadcast %7 : vector<1x128xf32> to vector<512x128xf32>
    %9 = arith.mulf %6, %8 : vector<512x128xf32>
    %c0_9 = arith.constant 0 : index
    %c0_10 = arith.constant 0 : index
    %10 = vector.load %arg6[%c0_9, %c0_10] : memref<1x128xf32, #tpu.memory_space<vmem>>, vector<1x128xf32>
    %11 = vector.broadcast %10 : vector<1x128xf32> to vector<512x128xf32>
    %12 = arith.addf %9, %11 : vector<512x128xf32>
    %13 = arith.addf %12, %5 : vector<512x128xf32>
    %cst_11 = arith.constant 0.000000e+00 : f32
    %14 = vector.broadcast %cst_11 : f32 to vector<512x128xf32>
    %15 = arith.maximumf %13, %14 : vector<512x128xf32>
    %c0_12 = arith.constant 0 : index
    %c0_13 = arith.constant 0 : index
    %16 = vector.load %arg7[%c0_12, %c0_13] : memref<512x128xf32, #tpu.memory_space<vmem>>, vector<512x128xf32>
    tpu.vector_store %arg7[%c0_12, %c0_13], %15 {strides = array<i32>} : memref<512x128xf32, #tpu.memory_space<vmem>>, vector<512x128xf32>,
    return
  }
  func.func @transform_0(%arg0: i32) -> (i32, i32) {
    %c0_i32 = arith.constant 0 : i32
    %c0_i32_0 = arith.constant 0 : i32
    return %arg0, %c0_i32 : i32, i32
  }
  func.func @transform_1(%arg0: i32) -> (i32, i32) {
    %c0_i32 = arith.constant 0 : i32
    %c0_i32_0 = arith.constant 0 : i32
    return %arg0, %c0_i32 : i32, i32
  }
  func.func @transform_2(%arg0: i32) -> (i32, i32) {
    %c0_i32 = arith.constant 0 : i32
    %c0_i32_0 = arith.constant 0 : i32
    %c0_i32_1 = arith.constant 0 : i32
    return %c0_i32, %c0_i32_0 : i32, i32
  }
  func.func @transform_3(%arg0: i32) -> (i32, i32) {
    %c0_i32 = arith.constant 0 : i32
    %c0_i32_0 = arith.constant 0 : i32
    %c0_i32_1 = arith.constant 0 : i32
    return %c0_i32, %c0_i32_0 : i32, i32
  }
  func.func @transform_4(%arg0: i32) -> (i32, i32) {
    %c0_i32 = arith.constant 0 : i32
    %c0_i32_0 = arith.constant 0 : i32
    %c0_i32_1 = arith.constant 0 : i32
    return %c0_i32, %c0_i32_0 : i32, i32
  }
  func.func @transform_5(%arg0: i32) -> (i32, i32) {
    %c0_i32 = arith.constant 0 : i32
    %c0_i32_0 = arith.constant 0 : i32
    %c0_i32_1 = arith.constant 0 : i32
    return %c0_i32, %c0_i32_0 : i32, i32
  }
  func.func @transform_6(%arg0: i32) -> (i32, i32) {
    %c0_i32 = arith.constant 0 : i32
    %c0_i32_0 = arith.constant 0 : i32
    return %arg0, %c0_i32 : i32, i32
  }
}

</mosaic_0001>

<bundles_post_ra>
// kernel: my_bottleneck.7
= control target key start
LH: loop header
LB: loop body
LE: loop exit
PB: predicated region body
PF: predicated region fallthrough
CT: control target
= control target key end

     0   :  { %s2027_s0 = inlined_call_operand.vmem [shape: f32[512,128], index: 0, kind: input, shape index: {}]   ;;  %s2028_s1 = inlined_call_operand.vmem [shape: bf16[512,128], index: 1, kind: input, shape index: {}]   ;;  %s2029_s2 = inlined_call_operand.vmem [shape: bf16[128,128], index: 2, kind: input, shape index: {}]   ;;  %s2030_s3 = inlined_call_operand.vmem [shape: f32[1,128], index: 3, kind: input, shape index: {}]   ;;  %s2031_s4 = inlined_call_operand.vmem [shape: f32[1,128], index: 4, kind: input, shape index: {}]   ;;  %s2032_s5 = inlined_call_operand.vmem [shape: f32[1,128], index: 5, kind: input, shape index: {}]   ;;  %s2033_s6 = inlined_call_operand.hbm [shape: f32[512,128], index: 6, kind: output, shape index: {}]  }
   0x1   :  { %v1237_v0 = vld [vmem:[%s2029_s2 + $0x38] sm:$0xff]   ;;  %v1238_v1 = vld [vmem:[%s2029_s2 + $0x30] sm:$0xff]   ;;  %v1239_v2 = vld [vmem:[%s2029_s2 + $0x28] sm:$0xff]  }
   0x2   :  { %1138 = vmatprep.subr.bf16.mxu0 %v1237_v0  ;;  %1218 = vmatprep.subr.bf16.mxu1 %v1237_v0  ;;  %v1240_v3 = vld [vmem:[%s2029_s2 + $0x20] sm:$0xff]   ;;  %v1241_v6 = vld [vmem:[%s2029_s2 + $0x18] sm:$0xff]   ;;  %v1242_v7 = vld [vmem:[%s2029_s2 + $0x10] sm:$0xff]  }
   0x3   :  { %1139 = vmatpush3.bf16.msra.mxu0 %v1237_v0  ;;  %1226 = vmatpush3.bf16.msra.mxu1 %v1237_v0  ;;  %v1245_v4 = vld [vmem:[%s2028_s1] sm:$0xff]   ;;  %v1243_v8 = vld [vmem:[%s2029_s2 + $0x8] sm:$0xff]   ;;  %v1249_v12 = vld [vmem:[%s2028_s1 + $0x10] sm:$0xff]  }
   0x4   :  { %1140 = vmatprep.subr.bf16.mxu0 %v1238_v1  ;;  %1219 = vmatprep.subr.bf16.mxu1 %v1238_v1  ;;  %v1246_v5 = vld [vmem:[%s2028_s1 + $0x80] sm:$0xff]   ;;  %v1247_v10 = vld [vmem:[%s2028_s1 + $0x8] sm:$0xff]   ;;  %v1250_v13 = vld [vmem:[%s2028_s1 + $0x90] sm:$0xff]  }
   0x5   :  { %1154 = vmatprep.mubr.bf16.mxu0 %v1245_v4  ;;  %1186 = vmatprep.mubr.bf16.mxu1 %v1246_v5  ;;  %v1244_v9 = vld [vmem:[%s2029_s2] sm:$0xff]   ;;  %v1248_v11 = vld [vmem:[%s2028_s1 + $0x88] sm:$0xff]   ;;  %v1251_v14 = vld [vmem:[%s2028_s1 + $0x18] sm:$0xff]  }
   0x6   :  { %v1252_v15 = vld [vmem:[%s2028_s1 + $0x98] sm:$0xff]   ;;  %v1253_v16 = vld [vmem:[%s2028_s1 + $0x20] sm:$0xff]  }
   0x7   :  { %1141 = vmatpush3.bf16.msra.mxu0 %v1238_v1  ;;  %1227 = vmatpush3.bf16.msra.mxu1 %v1238_v1  ;;  %v1254_v17 = vld [vmem:[%s2028_s1 + $0xa0] sm:$0xff]  }
   0x8   :  { %1142 = vmatprep.subr.bf16.mxu0 %v1239_v2  ;;  %1220 = vmatprep.subr.bf16.mxu1 %v1239_v2 }
   0xb   :  { %1143 = vmatpush3.bf16.msra.mxu0 %v1239_v2  ;;  %1228 = vmatpush3.bf16.msra.mxu1 %v1239_v2 }
   0xc   :  { %1144 = vmatprep.subr.bf16.mxu0 %v1240_v3  ;;  %1221 = vmatprep.subr.bf16.mxu1 %v1240_v3 }
   0xf   :  { %1145 = vmatpush3.bf16.msra.mxu0 %v1240_v3  ;;  %1229 = vmatpush3.bf16.msra.mxu1 %v1240_v3 }
  0x10   :  { %1146 = vmatprep.subr.bf16.mxu0 %v1241_v6  ;;  %1222 = vmatprep.subr.bf16.mxu1 %v1241_v6 }
  0x13   :  { %1147 = vmatpush3.bf16.msra.mxu0 %v1241_v6  ;;  %1230 = vmatpush3.bf16.msra.mxu1 %v1241_v6 }
  0x14   :  { %1148 = vmatprep.subr.bf16.mxu0 %v1242_v7  ;;  %1223 = vmatprep.subr.bf16.mxu1 %v1242_v7 }
  0x17   :  { %1149 = vmatpush3.bf16.msra.mxu0 %v1242_v7  ;;  %1231 = vmatpush3.bf16.msra.mxu1 %v1242_v7 }
  0x18   :  { %1150 = vmatprep.subr.bf16.mxu0 %v1243_v8  ;;  %1224 = vmatprep.subr.bf16.mxu1 %v1243_v8 }
  0x1b   :  { %1151 = vmatpush3.bf16.msra.mxu0 %v1243_v8  ;;  %1232 = vmatpush3.bf16.msra.mxu1 %v1243_v8 }
  0x1c   :  { %1152 = vmatprep.subr.bf16.mxu0 %v1244_v9  ;;  %1225 = vmatprep.subr.bf16.mxu1 %v1244_v9 }
  0x1f   :  { %1153 = vmatpush3.bf16.msra.mxu0 %v1244_v9  ;;  %1233 = vmatpush3.bf16.msra.mxu1 %v1244_v9 }
  0x22   :  { %1155 = vmatmul.mubr.bf16.vlgmr.msra.gmra.mxu0 %v1247_v10  ;;  %1187 = vmatmul.mubr.bf16.vlgmr.msra.gmra.mxu1 %v1248_v11 }
  0x23   :  { %1158 = vmatprep.mubr.bf16.mxu0 %v1249_v12  ;;  %1190 = vmatprep.mubr.bf16.mxu1 %v1250_v13 }
  0x24   :  { %11 = vsyncpa [#allocation3], 0  ;;  %v1255_v18 = vld [vmem:[%s2028_s1 + $0x28] sm:$0xff]   ;;  %v1257_v20 = vld [vmem:[%s2028_s1 + $0x30] sm:$0xff]  }
  0x25   :  { %v1256_v19 = vld [vmem:[%s2028_s1 + $0xa8] sm:$0xff]   ;;  %v1258_v21 = vld [vmem:[%s2028_s1 + $0xb0] sm:$0xff]   ;;  %v1259_v22 = vld [vmem:[%s2028_s1 + $0x38] sm:$0xff]  }
  0x26   :  { %v1260_v23 = vld [vmem:[%s2028_s1 + $0xb8] sm:$0xff]   ;;  %v1261_v24 = vld [vmem:[%s2028_s1 + $0x40] sm:$0xff]   ;;  %v1263_v26 = vld [vmem:[%s2028_s1 + $0x48] sm:$0xff]  }
  0x27   :  { %v1262_v25 = vld [vmem:[%s2028_s1 + $0xc0] sm:$0xff]   ;;  %v1264_v27 = vld [vmem:[%s2028_s1 + $0xc8] sm:$0xff]   ;;  %v1265_v28 = vld [vmem:[%s2028_s1 + $0x50] sm:$0xff]  }
  0x28   :  { %v1266_v29 = vld [vmem:[%s2028_s1 + $0xd0] sm:$0xff]   ;;  %v1267_v30 = vld [vmem:[%s2028_s1 + $0x58] sm:$0xff]   ;;  %v1269_v32 = vld [vmem:[%s2028_s1 + $0x60] sm:$0xff]  }
  0x29   :  { %v1268_v31 = vld [vmem:[%s2028_s1 + $0xd8] sm:$0xff]   ;;  %v1270_v33 = vld [vmem:[%s2028_s1 + $0xe0] sm:$0xff]   ;;  %v1271_v34 = vld [vmem:[%s2028_s1 + $0x68] sm:$0xff]  }
  0x2a   :  { %1159 = vmatmul.mubr.bf16.gmra.mxu0 %v1251_v14  ;;  %1191 = vmatmul.mubr.bf16.gmra.mxu1 %v1252_v15  ;;  %v1272_v35 = vld [vmem:[%s2028_s1 + $0xe8] sm:$0xff]   ;;  %v1273_v36 = vld [vmem:[%s2028_s1 + $0x70] sm:$0xff]   ;;  %v1275_v38 = vld [vmem:[%s2028_s1 + $0x78] sm:$0xff]  }
  0x2b   :  { %1162 = vmatprep.mubr.bf16.mxu0 %v1253_v16  ;;  %1194 = vmatprep.mubr.bf16.mxu1 %v1254_v17  ;;  %v1274_v37 = vld [vmem:[%s2028_s1 + $0xf0] sm:$0xff]   ;;  %v1276_v39 = vld [vmem:[%s2028_s1 + $0xf8] sm:$0xff]   ;;  %v1463_v41 = vld [vmem:[%s2031_s4] ss:$0 sm:$0xff] }
  0x2c   :  { %v643_v40 = vld [vmem:[%s2027_s0 + $0x10] sm:$0xff]  ;;  %v641_v43 = vld [vmem:[%s2027_s0] sm:$0xff]  ;;  %v644_v45 = vld [vmem:[%s2027_s0 + $0x18] sm:$0xff] }
  0x2d   :  { %v675_v42 = vld [vmem:[%s2027_s0 + $0x110] sm:$0xff]  ;;  %v673_v44 = vld [vmem:[%s2027_s0 + $0x100] sm:$0xff]  ;;  %v676_v46 = vld [vmem:[%s2027_s0 + $0x118] sm:$0xff]  ;;  %v714_v48 = vmul.f32 %v1463_v41, %v643_v40  ;;  %v712_v50 = vmul.f32 %v1463_v41, %v641_v43  ;;  %v715_v56 = vmul.f32 %v1463_v41, %v644_v45 }
  0x2e   :  { %v642_v47 = vld [vmem:[%s2027_s0 + $0x8] sm:$0xff]  ;;  %v746_v49 = vmul.f32 %v1463_v41, %v675_v42  ;;  %v744_v51 = vmul.f32 %v1463_v41, %v673_v44  ;;  %v647_v53 = vld [vmem:[%s2027_s0 + $0x30] sm:$0xff]  ;;  %v1499_v55 = vld [vmem:[%s2032_s5] ss:$0 sm:$0xff]  ;;  %v747_v57 = vmul.f32 %v1463_v41, %v676_v46 }
  0x2f   :  { %v674_v52 = vld [vmem:[%s2027_s0 + $0x108] sm:$0xff]  ;;  %v679_v54 = vld [vmem:[%s2027_s0 + $0x130] sm:$0xff]  ;;  %v645_v58 = vld [vmem:[%s2027_s0 + $0x20] sm:$0xff]  ;;  %v713_v61 = vmul.f32 %v1463_v41, %v642_v47  ;;  %v718_v63 = vmul.f32 %v1463_v41, %v647_v53  ;;  %v1526_v4 = vadd.f32 %v1499_v55, %v714_v48  ;;  %v1532_v6 = vadd.f32 %v1499_v55, %v712_v50 }
  0x30   :  { %v677_v59 = vld [vmem:[%s2027_s0 + $0x120] sm:$0xff]  ;;  %v648_v60 = vld [vmem:[%s2027_s0 + $0x38] sm:$0xff]  ;;  %v745_v62 = vmul.f32 %v1463_v41, %v674_v52  ;;  %v750_v0 = vmul.f32 %v1463_v41, %v679_v54  ;;  %v646_v2 = vld [vmem:[%s2027_s0 + $0x28] sm:$0xff]  ;;  %v1529_v5 = vadd.f32 %v1499_v55, %v746_v49  ;;  %v1535_v7 = vadd.f32 %v1499_v55, %v744_v51 }
  0x31   :  { %v680_v1 = vld [vmem:[%s2027_s0 + $0x138] sm:$0xff]  ;;  %v678_v3 = vld [vmem:[%s2027_s0 + $0x128] sm:$0xff]  ;;  %v651_v8 = vld [vmem:[%s2027_s0 + $0x50] sm:$0xff]  ;;  %v1541_v9 = vadd.f32 %v1499_v55, %v715_v56  ;;  %v1544_v10 = vadd.f32 %v1499_v55, %v747_v57  ;;  %v716_v11 = vmul.f32 %v1463_v41, %v645_v58  ;;  %v748_v12 = vmul.f32 %v1463_v41, %v677_v59 }
  0x32   :  { %1163 = vmatmul.mubr.bf16.gmra.mxu0 %v1255_v18  ;;  %1195 = vmatmul.mubr.bf16.gmra.mxu1 %v1256_v19  ;;  %v683_v13 = vld [vmem:[%s2027_s0 + $0x150] sm:$0xff]  ;;  %v649_v14 = vld [vmem:[%s2027_s0 + $0x40] sm:$0xff]  ;;  %v719_v16 = vmul.f32 %v1463_v41, %v648_v60  ;;  %v751_v17 = vmul.f32 %v1463_v41, %v680_v1  ;;  %v717_v18 = vmul.f32 %v1463_v41, %v646_v2  ;;  %v656_v45 = vld [vmem:[%s2027_s0 + $0x78] sm:$0xff] }
  0x33   :  { %1166 = vmatprep.mubr.bf16.mxu0 %v1257_v20  ;;  %1198 = vmatprep.mubr.bf16.mxu1 %v1258_v21  ;;  %v681_v15 = vld [vmem:[%s2027_s0 + $0x140] sm:$0xff]  ;;  %v749_v19 = vmul.f32 %v1463_v41, %v678_v3  ;;  %v652_v20 = vld [vmem:[%s2027_s0 + $0x58] sm:$0xff]  ;;  %v654_v51 = vld [vmem:[%s2027_s0 + $0x68] sm:$0xff]  ;;  %v727_v3 = vmul.f32 %v1463_v41, %v656_v45 }
  0x34   :  { %v684_v21 = vld [vmem:[%s2027_s0 + $0x158] sm:$0xff]  ;;  %v1610_v40 = vadd.f32 %v1499_v55, %v717_v18  ;;  %v653_v43 = vld [vmem:[%s2027_s0 + $0x60] sm:$0xff]  ;;  %v686_v52 = vld [vmem:[%s2027_s0 + $0x168] sm:$0xff] }
  0x35   :  { %v1613_v42 = vadd.f32 %v1499_v55, %v749_v19  ;;  %v685_v44 = vld [vmem:[%s2027_s0 + $0x160] sm:$0xff]  ;;  %v688_v50 = vld [vmem:[%s2027_s0 + $0x178] sm:$0xff]  ;;  %v659_v58 = vld [vmem:[%s2027_s0 + $0x90] sm:$0xff] }
  0x36   :  { %v689_v1 = vld [vmem:[%s2027_s0 + $0x180] sm:$0xff]  ;;  %v730_v19 = vmul.f32 %v1463_v41, %v659_v58 }
  0x37   :  { %v1672_v2 = vld [vmem:[%s2030_s3] ss:$0 sm:$0xff] }
  0x3a   :  { %1167 = vmatmul.mubr.bf16.gmra.mxu0 %v1259_v22  ;;  %1199 = vmatmul.mubr.bf16.gmra.mxu1 %v1260_v23  ;;  %v1568_v22 = vadd.f32 %v1499_v55, %v713_v61  ;;  %v1571_v23 = vadd.f32 %v1499_v55, %v745_v62  ;;  %v724_v61 = vmul.f32 %v1463_v41, %v653_v43 }
  0x3b   :  { %1170 = vmatprep.mubr.bf16.mxu0 %v1261_v24  ;;  %1202 = vmatprep.mubr.bf16.mxu1 %v1262_v25  ;;  %v1574_v24 = vadd.f32 %v1499_v55, %v718_v63  ;;  %v1577_v25 = vadd.f32 %v1499_v55, %v750_v0  ;;  %v756_v62 = vmul.f32 %v1463_v41, %v685_v44  ;;  %v691_v63 = vld [vmem:[%s2027_s0 + $0x190] sm:$0xff]  ;;  %v657_v0 = vld [vmem:[%s2027_s0 + $0x80] sm:$0xff] }
  0x42   :  { %1171 = vmatmul.mubr.bf16.gmra.mxu0 %v1263_v26  ;;  %1203 = vmatmul.mubr.bf16.gmra.mxu1 %v1264_v27  ;;  %v650_v26 = vld [vmem:[%s2027_s0 + $0x48] sm:$0xff]  ;;  %v722_v27 = vmul.f32 %v1463_v41, %v651_v8  ;;  %v759_v8 = vmul.f32 %v1463_v41, %v688_v50 }
  0x43   :  { %1174 = vmatprep.mubr.bf16.mxu0 %v1265_v28  ;;  %1206 = vmatprep.mubr.bf16.mxu1 %v1266_v29  ;;  %v754_v28 = vmul.f32 %v1463_v41, %v683_v13  ;;  %v720_v29 = vmul.f32 %v1463_v41, %v649_v14  ;;  %v721_v46 = vmul.f32 %v1463_v41, %v650_v26 }
  0x44   :  { %v1638_v53 = vadd.f32 %v1499_v55, %v722_v27  ;;  %v760_v26 = vmul.f32 %v1463_v41, %v689_v1  ;;  %v658_v1 = vld [vmem:[%s2027_s0 + $0x88] sm:$0xff] }
  0x45   :  { %v1641_v54 = vadd.f32 %v1499_v55, %v754_v28  ;;  %v1644_v56 = vadd.f32 %v1499_v55, %v720_v29  ;;  %v1679_v13 = vadd.f32 %v1499_v55, %v721_v46  ;;  %v1697_v29 = vadd.f32 %v1499_v55, %v724_v61 }
  0x46   :  { %v1734_v58 = vadd.f32 %v1499_v55, %v760_v26 }
  0x4a   :  { %1175 = vmatmul.mubr.bf16.gmra.mxu0 %v1267_v30  ;;  %1207 = vmatmul.mubr.bf16.gmra.mxu1 %v1268_v31  ;;  %v752_v30 = vmul.f32 %v1463_v41, %v681_v15  ;;  %v682_v31 = vld [vmem:[%s2027_s0 + $0x148] sm:$0xff] }
  0x4b   :  { %1178 = vmatprep.mubr.bf16.mxu0 %v1269_v32  ;;  %1210 = vmatprep.mubr.bf16.mxu1 %v1270_v33  ;;  %v655_v32 = vld [vmem:[%s2027_s0 + $0x70] sm:$0xff]  ;;  %v753_v47 = vmul.f32 %v1463_v41, %v682_v31 }
  0x4c   :  { %v687_v33 = vld [vmem:[%s2027_s0 + $0x170] sm:$0xff]  ;;  %v726_v48 = vmul.f32 %v1463_v41, %v655_v32  ;;  %v1647_v57 = vadd.f32 %v1499_v55, %v752_v30  ;;  %v1700_v30 = vadd.f32 %v1499_v55, %v756_v62 }
  0x4d   :  { %v758_v49 = vmul.f32 %v1463_v41, %v687_v33  ;;  %v1682_v14 = vadd.f32 %v1499_v55, %v753_v47  ;;  %v1703_v33 = vadd.f32 %v1499_v55, %v727_v3  ;;  %v690_v3 = vld [vmem:[%s2027_s0 + $0x188] sm:$0xff] }
  0x4e   :  { %v1685_v15 = vadd.f32 %v1499_v55, %v726_v48  ;;  %v660_v48 = vld [vmem:[%s2027_s0 + $0x98] sm:$0xff] }
  0x52   :  { %1179 = vmatmul.mubr.bf16.gmra.mxu0 %v1271_v34  ;;  %1211 = vmatmul.mubr.bf16.gmra.mxu1 %v1272_v35  ;;  %v1596_v34 = vadd.f32 %v1499_v55, %v716_v11  ;;  %v1599_v35 = vadd.f32 %v1499_v55, %v748_v12  ;;  %v725_v11 = vmul.f32 %v1463_v41, %v654_v51 }
  0x53   :  { %1182 = vmatprep.mubr.bf16.mxu0 %v1273_v36  ;;  %1214 = vmatprep.mubr.bf16.mxu1 %v1274_v37  ;;  %v723_v36 = vmul.f32 %v1463_v41, %v652_v20  ;;  %v755_v37 = vmul.f32 %v1463_v41, %v684_v21  ;;  %v757_v12 = vmul.f32 %v1463_v41, %v686_v52 }
  0x54   :  { %v762_v20 = vmul.f32 %v1463_v41, %v691_v63  ;;  %v728_v21 = vmul.f32 %v1463_v41, %v657_v0  ;;  %v1725_v52 = vadd.f32 %v1499_v55, %v730_v19 }
  0x55   :  { %v1653_v59 = vadd.f32 %v1499_v55, %v723_v36  ;;  %v1656_v60 = vadd.f32 %v1499_v55, %v755_v37  ;;  %v1706_v36 = vadd.f32 %v1499_v55, %v759_v8  ;;  %v1709_v37 = vadd.f32 %v1499_v55, %v725_v11 }
  0x56   :  { %v1712_v43 = vadd.f32 %v1499_v55, %v757_v12 }
  0x5a   :  { %1183 = vmatmul.mubr.bf16.gmra.mxu0 %v1275_v38  ;;  %1215 = vmatmul.mubr.bf16.gmra.mxu1 %v1276_v39  ;;  %v1604_v38 = vadd.f32 %v1499_v55, %v719_v16  ;;  %v1607_v39 = vadd.f32 %v1499_v55, %v751_v17  ;;  %v1688_v16 = vadd.f32 %v1499_v55, %v758_v49  ;;  %v692_v49 = vld [vmem:[%s2027_s0 + $0x198] sm:$0xff] }
  0xe2   :  { %v1156_v17 = vpop.f32.mrf.mxu0  ;;  %v1188_v18 = vpop.f32.mrf.mxu1 }
  0xe3   :  { %v395_v27 = vadd.f32 %v1156_v17, %v1672_v2  ;;  %v523_v28 = vadd.f32 %v1188_v18, %v1672_v2  ;;  %v731_v18 = vmul.f32 %v1463_v41, %v660_v48 }
  0xe4   :  { %v386_v31 = vpop.f32.mrf.mxu0  ;;  %v514_v32 = vpop.f32.mrf.mxu1 }
  0xe5   :  { %v849_v44 = vadd.f32 %v1526_v4, %v395_v27  ;;  %v881_v45 = vadd.f32 %v1529_v5, %v523_v28  ;;  %v387_v46 = vadd.f32 %v1672_v2, %v386_v31  ;;  %v515_v47 = vadd.f32 %v1672_v2, %v514_v32 }
  0xe6   :  { %v1157_v50 = vpop.f32.mrf.mxu0  ;;  %v1189_v51 = vpop.f32.mrf.mxu1  ;;  %v1728_v4 = vadd.f32 %v1499_v55, %v762_v20  ;;  %v1731_v5 = vadd.f32 %v1499_v55, %v728_v21  ;;  %v729_v32 = vmul.f32 %v1463_v41, %v658_v1  ;;  %v695_v1 = vld [vmem:[%s2027_s0 + $0x1b0] sm:$0xff] }
  0xe7   :  { %v913_v61 = vmax.f32 %v849_v44, 0.0  ;;  %v945_v62 = vmax.f32 %v881_v45, 0.0  ;;  %v847_v63 = vadd.f32 %v1532_v6, %v387_v46  ;;  %v879_v0 = vadd.f32 %v1535_v7, %v515_v47 }
  0xe8   :  { %v398_v8 = vadd.f32 %v1157_v50, %v1672_v2  ;;  %v526_v11 = vadd.f32 %v1189_v51, %v1672_v2  ;;  %v389_v12 = vpop.f32.mrf.mxu0  ;;  %v517_v17 = vpop.f32.mrf.mxu1  ;;  %v763_v6 = vmul.f32 %v1463_v41, %v692_v49  ;;  %v761_v44 = vmul.f32 %v1463_v41, %v690_v3 }
  0xe9   :  { %977 = vst [vmem:[#allocation2 + $0x10] sm:$0xff] %v913_v61  ;;  %1009 = vst [vmem:[#allocation2 + $0x110] sm:$0xff] %v945_v62  ;;  %v911_v7 = vmax.f32 %v847_v63, 0.0  ;;  %v943_v19 = vmax.f32 %v879_v0, 0.0  ;;  %v390_v20 = vadd.f32 %v1672_v2, %v389_v12  ;;  %v518_v21 = vadd.f32 %v1672_v2, %v517_v17  ;;  %v663_v0 = vld [vmem:[%s2027_s0 + $0xb0] sm:$0xff] }
  0xea   :  { %v850_v26 = vadd.f32 %v1541_v9, %v398_v8  ;;  %v882_v27 = vadd.f32 %v1544_v10, %v526_v11  ;;  %v1160_v28 = vpop.f32.mrf.mxu0  ;;  %v1192_v31 = vpop.f32.mrf.mxu1  ;;  %v1759_v51 = vadd.f32 %v1499_v55, %v731_v18  ;;  %v1762_v61 = vadd.f32 %v1499_v55, %v763_v6 }
  0xeb   :  { %975 = vst [vmem:[#allocation2] sm:$0xff] %v911_v7  ;;  %1007 = vst [vmem:[#allocation2 + $0x100] sm:$0xff] %v943_v19  ;;  %v848_v45 = vadd.f32 %v1568_v22, %v390_v20  ;;  %v880_v46 = vadd.f32 %v1571_v23, %v518_v21  ;;  %v411_v47 = vadd.f32 %v1160_v28, %v1672_v2  ;;  %v661_v19 = vld [vmem:[%s2027_s0 + $0xa0] sm:$0xff] }
  0xec   :  { %v539_v48 = vadd.f32 %v1192_v31, %v1672_v2  ;;  %v914_v49 = vmax.f32 %v850_v26, 0.0  ;;  %v946_v9 = vmax.f32 %v882_v27, 0.0  ;;  %v402_v50 = vpop.f32.mrf.mxu0  ;;  %v530_v10 = vpop.f32.mrf.mxu1  ;;  %v693_v20 = vld [vmem:[%s2027_s0 + $0x1a0] sm:$0xff]  ;;  %v734_v31 = vmul.f32 %v1463_v41, %v663_v0 }
  0xed   :  { %v912_v62 = vmax.f32 %v848_v45, 0.0  ;;  %v944_v63 = vmax.f32 %v880_v46, 0.0  ;;  %v853_v22 = vadd.f32 %v1574_v24, %v411_v47  ;;  %v403_v3 = vadd.f32 %v1672_v2, %v402_v50 }
  0xee   :  { %v885_v23 = vadd.f32 %v1577_v25, %v539_v48  ;;  %978 = vst [vmem:[#allocation2 + $0x18] sm:$0xff] %v914_v49  ;;  %1010 = vst [vmem:[#allocation2 + $0x118] sm:$0xff] %v946_v9  ;;  %v531_v8 = vadd.f32 %v1672_v2, %v530_v10  ;;  %v1161_v11 = vpop.f32.mrf.mxu0  ;;  %v1193_v12 = vpop.f32.mrf.mxu1  ;;  %v1775_v24 = vadd.f32 %v1499_v55, %v729_v32 }
  0xef   :  { %v1778_v25 = vadd.f32 %v1499_v55, %v761_v44  ;;  %976 = vst [vmem:[#allocation2 + $0x8] sm:$0xff] %v912_v62  ;;  %1008 = vst [vmem:[#allocation2 + $0x108] sm:$0xff] %v944_v63  ;;  %v917_v17 = vmax.f32 %v853_v22, 0.0  ;;  %v414_v6 = vadd.f32 %v1161_v11, %v1672_v2  ;;  %v542_v7 = vadd.f32 %v1193_v12, %v1672_v2  ;;  %v664_v12 = vld [vmem:[%s2027_s0 + $0xb8] sm:$0xff] }
  0xf0   :  { %v949_v18 = vmax.f32 %v885_v23, 0.0  ;;  %v851_v21 = vadd.f32 %v1596_v34, %v403_v3  ;;  %v883_v26 = vadd.f32 %v1599_v35, %v531_v8  ;;  %v405_v27 = vpop.f32.mrf.mxu0  ;;  %v533_v28 = vpop.f32.mrf.mxu1  ;;  %v766_v32 = vmul.f32 %v1463_v41, %v695_v1 }
  0xf1   :  { %981 = vst [vmem:[#allocation2 + $0x30] sm:$0xff] %v917_v17  ;;  %v854_v44 = vadd.f32 %v1604_v38, %v414_v6  ;;  %v886_v45 = vadd.f32 %v1607_v39, %v542_v7  ;;  %v406_v46 = vadd.f32 %v1672_v2, %v405_v27  ;;  %v534_v47 = vadd.f32 %v1672_v2, %v533_v28  ;;  %v696_v17 = vld [vmem:[%s2027_s0 + $0x1b8] sm:$0xff] }
  0xf2   :  { %1013 = vst [vmem:[#allocation2 + $0x130] sm:$0xff] %v949_v18  ;;  %v915_v48 = vmax.f32 %v851_v21, 0.0  ;;  %v947_v34 = vmax.f32 %v883_v26, 0.0  ;;  %v1164_v49 = vpop.f32.mrf.mxu0  ;;  %v1196_v35 = vpop.f32.mrf.mxu1  ;;  %v732_v9 = vmul.f32 %v1463_v41, %v661_v19  ;;  %v764_v50 = vmul.f32 %v1463_v41, %v693_v20 }
  0xf3   :  { %v918_v10 = vmax.f32 %v854_v44, 0.0  ;;  %v950_v62 = vmax.f32 %v886_v45, 0.0  ;;  %v852_v63 = vadd.f32 %v1610_v40, %v406_v46  ;;  %v884_v38 = vadd.f32 %v1613_v42, %v534_v47 }
  0xf4   :  { %979 = vst [vmem:[#allocation2 + $0x20] sm:$0xff] %v915_v48  ;;  %1011 = vst [vmem:[#allocation2 + $0x120] sm:$0xff] %v947_v34  ;;  %v427_v39 = vadd.f32 %v1164_v49, %v1672_v2  ;;  %v555_v22 = vadd.f32 %v1196_v35, %v1672_v2  ;;  %v418_v23 = vpop.f32.mrf.mxu0  ;;  %v546_v0 = vpop.f32.mrf.mxu1  ;;  %v1803_v1 = vadd.f32 %v1499_v55, %v734_v31  ;;  %v694_v31 = vld [vmem:[%s2027_s0 + $0x1a8] sm:$0xff] }
  0xf5   :  { %v1806_v3 = vadd.f32 %v1499_v55, %v766_v32  ;;  %982 = vst [vmem:[#allocation2 + $0x38] sm:$0xff] %v918_v10  ;;  %1014 = vst [vmem:[#allocation2 + $0x138] sm:$0xff] %v950_v62  ;;  %v916_v8 = vmax.f32 %v852_v63, 0.0  ;;  %v948_v40 = vmax.f32 %v884_v38, 0.0  ;;  %v419_v42 = vadd.f32 %v1672_v2, %v418_v23 }
  0xf6   :  { %v547_v11 = vadd.f32 %v1672_v2, %v546_v0  ;;  %v857_v18 = vadd.f32 %v1638_v53, %v427_v39  ;;  %v889_v6 = vadd.f32 %v1641_v54, %v555_v22  ;;  %v1165_v7 = vpop.f32.mrf.mxu0  ;;  %v1197_v19 = vpop.f32.mrf.mxu1  ;;  %v1819_v20 = vadd.f32 %v1499_v55, %v732_v9  ;;  %v662_v54 = vld [vmem:[%s2027_s0 + $0xa8] sm:$0xff] }
  0xf7   :  { %v1822_v21 = vadd.f32 %v1499_v55, %v764_v50  ;;  %980 = vst [vmem:[#allocation2 + $0x28] sm:$0xff] %v916_v8  ;;  %1012 = vst [vmem:[#allocation2 + $0x128] sm:$0xff] %v948_v40  ;;  %v855_v26 = vadd.f32 %v1644_v56, %v419_v42  ;;  %v430_v28 = vadd.f32 %v1165_v7, %v1672_v2 }
  0xf8   :  { %v887_v27 = vadd.f32 %v1647_v57, %v547_v11  ;;  %v558_v53 = vadd.f32 %v1197_v19, %v1672_v2  ;;  %v921_v32 = vmax.f32 %v857_v18, 0.0  ;;  %v953_v44 = vmax.f32 %v889_v6, 0.0  ;;  %v421_v45 = vpop.f32.mrf.mxu0  ;;  %v549_v46 = vpop.f32.mrf.mxu1  ;;  %v699_v18 = vld [vmem:[%s2027_s0 + $0x1d0] sm:$0xff] }
  0xf9   :  { %v735_v56 = vmul.f32 %v1463_v41, %v664_v12  ;;  %v767_v57 = vmul.f32 %v1463_v41, %v696_v17  ;;  %v919_v47 = vmax.f32 %v855_v26, 0.0  ;;  %v858_v34 = vadd.f32 %v1653_v59, %v430_v28 }
  0xfa   :  { %v951_v48 = vmax.f32 %v887_v27, 0.0  ;;  %v890_v49 = vadd.f32 %v1656_v60, %v558_v53  ;;  %985 = vst [vmem:[#allocation2 + $0x50] sm:$0xff] %v921_v32  ;;  %1017 = vst [vmem:[#allocation2 + $0x150] sm:$0xff] %v953_v44  ;;  %v422_v35 = vadd.f32 %v1672_v2, %v421_v45  ;;  %v550_v9 = vadd.f32 %v1672_v2, %v549_v46  ;;  %v1168_v50 = vpop.f32.mrf.mxu0  ;;  %v1200_v10 = vpop.f32.mrf.mxu1  ;;  %v697_v32 = vld [vmem:[%s2027_s0 + $0x1c0] sm:$0xff] }
  0xfb   :  { %v733_v62 = vmul.f32 %v1463_v41, %v662_v54  ;;  %v765_v63 = vmul.f32 %v1463_v41, %v694_v31  ;;  %983 = vst [vmem:[#allocation2 + $0x40] sm:$0xff] %v919_v47  ;;  %v922_v38 = vmax.f32 %v858_v34, 0.0  ;;  %v443_v59 = vadd.f32 %v1168_v50, %v1672_v2  ;;  %v665_v31 = vld [vmem:[%s2027_s0 + $0xc0] sm:$0xff] }
  0xfc   :  { %1015 = vst [vmem:[#allocation2 + $0x140] sm:$0xff] %v951_v48  ;;  %v954_v39 = vmax.f32 %v890_v49, 0.0  ;;  %v571_v60 = vadd.f32 %v1200_v10, %v1672_v2  ;;  %v856_v22 = vadd.f32 %v1679_v13, %v422_v35  ;;  %v888_v23 = vadd.f32 %v1682_v14, %v550_v9  ;;  %v434_v0 = vpop.f32.mrf.mxu0  ;;  %v562_v8 = vpop.f32.mrf.mxu1  ;;  %v667_v14 = vld [vmem:[%s2027_s0 + $0xd0] sm:$0xff] }
  0xfd   :  { %v1847_v40 = vadd.f32 %v1499_v55, %v735_v56  ;;  %v1850_v42 = vadd.f32 %v1499_v55, %v767_v57  ;;  %986 = vst [vmem:[#allocation2 + $0x58] sm:$0xff] %v922_v38  ;;  %v861_v11 = vadd.f32 %v1685_v15, %v443_v59  ;;  %v435_v17 = vadd.f32 %v1672_v2, %v434_v0 }
  0xfe   :  { %1018 = vst [vmem:[#allocation2 + $0x158] sm:$0xff] %v954_v39  ;;  %v893_v12 = vadd.f32 %v1688_v16, %v571_v60  ;;  %v563_v13 = vadd.f32 %v1672_v2, %v562_v8  ;;  %v920_v6 = vmax.f32 %v856_v22, 0.0  ;;  %v952_v7 = vmax.f32 %v888_v23, 0.0  ;;  %v1169_v19 = vpop.f32.mrf.mxu0  ;;  %v1201_v26 = vpop.f32.mrf.mxu1 }
  0xff   :  { %v1863_v15 = vadd.f32 %v1499_v55, %v733_v62  ;;  %v1866_v16 = vadd.f32 %v1499_v55, %v765_v63  ;;  %v925_v27 = vmax.f32 %v861_v11, 0.0  ;;  %v859_v53 = vadd.f32 %v1697_v29, %v435_v17  ;;  %v700_v17 = vld [vmem:[%s2027_s0 + $0x1d8] sm:$0xff] }
 0x100   :  { %v957_v28 = vmax.f32 %v893_v12, 0.0  ;;  %v891_v54 = vadd.f32 %v1700_v30, %v563_v13  ;;  %984 = vst [vmem:[#allocation2 + $0x48] sm:$0xff] %v920_v6  ;;  %1016 = vst [vmem:[#allocation2 + $0x148] sm:$0xff] %v952_v7  ;;  %v446_v44 = vadd.f32 %v1169_v19, %v1672_v2  ;;  %v574_v45 = vadd.f32 %v1201_v26, %v1672_v2  ;;  %v437_v46 = vpop.f32.mrf.mxu0  ;;  %v565_v56 = vpop.f32.mrf.mxu1  ;;  %v668_v12 = vld [vmem:[%s2027_s0 + $0xd8] sm:$0xff] }
 0x101   :  { %v738_v29 = vmul.f32 %v1463_v41, %v667_v14  ;;  %v770_v30 = vmul.f32 %v1463_v41, %v699_v18  ;;  %989 = vst [vmem:[#allocation2 + $0x70] sm:$0xff] %v925_v27  ;;  %v923_v57 = vmax.f32 %v859_v53, 0.0  ;;  %v438_v48 = vadd.f32 %v1672_v2, %v437_v46  ;;  %v698_v53 = vld [vmem:[%s2027_s0 + $0x1c8] sm:$0xff] }
 0x102   :  { %1021 = vst [vmem:[#allocation2 + $0x170] sm:$0xff] %v957_v28  ;;  %v955_v47 = vmax.f32 %v891_v54, 0.0  ;;  %v566_v34 = vadd.f32 %v1672_v2, %v565_v56  ;;  %v862_v49 = vadd.f32 %v1703_v33, %v446_v44  ;;  %v894_v35 = vadd.f32 %v1706_v36, %v574_v45  ;;  %v1172_v9 = vpop.f32.mrf.mxu0  ;;  %v1204_v50 = vpop.f32.mrf.mxu1  ;;  %v666_v28 = vld [vmem:[%s2027_s0 + $0xc8] sm:$0xff] }
 0x103   :  { %v736_v10 = vmul.f32 %v1463_v41, %v665_v31  ;;  %v768_v62 = vmul.f32 %v1463_v41, %v697_v32  ;;  %987 = vst [vmem:[#allocation2 + $0x60] sm:$0xff] %v923_v57  ;;  %v860_v63 = vadd.f32 %v1709_v37, %v438_v48  ;;  %v459_v39 = vadd.f32 %v1172_v9, %v1672_v2 }
 0x104   :  { %1019 = vst [vmem:[#allocation2 + $0x160] sm:$0xff] %v955_v47  ;;  %v892_v38 = vadd.f32 %v1712_v43, %v566_v34  ;;  %v587_v59 = vadd.f32 %v1204_v50, %v1672_v2  ;;  %v926_v60 = vmax.f32 %v862_v49, 0.0  ;;  %v958_v33 = vmax.f32 %v894_v35, 0.0  ;;  %v450_v22 = vpop.f32.mrf.mxu0  ;;  %v578_v36 = vpop.f32.mrf.mxu1 }
 0x105   :  { %v1891_v23 = vadd.f32 %v1499_v55, %v738_v29  ;;  %v1894_v0 = vadd.f32 %v1499_v55, %v770_v30  ;;  %v924_v8 = vmax.f32 %v860_v63, 0.0  ;;  %v865_v37 = vadd.f32 %v1725_v52, %v459_v39 }
 0x106   :  { %v956_v11 = vmax.f32 %v892_v38, 0.0  ;;  %v897_v43 = vadd.f32 %v1728_v4, %v587_v59  ;;  %990 = vst [vmem:[#allocation2 + $0x78] sm:$0xff] %v926_v60  ;;  %1022 = vst [vmem:[#allocation2 + $0x178] sm:$0xff] %v958_v33  ;;  %v451_v13 = vadd.f32 %v1672_v2, %v450_v22  ;;  %v579_v14 = vadd.f32 %v1672_v2, %v578_v36  ;;  %v1173_v18 = vpop.f32.mrf.mxu0  ;;  %v1205_v6 = vpop.f32.mrf.mxu1  ;;  %v671_v33 = vld [vmem:[%s2027_s0 + $0xf0] sm:$0xff] }
 0x107   :  { %v1907_v52 = vadd.f32 %v1499_v55, %v736_v10  ;;  %v1910_v4 = vadd.f32 %v1499_v55, %v768_v62  ;;  %988 = vst [vmem:[#allocation2 + $0x68] sm:$0xff] %v924_v8  ;;  %v929_v7 = vmax.f32 %v865_v37, 0.0  ;;  %v462_v26 = vadd.f32 %v1173_v18, %v1672_v2  ;;  %v703_v22 = vld [vmem:[%s2027_s0 + $0x1f0] sm:$0xff]  ;;  %v701_v18 = vld [vmem:[%s2027_s0 + $0x1e0] sm:$0xff] }
 0x108   :  { %1020 = vst [vmem:[#allocation2 + $0x168] sm:$0xff] %v956_v11  ;;  %v961_v19 = vmax.f32 %v897_v43, 0.0  ;;  %v590_v27 = vadd.f32 %v1205_v6, %v1672_v2  ;;  %v863_v54 = vadd.f32 %v1731_v5, %v451_v13  ;;  %v895_v31 = vadd.f32 %v1734_v58, %v579_v14  ;;  %v453_v32 = vpop.f32.mrf.mxu0  ;;  %v581_v44 = vpop.f32.mrf.mxu1 }
 0x109   :  { %v739_v45 = vmul.f32 %v1463_v41, %v668_v12  ;;  %v771_v46 = vmul.f32 %v1463_v41, %v700_v17  ;;  %993 = vst [vmem:[#allocation2 + $0x90] sm:$0xff] %v929_v7  ;;  %v866_v56 = vadd.f32 %v1759_v51, %v462_v26  ;;  %v454_v30 = vadd.f32 %v1672_v2, %v453_v32 }
 0x10a   :  { %1025 = vst [vmem:[#allocation2 + $0x190] sm:$0xff] %v961_v19  ;;  %v898_v29 = vadd.f32 %v1762_v61, %v590_v27  ;;  %v582_v57 = vadd.f32 %v1672_v2, %v581_v44  ;;  %v927_v47 = vmax.f32 %v863_v54, 0.0  ;;  %v959_v5 = vmax.f32 %v895_v31, 0.0  ;;  %v1176_v48 = vpop.f32.mrf.mxu0  ;;  %v1208_v58 = vpop.f32.mrf.mxu1 }
 0x10b   :  { %v737_v34 = vmul.f32 %v1463_v41, %v666_v28  ;;  %v769_v49 = vmul.f32 %v1463_v41, %v698_v53  ;;  %v930_v35 = vmax.f32 %v866_v56, 0.0  ;;  %v864_v50 = vadd.f32 %v1775_v24, %v454_v30 }
 0x10c   :  { %v962_v9 = vmax.f32 %v898_v29, 0.0  ;;  %v896_v51 = vadd.f32 %v1778_v25, %v582_v57  ;;  %991 = vst [vmem:[#allocation2 + $0x80] sm:$0xff] %v927_v47  ;;  %1023 = vst [vmem:[#allocation2 + $0x180] sm:$0xff] %v959_v5  ;;  %v475_v61 = vadd.f32 %v1176_v48, %v1672_v2  ;;  %v603_v10 = vadd.f32 %v1208_v58, %v1672_v2  ;;  %v466_v62 = vpop.f32.mrf.mxu0  ;;  %v594_v63 = vpop.f32.mrf.mxu1 }
 0x10d   :  { %v1935_v38 = vadd.f32 %v1499_v55, %v739_v45  ;;  %v1938_v39 = vadd.f32 %v1499_v55, %v771_v46  ;;  %994 = vst [vmem:[#allocation2 + $0x98] sm:$0xff] %v930_v35  ;;  %v928_v59 = vmax.f32 %v864_v50, 0.0  ;;  %v467_v25 = vadd.f32 %v1672_v2, %v466_v62 }
 0x10e   :  { %1026 = vst [vmem:[#allocation2 + $0x198] sm:$0xff] %v962_v9  ;;  %v960_v24 = vmax.f32 %v896_v51, 0.0  ;;  %v595_v60 = vadd.f32 %v1672_v2, %v594_v63  ;;  %v869_v36 = vadd.f32 %v1803_v1, %v475_v61  ;;  %v901_v8 = vadd.f32 %v1806_v3, %v603_v10  ;;  %v1177_v11 = vpop.f32.mrf.mxu0  ;;  %v1209_v37 = vpop.f32.mrf.mxu1  ;;  %v669_v3 = vld [vmem:[%s2027_s0 + $0xe0] sm:$0xff] }
 0x10f   :  { %v1951_v43 = vadd.f32 %v1499_v55, %v737_v34  ;;  %v1954_v12 = vadd.f32 %v1499_v55, %v769_v49  ;;  %992 = vst [vmem:[#allocation2 + $0x88] sm:$0xff] %v928_v59  ;;  %v867_v17 = vadd.f32 %v1819_v20, %v467_v25  ;;  %v478_v14 = vadd.f32 %v1177_v11, %v1672_v2 }
 0x110   :  { %1024 = vst [vmem:[#allocation2 + $0x188] sm:$0xff] %v960_v24  ;;  %v899_v13 = vadd.f32 %v1822_v21, %v595_v60  ;;  %v606_v1 = vadd.f32 %v1209_v37, %v1672_v2  ;;  %v933_v6 = vmax.f32 %v869_v36, 0.0  ;;  %v965_v7 = vmax.f32 %v901_v8, 0.0  ;;  %v469_v19 = vpop.f32.mrf.mxu0  ;;  %v597_v26 = vpop.f32.mrf.mxu1  ;;  %v670_v60 = vld [vmem:[%s2027_s0 + $0xe8] sm:$0xff] }
 0x111   :  { %v742_v20 = vmul.f32 %v1463_v41, %v671_v33  ;;  %v774_v21 = vmul.f32 %v1463_v41, %v703_v22  ;;  %v931_v27 = vmax.f32 %v867_v17, 0.0  ;;  %v870_v53 = vadd.f32 %v1847_v40, %v478_v14  ;;  %v702_v33 = vld [vmem:[%s2027_s0 + $0x1e8] sm:$0xff] }
 0x112   :  { %v963_v28 = vmax.f32 %v899_v13, 0.0  ;;  %v902_v54 = vadd.f32 %v1850_v42, %v606_v1  ;;  %997 = vst [vmem:[#allocation2 + $0xb0] sm:$0xff] %v933_v6  ;;  %1029 = vst [vmem:[#allocation2 + $0x1b0] sm:$0xff] %v965_v7  ;;  %v470_v31 = vadd.f32 %v1672_v2, %v469_v19  ;;  %v598_v32 = vadd.f32 %v1672_v2, %v597_v26  ;;  %v1180_v44 = vpop.f32.mrf.mxu0  ;;  %v1212_v45 = vpop.f32.mrf.mxu1 }
 0x113   :  { %v740_v46 = vmul.f32 %v1463_v41, %v669_v3  ;;  %v772_v56 = vmul.f32 %v1463_v41, %v701_v18  ;;  %995 = vst [vmem:[#allocation2 + $0xa0] sm:$0xff] %v931_v27  ;;  %v934_v29 = vmax.f32 %v870_v53, 0.0  ;;  %v491_v40 = vadd.f32 %v1180_v44, %v1672_v2 }
 0x114   :  { %1027 = vst [vmem:[#allocation2 + $0x1a0] sm:$0xff] %v963_v28  ;;  %v966_v30 = vmax.f32 %v902_v54, 0.0  ;;  %v619_v42 = vadd.f32 %v1212_v45, %v1672_v2  ;;  %v868_v57 = vadd.f32 %v1863_v15, %v470_v31  ;;  %v900_v47 = vadd.f32 %v1866_v16, %v598_v32  ;;  %v482_v5 = vpop.f32.mrf.mxu0  ;;  %v610_v48 = vpop.f32.mrf.mxu1  ;;  %v672_v15 = vld [vmem:[%s2027_s0 + $0xf8] sm:$0xff] }
 0x115   :  { %v813_v58 = vadd.f32 %v1499_v55, %v742_v20  ;;  %v845_v34 = vadd.f32 %v1499_v55, %v774_v21  ;;  %998 = vst [vmem:[#allocation2 + $0xb8] sm:$0xff] %v934_v29  ;;  %v873_v49 = vadd.f32 %v1891_v23, %v491_v40  ;;  %v483_v9 = vadd.f32 %v1672_v2, %v482_v5  ;;  %v704_v16 = vld [vmem:[%s2027_s0 + $0x1f8] sm:$0xff]  ;;  %s1299_s0 = smov [#allocation2]  }
 0x116   :  { %1030 = vst [vmem:[#allocation2 + $0x1b8] sm:$0xff] %v966_v30  ;;  %v905_v35 = vadd.f32 %v1894_v0, %v619_v42  ;;  %v611_v50 = vadd.f32 %v1672_v2, %v610_v48  ;;  %v932_v51 = vmax.f32 %v868_v57, 0.0  ;;  %v964_v61 = vmax.f32 %v900_v47, 0.0  ;;  %v1181_v10 = vpop.f32.mrf.mxu0  ;;  %v1213_v62 = vpop.f32.mrf.mxu1  ;;  %s1044_s20 = sshll.u32 %s1299_s0, 4  ;;  %s1045_s20 = int_to_ptr.vmem [resolvable:$true] %s1044_s20 }
 0x117   :  { %v811_v23 = vadd.f32 %v1499_v55, %v740_v46  ;;  %v843_v0 = vadd.f32 %v1499_v55, %v772_v56  ;;  %v937_v63 = vmax.f32 %v873_v49, 0.0  ;;  %v871_v24 = vadd.f32 %v1907_v52, %v483_v9  ;;  %s1277_s21 = scalar_lea.vmem %s1045_s20, 8192  ;;  %p1282_p1 = scmp.lt.s32.totalorder %s1045_s20, %s1045_s20 }
 0x118   :  { %v969_v59 = vmax.f32 %v905_v35, 0.0  ;;  %v903_v25 = vadd.f32 %v1910_v4, %v611_v50  ;;  %996 = vst [vmem:[#allocation2 + $0xa8] sm:$0xff] %v932_v51  ;;  %1028 = vst [vmem:[#allocation2 + $0x1a8] sm:$0xff] %v964_v61  ;;  %v494_v22 = vadd.f32 %v1181_v10, %v1672_v2  ;;  %v622_v36 = vadd.f32 %v1213_v62, %v1672_v2  ;;  %v485_v8 = vpop.f32.mrf.mxu0  ;;  %v613_v11 = vpop.f32.mrf.mxu1  ;;  %p1278_p0 = scmp.ne.s32.totalorder %s1045_s20, %s1277_s21  ;;  %p1283_p2 = scmp.lt.s32.totalorder %s1277_s21, %s1277_s21 }
 0x119   :  { %v743_v52 = vmul.f32 %v1463_v41, %v672_v15  ;;  %v775_v4 = vmul.f32 %v1463_v41, %v704_v16  ;;  %1001 = vst [vmem:[#allocation2 + $0xd0] sm:$0xff] %v937_v63  ;;  %v935_v37 = vmax.f32 %v871_v24, 0.0  ;;  %v486_v13 = vadd.f32 %v1672_v2, %v485_v8 }
 0x11a   :  { %1033 = vst [vmem:[#allocation2 + $0x1d0] sm:$0xff] %v969_v59  ;;  %v967_v17 = vmax.f32 %v903_v25, 0.0  ;;  %v614_v14 = vadd.f32 %v1672_v2, %v613_v11  ;;  %v874_v1 = vadd.f32 %v1935_v38, %v494_v22  ;;  %v906_v3 = vadd.f32 %v1938_v39, %v622_v36  ;;  %v1184_v18 = vpop.f32.mrf.mxu0  ;;  %v1216_v6 = vpop.f32.mrf.mxu1  ;;  %p1284_p3 = por %p1283_p2, %p1282_p1 }
 0x11b   :  { %v741_v7 = vmul.f32 %v1463_v41, %v670_v60  ;;  %v773_v19 = vmul.f32 %v1463_v41, %v702_v33  ;;  %999 = vst [vmem:[#allocation2 + $0xc0] sm:$0xff] %v935_v37  ;;  %v872_v26 = vadd.f32 %v1951_v43, %v486_v13  ;;  %v507_v21 = vadd.f32 %v1184_v18, %v1672_v2 }
 0x11c   :  { %1031 = vst [vmem:[#allocation2 + $0x1c0] sm:$0xff] %v967_v17  ;;  %v904_v20 = vadd.f32 %v1954_v12, %v614_v14  ;;  %v635_v27 = vadd.f32 %v1216_v6, %v1672_v2  ;;  %v938_v28 = vmax.f32 %v874_v1, 0.0  ;;  %v970_v38 = vmax.f32 %v906_v3, 0.0  ;;  %v498_v53 = vpop.f32.mrf.mxu0  ;;  %v626_v39 = vpop.f32.mrf.mxu1  ;;  %p1285_p4 = pnand %p1284_p3, %p1278_p0 }
 0x11d   :  { %v814_v54 = vadd.f32 %v1499_v55, %v743_v52  ;;  %v846_v31 = vadd.f32 %v1499_v55, %v775_v4  ;;  %v936_v32 = vmax.f32 %v872_v26, 0.0  ;;  %v877_v44 = vadd.f32 %v813_v58, %v507_v21 }
 0x11e   :  { %v968_v41 = vmax.f32 %v904_v20, 0.0  ;;  %v909_v45 = vadd.f32 %v845_v34, %v635_v27  ;;  %1002 = vst [vmem:[#allocation2 + $0xd8] sm:$0xff] %v938_v28  ;;  %1034 = vst [vmem:[#allocation2 + $0x1d8] sm:$0xff] %v970_v38  ;;  %v499_v43 = vadd.f32 %v1672_v2, %v498_v53  ;;  %v627_v12 = vadd.f32 %v1672_v2, %v626_v39  ;;  %v1185_v46 = vpop.f32.mrf.mxu0  ;;  %v1217_v56 = vpop.f32.mrf.mxu1 }
 0x11f   :  { %v812_v29 = vadd.f32 %v1499_v55, %v741_v7  ;;  %v844_v30 = vadd.f32 %v1499_v55, %v773_v19  ;;  %1000 = vst [vmem:[#allocation2 + $0xc8] sm:$0xff] %v936_v32  ;;  %v941_v40 = vmax.f32 %v877_v44, 0.0  ;;  %v510_v57 = vadd.f32 %v1185_v46, %v1672_v2 }
 0x120   :  { %1032 = vst [vmem:[#allocation2 + $0x1c8] sm:$0xff] %v968_v41  ;;  %v973_v42 = vmax.f32 %v909_v45, 0.0  ;;  %v638_v47 = vadd.f32 %v1217_v56, %v1672_v2  ;;  %v875_v5 = vadd.f32 %v811_v23, %v499_v43  ;;  %v907_v48 = vadd.f32 %v843_v0, %v627_v12  ;;  %v501_v58 = vpop.f32.mrf.mxu0  ;;  %v629_v34 = vpop.f32.mrf.mxu1 }
 0x121   :  { %1005 = vst [vmem:[#allocation2 + $0xf0] sm:$0xff] %v941_v40  ;;  %v878_v49 = vadd.f32 %v814_v54, %v510_v57  ;;  %v502_v9 = vadd.f32 %v1672_v2, %v501_v58  ;;  %v630_v55 = vadd.f32 %v1672_v2, %v629_v34 }
 0x122   :  { %1037 = vst [vmem:[#allocation2 + $0x1f0] sm:$0xff] %v973_v42  ;;  %v910_v35 = vadd.f32 %v846_v31, %v638_v47  ;;  %v939_v50 = vmax.f32 %v875_v5, 0.0  ;;  %v971_v15 = vmax.f32 %v907_v48, 0.0 }
 0x123   :  { %v942_v16 = vmax.f32 %v878_v49, 0.0  ;;  %v876_v61 = vadd.f32 %v812_v29, %v502_v9  ;;  %v908_v10 = vadd.f32 %v844_v30, %v630_v55 }
 0x124   :  { %v974_v51 = vmax.f32 %v910_v35, 0.0  ;;  %1003 = vst [vmem:[#allocation2 + $0xe0] sm:$0xff] %v939_v50  ;;  %1035 = vst [vmem:[#allocation2 + $0x1e0] sm:$0xff] %v971_v15 }
 0x125   :  { %1006 = vst [vmem:[#allocation2 + $0xf8] sm:$0xff] %v942_v16  ;;  %v940_v62 = vmax.f32 %v876_v61, 0.0  ;;  %v972_v23 = vmax.f32 %v908_v10, 0.0 }
 0x126   :  { %1038 = vst [vmem:[#allocation2 + $0x1f8] sm:$0xff] %v974_v51 }
 0x127   :  { %1004 = vst [vmem:[#allocation2 + $0xe8] sm:$0xff] %v940_v62  ;;  %1036 = vst [vmem:[#allocation2 + $0x1e8] sm:$0xff] %v972_v23 }
 0x128   :  { %1288 = shalt.err (!%p1285_p4)
}
 0x129   :  { %s1300_s3 = smov 128   ;;  %s1301_s22 = smov 8  }
 0x12a   :  { %1050 = dma.vmem_to_hbm [thread:$0]  %s1045_s20, 8192, %s2033_s6, [#allocation3], %s1300_s3, %s1300_s3, %s1301_s22  }
 0x12b   :  { %1297 = dma.done.wait [#allocation3], 8192  }
 0x12c   :  { %1298 = vsyncadd [#allocation3], 4294959104 }
 0x12d   :  { %1054 = vsyncpa [#allocation3], 1 }

// kernel: my_bottleneck.6
= control target key start
LH: loop header
LB: loop body
LE: loop exit
PB: predicated region body
PF: predicated region fallthrough
CT: control target
= control target key end

     0   :  { %vm1015_vm0 = vcmask 1040384   ;;  %s2123_s3 = inlined_call_operand.vmem [shape: bf16[128,128], index: 3, kind: input, shape index: {}]   ;;  %s2124_s0 = inlined_call_operand.vmem [shape: bf16[512,128], index: 0, kind: input, shape index: {}]   ;;  %s2125_s1 = inlined_call_operand.vmem [shape: f32[1,128], index: 1, kind: input, shape index: {}]   ;;  %s2126_s2 = inlined_call_operand.vmem [shape: f32[1,128], index: 2, kind: input, shape index: {}]   ;;  %s2127_s4 = inlined_call_operand.vmem [shape: f32[1,128], index: 4, kind: input, shape index: {}]   ;;  %s2128_s5 = inlined_call_operand.vmem [shape: f32[512,128], index: 5, kind: output, shape index: {0}]   ;;  %s2129_s6 = inlined_call_operand.vmem [shape: f32[1,2,128], index: 6, kind: output, shape index: {1}]  }
   0x1   :  { %v1332_v0 = vld [vmem:[%s2123_s3 + $0x38] sm:$0xff]   ;;  %v1333_v1 = vld [vmem:[%s2123_s3 + $0x30] sm:$0xff]   ;;  %v1334_v2 = vld [vmem:[%s2123_s3 + $0x28] sm:$0xff]  }
   0x2   :  { %1236 = vmatprep.subr.bf16.mxu0 %v1332_v0  ;;  %1316 = vmatprep.subr.bf16.mxu1 %v1332_v0  ;;  %v1335_v3 = vld [vmem:[%s2123_s3 + $0x20] sm:$0xff]   ;;  %v1165_v8 = vld [vmem:[%s2124_s0 + $0x8] sm:$0xff]   ;;  %v1166_v9 = vld [vmem:[%s2124_s0 + $0x10] sm:$0xff]  }
   0x3   :  { %1237 = vmatpush3.bf16.msra.mxu0 %v1332_v0  ;;  %1324 = vmatpush3.bf16.msra.mxu1 %v1332_v0  ;;  %v1038_v4 = vld [vmem:[%s2124_s0] sm:$0xff]   ;;  %v1336_v13 = vld [vmem:[%s2123_s3 + $0x18] sm:$0xff]   ;;  %v1043_v14 = vunpack.c.l.bf16 %v1165_v8  ;;  %v1044_v15 = vunpack.c.h.bf16 %v1165_v8  ;;  %v1047_v16 = vunpack.c.l.bf16 %v1166_v9  ;;  %v1048_v19 = vunpack.c.h.bf16 %v1166_v9  ;;  %v1337_v22 = vld [vmem:[%s2123_s3 + $0x10] sm:$0xff]  }
   0x4   :  { %1238 = vmatprep.subr.bf16.mxu0 %v1333_v1  ;;  %1317 = vmatprep.subr.bf16.mxu1 %v1333_v1  ;;  %v1393_v5 = vld [vmem:[%s2125_s1] ss:$0 sm:$0xff]  ;;  %v1039_v6 = vunpack.c.l.bf16 %v1038_v4  ;;  %v1040_v7 = vunpack.c.h.bf16 %v1038_v4  ;;  %v1167_v26 = vld [vmem:[%s2124_s0 + $0x18] sm:$0xff]   ;;  %v1338_v31 = vld [vmem:[%s2123_s3 + $0x8] sm:$0xff]  }
   0x5   :  { %v1404_v10 = vld [vmem:[%s2126_s2] ss:$0 sm:$0xff]  ;;  %v160_v23 = vmul.f32 %v1043_v14, %v1393_v5  ;;  %v161_v24 = vmul.f32 %v1044_v15, %v1393_v5  ;;  %v162_v25 = vmul.f32 %v1047_v16, %v1393_v5  ;;  %v163_v28 = vmul.f32 %v1048_v19, %v1393_v5  ;;  %v1169_v38 = vld [vmem:[%s2124_s0 + $0x28] sm:$0xff]   ;;  %v1170_v41 = vld [vmem:[%s2124_s0 + $0x30] sm:$0xff]  }
   0x6   :  { %v158_v11 = vmul.f32 %v1039_v6, %v1393_v5  ;;  %v159_v12 = vmul.f32 %v1040_v7, %v1393_v5  ;;  %v1168_v29 = vld [vmem:[%s2124_s0 + $0x20] sm:$0xff]   ;;  %v1051_v30 = vunpack.c.l.bf16 %v1167_v26  ;;  %v1052_v35 = vunpack.c.h.bf16 %v1167_v26  ;;  %v1171_v42 = vld [vmem:[%s2124_s0 + $0x38] sm:$0xff]   ;;  %v1173_v63 = vld [vmem:[%s2124_s0 + $0x48] sm:$0xff]  }
   0x7   :  { %1239 = vmatpush3.bf16.msra.mxu0 %v1333_v1  ;;  %1325 = vmatpush3.bf16.msra.mxu1 %v1333_v1  ;;  %v231_v32 = vadd.f32 %v1404_v10, %v160_v23  ;;  %v232_v33 = vadd.f32 %v1404_v10, %v161_v24  ;;  %v233_v34 = vadd.f32 %v1404_v10, %v162_v25  ;;  %v1055_v37 = vunpack.c.l.bf16 %v1168_v29  ;;  %v1339_v43 = vld [vmem:[%s2123_s3] sm:$0xff]   ;;  %v1174_v4 = vld [vmem:[%s2124_s0 + $0x50] sm:$0xff]   ;;  %v1175_v23 = vld [vmem:[%s2124_s0 + $0x58] sm:$0xff]  }
   0x8   :  { %1240 = vmatprep.subr.bf16.mxu0 %v1334_v2  ;;  %1318 = vmatprep.subr.bf16.mxu1 %v1334_v2  ;;  %v229_v17 = vadd.f32 %v1404_v10, %v158_v11  ;;  %v230_v18 = vadd.f32 %v1404_v10, %v159_v12  ;;  %v234_v36 = vadd.f32 %v1404_v10, %v163_v28  ;;  %v1056_v40 = vunpack.c.h.bf16 %v1168_v29  ;;  %v1172_v48 = vld [vmem:[%s2124_s0 + $0x40] sm:$0xff]  }
   0x9   :  { %v164_v39 = vmul.f32 %v1051_v30, %v1393_v5  ;;  %v295_v44 = vmax.f32 %v231_v32, 0.0  ;;  %v296_v45 = vmax.f32 %v232_v33, 0.0  ;;  %v297_v46 = vmax.f32 %v233_v34, 0.0 }
   0xa   :  { %v293_v20 = vmax.f32 %v229_v17, 0.0  ;;  %v294_v21 = vmax.f32 %v230_v18, 0.0  ;;  %v165_v47 = vmul.f32 %v1052_v35, %v1393_v5  ;;  %v298_v49 = vmax.f32 %v234_v36, 0.0 }
   0xb   :  { %1241 = vmatpush3.bf16.msra.mxu0 %v1334_v2  ;;  %1326 = vmatpush3.bf16.msra.mxu1 %v1334_v2  ;;  %v166_v50 = vmul.f32 %v1055_v37, %v1393_v5  ;;  %v1059_v51 = vunpack.c.l.bf16 %v1169_v38  ;;  %v1060_v52 = vunpack.c.h.bf16 %v1169_v38  ;;  %v1063_v53 = vunpack.c.l.bf16 %v1170_v41 }
   0xc   :  { %1242 = vmatprep.subr.bf16.mxu0 %v1335_v3  ;;  %1319 = vmatprep.subr.bf16.mxu1 %v1335_v3  ;;  %v357_v27 = vpack.c.bf16 %v294_v21, %v293_v20  ;;  %v1064_v54 = vunpack.c.h.bf16 %v1170_v41  ;;  %v1067_v55 = vunpack.c.l.bf16 %v1171_v42  ;;  %v1068_v56 = vunpack.c.h.bf16 %v1171_v42 }
   0xd   :  { %v167_v57 = vmul.f32 %v1056_v40, %v1393_v5  ;;  %v1071_v58 = vunpack.c.l.bf16 %v1172_v48  ;;  %v1072_v59 = vunpack.c.h.bf16 %v1172_v48  ;;  %v358_v60 = vpack.c.bf16 %v296_v45, %v295_v44  ;;  %v1180_v44 = vld [vmem:[%s2124_s0 + $0x80] sm:$0xff]  }
   0xe   :  { %1252 = vmatprep.mubr.bf16.mxu0 %v357_v27  ;;  %v235_v61 = vadd.f32 %v1404_v10, %v164_v39  ;;  %v236_v62 = vadd.f32 %v1404_v10, %v165_v47  ;;  %v359_v0 = vpack.c.bf16 %v298_v49, %v297_v46  ;;  %v237_v1 = vadd.f32 %v1404_v10, %v166_v50 }
   0xf   :  { %1243 = vmatpush3.bf16.msra.mxu0 %v1335_v3  ;;  %1327 = vmatpush3.bf16.msra.mxu1 %v1335_v3  ;;  %v168_v2 = vmul.f32 %v1059_v51, %v1393_v5  ;;  %v169_v3 = vmul.f32 %v1060_v52, %v1393_v5  ;;  %v170_v6 = vmul.f32 %v1063_v53, %v1393_v5  ;;  %v1075_v14 = vunpack.c.l.bf16 %v1173_v63  ;;  %v1497_v52 = vld [vmem:[%s2124_s0 + $0x60] sm:$0xff]  }
  0x10   :  { %1244 = vmatprep.subr.bf16.mxu0 %v1336_v13  ;;  %1320 = vmatprep.subr.bf16.mxu1 %v1336_v13  ;;  %v171_v7 = vmul.f32 %v1064_v54, %v1393_v5  ;;  %v172_v8 = vmul.f32 %v1067_v55, %v1393_v5  ;;  %v173_v9 = vmul.f32 %v1068_v56, %v1393_v5  ;;  %v299_v15 = vmax.f32 %v235_v61, 0.0 }
  0x11   :  { %v238_v11 = vadd.f32 %v1404_v10, %v167_v57  ;;  %v174_v12 = vmul.f32 %v1071_v58, %v1393_v5  ;;  %v300_v16 = vmax.f32 %v236_v62, 0.0  ;;  %v1076_v17 = vunpack.c.h.bf16 %v1173_v63 }
  0x12   :  { %v1079_v18 = vunpack.c.l.bf16 %v1174_v4  ;;  %v301_v19 = vmax.f32 %v237_v1, 0.0  ;;  %v239_v20 = vadd.f32 %v1404_v10, %v168_v2  ;;  %v240_v21 = vadd.f32 %v1404_v10, %v169_v3 }
  0x13   :  { %1245 = vmatpush3.bf16.msra.mxu0 %v1336_v13  ;;  %1328 = vmatpush3.bf16.msra.mxu1 %v1336_v13  ;;  %v175_v13 = vmul.f32 %v1072_v59, %v1393_v5  ;;  %v241_v24 = vadd.f32 %v1404_v10, %v170_v6  ;;  %v242_v25 = vadd.f32 %v1404_v10, %v171_v7  ;;  %v302_v28 = vmax.f32 %v238_v11, 0.0  ;;  %v1181_v59 = vld [vmem:[%s2124_s0 + $0x88] sm:$0xff]   ;;  %v1183_v11 = vld [vmem:[%s2124_s0 + $0x98] sm:$0xff]  }
  0x14   :  { %1246 = vmatprep.subr.bf16.mxu0 %v1337_v22  ;;  %1321 = vmatprep.subr.bf16.mxu1 %v1337_v22  ;;  %v243_v26 = vadd.f32 %v1404_v10, %v172_v8  ;;  %v244_v27 = vadd.f32 %v1404_v10, %v173_v9  ;;  %v245_v29 = vadd.f32 %v1404_v10, %v174_v12  ;;  %v1083_v35 = vunpack.c.l.bf16 %v1175_v23 }
  0x15   :  { %v246_v30 = vadd.f32 %v1404_v10, %v175_v13  ;;  %v360_v32 = vpack.c.bf16 %v300_v16, %v299_v15  ;;  %v177_v33 = vmul.f32 %v1076_v17, %v1393_v5  ;;  %v178_v34 = vmul.f32 %v1079_v18, %v1393_v5 }
  0x16   :  { %v303_v36 = vmax.f32 %v239_v20, 0.0  ;;  %v304_v37 = vmax.f32 %v240_v21, 0.0  ;;  %v1084_v39 = vunpack.c.h.bf16 %v1175_v23  ;;  %v305_v40 = vmax.f32 %v241_v24, 0.0  ;;  %v1184_v24 = vld [vmem:[%s2124_s0 + $0xa0] sm:$0xff]  }
  0x17   :  { %1247 = vmatpush3.bf16.msra.mxu0 %v1337_v22  ;;  %1329 = vmatpush3.bf16.msra.mxu1 %v1337_v22  ;;  %v1080_v22 = vunpack.c.h.bf16 %v1174_v4  ;;  %v306_v41 = vmax.f32 %v242_v25, 0.0  ;;  %v307_v42 = vmax.f32 %v243_v26, 0.0  ;;  %v361_v45 = vpack.c.bf16 %v302_v28, %v301_v19 }
  0x18   :  { %1248 = vmatprep.subr.bf16.mxu0 %v1338_v31  ;;  %1322 = vmatprep.subr.bf16.mxu1 %v1338_v31  ;;  %v309_v46 = vmax.f32 %v245_v29, 0.0  ;;  %v310_v47 = vmax.f32 %v246_v30, 0.0  ;;  %v248_v49 = vadd.f32 %v1404_v10, %v177_v33  ;;  %v1491_v50 = vadd.f32 %v1404_v10, %v178_v34  ;;  %v1185_v33 = vld [vmem:[%s2124_s0 + $0xa8] sm:$0xff]  }
  0x19   :  { %v179_v38 = vmul.f32 %v1080_v22, %v1393_v5  ;;  %v180_v51 = vmul.f32 %v1083_v35, %v1393_v5  ;;  %v181_v54 = vmul.f32 %v1084_v39, %v1393_v5  ;;  %v1103_v55 = vunpack.c.l.bf16 %v1180_v44 }
  0x1a   :  { %v362_v56 = vpack.c.bf16 %v304_v37, %v303_v36  ;;  %v363_v57 = vpack.c.bf16 %v306_v41, %v305_v40  ;;  %v1087_v62 = vunpack.c.l.bf16 %v1497_v52  ;;  %v1104_v63 = vunpack.c.h.bf16 %v1180_v44 }
  0x1b   :  { %1249 = vmatpush3.bf16.msra.mxu0 %v1338_v31  ;;  %1330 = vmatpush3.bf16.msra.mxu1 %v1338_v31  ;;  %v176_v31 = vmul.f32 %v1075_v14, %v1393_v5  ;;  %v1500_v53 = vadd.f32 %v1404_v10, %v179_v38  ;;  %v312_v1 = vmax.f32 %v248_v49, 0.0  ;;  %v313_v2 = vmax.f32 %v1491_v50, 0.0 }
  0x1c   :  { %1250 = vmatprep.subr.bf16.mxu0 %v1339_v43  ;;  %1323 = vmatprep.subr.bf16.mxu1 %v1339_v43  ;;  %v1516_v3 = vadd.f32 %v1404_v10, %v180_v51  ;;  %v190_v4 = vmul.f32 %v1103_v55, %v1393_v5  ;;  %v1521_v7 = vadd.f32 %v1404_v10, %v181_v54  ;;  %v1107_v9 = vunpack.c.l.bf16 %v1181_v59 }
  0x1d   :  { %v247_v48 = vadd.f32 %v1404_v10, %v176_v31  ;;  %v314_v6 = vmax.f32 %v1500_v53, 0.0  ;;  %v191_v8 = vmul.f32 %v1104_v63, %v1393_v5  ;;  %v1088_v12 = vunpack.c.h.bf16 %v1497_v52 }
  0x1e   :  { %v261_v13 = vadd.f32 %v1404_v10, %v190_v4  ;;  %v1108_v14 = vunpack.c.h.bf16 %v1181_v59  ;;  %v1530_v16 = vmul.f32 %v1087_v62, %v1393_v5  ;;  %v192_v18 = vmul.f32 %v1107_v9, %v1393_v5 }
  0x1f   :  { %1251 = vmatpush3.bf16.msra.mxu0 %v1339_v43  ;;  %1331 = vmatpush3.bf16.msra.mxu1 %v1339_v43  ;;  %v308_v43 = vmax.f32 %v244_v27, 0.0  ;;  %v311_v61 = vmax.f32 %v247_v48, 0.0  ;;  %v262_v17 = vadd.f32 %v1404_v10, %v191_v8  ;;  %v1115_v23 = vunpack.c.l.bf16 %v1183_v11 }
  0x20   :  { %v325_v20 = vmax.f32 %v261_v13, 0.0  ;;  %v193_v21 = vmul.f32 %v1108_v14, %v1393_v5  ;;  %v263_v27 = vadd.f32 %v1404_v10, %v192_v18  ;;  %v1116_v31 = vunpack.c.h.bf16 %v1183_v11  ;;  %v1188_v18 = vld [vmem:[%s2124_s0 + $0xc0] sm:$0xff]  }
  0x21   :  { %v1503_v58 = vpack.c.bf16 %v308_v43, %v307_v42  ;;  %v1539_v25 = vpack.c.bf16 %v312_v1, %v311_v61  ;;  %v326_v26 = vmax.f32 %v262_v17, 0.0  ;;  %v1119_v37 = vunpack.c.l.bf16 %v1184_v24  ;;  %v1187_v1 = vld [vmem:[%s2124_s0 + $0xb8] sm:$0xff]  }
  0x22   :  { %1253 = vmatmul.mubr.bf16.vlgmr.msra.gmra.mxu0 %v358_v60  ;;  %v1508_v60 = vpack.c.bf16 %v310_v47, %v309_v46  ;;  %v264_v29 = vadd.f32 %v1404_v10, %v193_v21  ;;  %v327_v35 = vmax.f32 %v263_v27, 0.0  ;;  %v197_v40 = vmul.f32 %v1116_v31, %v1393_v5  ;;  %v1186_v46 = vld [vmem:[%s2124_s0 + $0xb0] sm:$0xff]   ;;  %v1177_v47 = vld [vmem:[%s2124_s0 + $0x68] sm:$0xff]  }
  0x23   :  { %1256 = vmatprep.mubr.bf16.mxu0 %v359_v0  ;;  %v1182_v0 = vld [vmem:[%s2124_s0 + $0x90] sm:$0xff]   ;;  %v373_v34 = vpack.c.bf16 %v326_v26, %v325_v20  ;;  %v1120_v43 = vunpack.c.h.bf16 %v1184_v24  ;;  %v198_v44 = vmul.f32 %v1119_v37, %v1393_v5  ;;  %v1124_v54 = vunpack.c.h.bf16 %v1185_v33 }
  0x24   :  { %v1111_v15 = vunpack.c.l.bf16 %v1182_v0  ;;  %v1112_v19 = vunpack.c.h.bf16 %v1182_v0  ;;  %v328_v38 = vmax.f32 %v264_v29, 0.0  ;;  %v268_v49 = vadd.f32 %v1404_v10, %v197_v40  ;;  %v1190_v40 = vld [vmem:[%s2124_s0 + $0xd0] sm:$0xff]  }
  0x25   :  { %1284 = vmatprep.mubr.bf16.mxu1 %v373_v34  ;;  %v201_v62 = vmul.f32 %v1124_v54, %v1393_v5  ;;  %v1127_v63 = vunpack.c.l.bf16 %v1186_v46  ;;  %v1128_v0 = vunpack.c.h.bf16 %v1186_v46  ;;  %v315_v4 = vmax.f32 %v1516_v3, 0.0 }
  0x26   :  { %v194_v22 = vmul.f32 %v1111_v15, %v1393_v5  ;;  %v195_v28 = vmul.f32 %v1112_v19, %v1393_v5  ;;  %v374_v48 = vpack.c.bf16 %v328_v38, %v327_v35  ;;  %v332_v61 = vmax.f32 %v268_v49, 0.0 }
  0x27   :  { %v1091_v8 = vunpack.c.l.bf16 %v1177_v47  ;;  %v316_v13 = vmax.f32 %v1521_v7, 0.0  ;;  %v1092_v14 = vunpack.c.h.bf16 %v1177_v47  ;;  %v202_v15 = vmul.f32 %v1127_v63, %v1393_v5 }
  0x28   :  { %v265_v30 = vadd.f32 %v1404_v10, %v194_v22  ;;  %v266_v36 = vadd.f32 %v1404_v10, %v195_v28  ;;  %1285 = vmatmul.mubr.bf16.vlgmr.msra.gmra.mxu1 %v374_v48  ;;  %v203_v17 = vmul.f32 %v1128_v0, %v1393_v5  ;;  %v183_v3 = vmul.f32 %v1088_v12, %v1393_v5 }
  0x29   :  { %v1131_v19 = vunpack.c.l.bf16 %v1187_v1  ;;  %v1132_v20 = vunpack.c.h.bf16 %v1187_v1  ;;  %v273_v24 = vadd.f32 %v1404_v10, %v202_v15  ;;  %v1135_v27 = vunpack.c.l.bf16 %v1188_v18  ;;  %v1191_v15 = vld [vmem:[%s2124_s0 + $0xd8] sm:$0xff]  }
  0x2a   :  { %1257 = vmatmul.mubr.bf16.gmra.mxu0 %v360_v32  ;;  %v196_v32 = vmul.f32 %v1115_v23, %v1393_v5  ;;  %v329_v39 = vmax.f32 %v265_v30, 0.0  ;;  %v330_v42 = vmax.f32 %v266_v36, 0.0  ;;  %v272_v23 = vadd.f32 %v1404_v10, %v201_v62 }
  0x2b   :  { %1260 = vmatprep.mubr.bf16.mxu0 %v361_v45  ;;  %v1123_v45 = vunpack.c.l.bf16 %v1185_v33  ;;  %v1136_v52 = vunpack.c.h.bf16 %v1188_v18  ;;  %v367_v12 = vpack.c.bf16 %v314_v6, %v313_v2  ;;  %v253_v28 = vadd.f32 %v1404_v10, %v1530_v16  ;;  %v1179_v33 = vld [vmem:[%s2124_s0 + $0x78] sm:$0xff]   ;;  %v1189_v16 = vld [vmem:[%s2124_s0 + $0xc8] sm:$0xff]  }
  0x2c   :  { %v267_v41 = vadd.f32 %v1404_v10, %v196_v32  ;;  %v375_v55 = vpack.c.bf16 %v330_v42, %v329_v39  ;;  %v254_v31 = vadd.f32 %v1404_v10, %v183_v3  ;;  %v184_v32 = vmul.f32 %v1091_v8, %v1393_v5 }
  0x2d   :  { %v200_v59 = vmul.f32 %v1123_v45, %v1393_v5  ;;  %v204_v34 = vmul.f32 %v1131_v19, %v1393_v5  ;;  %v205_v50 = vmul.f32 %v1132_v20, %v1393_v5  ;;  %v368_v35 = vpack.c.bf16 %v316_v13, %v315_v4 }
  0x2e   :  { %v331_v51 = vmax.f32 %v267_v41, 0.0  ;;  %1288 = vmatprep.mubr.bf16.mxu1 %v375_v55  ;;  %v185_v53 = vmul.f32 %v1092_v14, %v1393_v5  ;;  %v336_v6 = vmax.f32 %v272_v23, 0.0  ;;  %v337_v36 = vmax.f32 %v273_v24, 0.0 }
  0x2f   :  { %v271_v22 = vadd.f32 %v1404_v10, %v200_v59  ;;  %v206_v38 = vmul.f32 %v1135_v27, %v1393_v5  ;;  %v207_v39 = vmul.f32 %v1136_v52, %v1393_v5  ;;  %v317_v41 = vmax.f32 %v253_v28, 0.0 }
  0x30   :  { %v376_v21 = vpack.c.bf16 %v332_v61, %v331_v51  ;;  %v318_v45 = vmax.f32 %v254_v31, 0.0  ;;  %v275_v46 = vadd.f32 %v1404_v10, %v204_v34  ;;  %v276_v47 = vadd.f32 %v1404_v10, %v205_v50 }
  0x31   :  { %v335_v2 = vmax.f32 %v271_v22, 0.0  ;;  %v1139_v48 = vunpack.c.l.bf16 %v1189_v16  ;;  %v1140_v51 = vunpack.c.h.bf16 %v1189_v16  ;;  %v1143_v54 = vunpack.c.l.bf16 %v1190_v40 }
  0x32   :  { %1261 = vmatmul.mubr.bf16.gmra.mxu0 %v362_v56  ;;  %v199_v56 = vmul.f32 %v1120_v43, %v1393_v5  ;;  %1289 = vmatmul.mubr.bf16.gmra.mxu1 %v376_v21  ;;  %v1144_v55 = vunpack.c.h.bf16 %v1190_v40  ;;  %v278_v59 = vadd.f32 %v1404_v10, %v207_v39  ;;  %v256_v61 = vadd.f32 %v1404_v10, %v185_v53  ;;  %v1192_v21 = vld [vmem:[%s2124_s0 + $0xe0] sm:$0xff]  }
  0x33   :  { %1264 = vmatprep.mubr.bf16.mxu0 %v363_v57  ;;  %v269_v57 = vadd.f32 %v1404_v10, %v198_v44  ;;  %v1099_v44 = vunpack.c.l.bf16 %v1179_v33  ;;  %v378_v49 = vpack.c.bf16 %v336_v6, %v335_v2  ;;  %v1100_v0 = vunpack.c.h.bf16 %v1179_v33 }
  0x34   :  { %v270_v9 = vadd.f32 %v1404_v10, %v199_v56  ;;  %v255_v56 = vadd.f32 %v1404_v10, %v184_v32  ;;  %v369_v1 = vpack.c.bf16 %v318_v45, %v317_v41  ;;  %v339_v4 = vmax.f32 %v275_v46, 0.0  ;;  %v1194_v41 = vld [vmem:[%s2124_s0 + $0xf0] sm:$0xff]  }
  0x35   :  { %v333_v11 = vmax.f32 %v269_v57, 0.0  ;;  %v277_v57 = vadd.f32 %v1404_v10, %v206_v38  ;;  %v340_v8 = vmax.f32 %v276_v47, 0.0  ;;  %v210_v13 = vmul.f32 %v1143_v54, %v1393_v5 }
  0x36   :  { %v334_v7 = vmax.f32 %v270_v9, 0.0  ;;  %v208_v9 = vmul.f32 %v1139_v48, %v1393_v5  ;;  %v211_v14 = vmul.f32 %v1144_v55, %v1393_v5  ;;  %v342_v3 = vmax.f32 %v278_v59, 0.0 }
  0x37   :  { %v341_v18 = vmax.f32 %v277_v57, 0.0  ;;  %v189_v20 = vmul.f32 %v1100_v0, %v1393_v5  ;;  %v380_v23 = vpack.c.bf16 %v340_v8, %v339_v4  ;;  %v281_v27 = vadd.f32 %v1404_v10, %v210_v13 }
  0x38   :  { %v377_v26 = vpack.c.bf16 %v334_v7, %v333_v11  ;;  %v209_v11 = vmul.f32 %v1140_v51, %v1393_v5  ;;  %v320_v7 = vmax.f32 %v256_v61, 0.0  ;;  %v279_v24 = vadd.f32 %v1404_v10, %v208_v9 }
  0x39   :  { %v282_v52 = vadd.f32 %v1404_v10, %v211_v14  ;;  %v381_v28 = vpack.c.bf16 %v342_v3, %v341_v18  ;;  %v260_v33 = vadd.f32 %v1404_v10, %v189_v20  ;;  %v345_v2 = vmax.f32 %v281_v27, 0.0 }
  0x3a   :  { %1265 = vmatmul.mubr.bf16.gmra.mxu0 %v1503_v58  ;;  %v1178_v58 = vld [vmem:[%s2124_s0 + $0x70] sm:$0xff]   ;;  %1292 = vmatprep.mubr.bf16.mxu1 %v377_v26  ;;  %v1147_v26 = vunpack.c.l.bf16 %v1191_v15  ;;  %v343_v50 = vmax.f32 %v279_v24, 0.0  ;;  %v1159_v51 = vunpack.c.l.bf16 %v1194_v41  ;;  %v1160_v54 = vunpack.c.h.bf16 %v1194_v41 }
  0x3b   :  { %1268 = vmatprep.mubr.bf16.mxu0 %v1508_v60  ;;  %v274_v60 = vadd.f32 %v1404_v10, %v203_v17  ;;  %v1095_v29 = vunpack.c.l.bf16 %v1178_v58  ;;  %v1096_v30 = vunpack.c.h.bf16 %v1178_v58  ;;  %1293 = vmatmul.mubr.bf16.gmra.mxu1 %v378_v49  ;;  %v188_v17 = vmul.f32 %v1099_v44, %v1393_v5 }
  0x3c   :  { %v319_v58 = vmax.f32 %v255_v56, 0.0  ;;  %v346_v6 = vmax.f32 %v282_v52, 0.0  ;;  %v324_v40 = vmax.f32 %v260_v33, 0.0  ;;  %v219_v0 = vmul.f32 %v1160_v54, %v1393_v5  ;;  %v1670_v52 = vld [vmem:[%s2127_s4] ss:$0 sm:$0xff] }
  0x3d   :  { %v338_v37 = vmax.f32 %v274_v60, 0.0  ;;  %v186_v42 = vmul.f32 %v1095_v29, %v1393_v5  ;;  %v187_v43 = vmul.f32 %v1096_v30, %v1393_v5  ;;  %v280_v60 = vadd.f32 %v1404_v10, %v209_v11 }
  0x3e   :  { %v1151_v29 = vunpack.c.l.bf16 %v1192_v21  ;;  %v1152_v30 = vunpack.c.h.bf16 %v1192_v21  ;;  %v370_v31 = vpack.c.bf16 %v320_v7, %v319_v58  ;;  %v259_v32 = vadd.f32 %v1404_v10, %v188_v17 }
  0x3f   :  { %v257_v62 = vadd.f32 %v1404_v10, %v186_v42  ;;  %v258_v63 = vadd.f32 %v1404_v10, %v187_v43  ;;  %v344_v53 = vmax.f32 %v280_v60, 0.0  ;;  %v383_v45 = vpack.c.bf16 %v346_v6, %v345_v2 }
  0x40   :  { %v215_v38 = vmul.f32 %v1152_v30, %v1393_v5  ;;  %v323_v39 = vmax.f32 %v259_v32, 0.0  ;;  %v290_v17 = vadd.f32 %v1404_v10, %v219_v0 }
  0x41   :  { %v321_v19 = vmax.f32 %v257_v62, 0.0  ;;  %v322_v22 = vmax.f32 %v258_v63, 0.0  ;;  %v382_v44 = vpack.c.bf16 %v344_v53, %v343_v50  ;;  %v218_v63 = vmul.f32 %v1159_v51, %v1393_v5 }
  0x42   :  { %1269 = vmatmul.mubr.bf16.gmra.mxu0 %v1539_v25  ;;  %v379_v25 = vpack.c.bf16 %v338_v37, %v337_v36  ;;  %v1193_v36 = vld [vmem:[%s2124_s0 + $0xe8] sm:$0xff]   ;;  %v214_v37 = vmul.f32 %v1151_v29, %v1393_v5  ;;  %v286_v49 = vadd.f32 %v1404_v10, %v215_v38  ;;  %v372_v55 = vpack.c.bf16 %v324_v40, %v323_v39 }
  0x43   :  { %1272 = vmatprep.mubr.bf16.mxu0 %v367_v12  ;;  %v1148_v12 = vunpack.c.h.bf16 %v1191_v15  ;;  %v371_v34 = vpack.c.bf16 %v322_v22, %v321_v19  ;;  %v1155_v43 = vunpack.c.l.bf16 %v1193_v36  ;;  %v1156_v47 = vunpack.c.h.bf16 %v1193_v36 }
  0x44   :  { %1296 = vmatprep.mubr.bf16.mxu1 %v379_v25  ;;  %v285_v48 = vadd.f32 %v1404_v10, %v214_v37  ;;  %v350_v62 = vmax.f32 %v286_v49, 0.0  ;;  %v289_v15 = vadd.f32 %v1404_v10, %v218_v63  ;;  %v354_v20 = vmax.f32 %v290_v17, 0.0 }
  0x45   :  { %1297 = vmatmul.mubr.bf16.gmra.mxu1 %v380_v23  ;;  %v213_v16 = vmul.f32 %v1148_v12, %v1393_v5  ;;  %v216_v56 = vmul.f32 %v1155_v43, %v1393_v5  ;;  %v217_v59 = vmul.f32 %v1156_v47, %v1393_v5 }
  0x46   :  { %1300 = vmatprep.mubr.bf16.mxu1 %v381_v28  ;;  %v349_v61 = vmax.f32 %v285_v48, 0.0  ;;  %v353_v19 = vmax.f32 %v289_v15, 0.0 }
  0x47   :  { %v284_v46 = vadd.f32 %v1404_v10, %v213_v16  ;;  %v287_v4 = vadd.f32 %v1404_v10, %v216_v56  ;;  %v288_v9 = vadd.f32 %v1404_v10, %v217_v59 }
  0x48   :  { %v385_v14 = vpack.c.bf16 %v350_v62, %v349_v61  ;;  %v387_v24 = vpack.c.bf16 %v354_v20, %v353_v19 }
  0x49   :  { %v348_v57 = vmax.f32 %v284_v46, 0.0  ;;  %v351_v18 = vmax.f32 %v287_v4, 0.0  ;;  %v352_v3 = vmax.f32 %v288_v9, 0.0 }
  0x4a   :  { %1273 = vmatmul.mubr.bf16.gmra.mxu0 %v368_v35  ;;  %v212_v35 = vmul.f32 %v1147_v26, %v1393_v5 }
  0x4b   :  { %1276 = vmatprep.mubr.bf16.mxu0 %v369_v1  ;;  %v1195_v1 = vld [vmem:[%s2124_s0 + $0xf8] sm:$0xff]   ;;  %v386_v21 = vpack.c.bf16 %v352_v3, %v351_v18 }
  0x4c   :  { %v283_v42 = vadd.f32 %v1404_v10, %v212_v35  ;;  %v1163_v11 = vunpack.c.l.bf16 %v1195_v1  ;;  %v1164_v13 = vunpack.c.h.bf16 %v1195_v1 }
  0x4d   :  { %1301 = vmatmul.mubr.bf16.gmra.mxu1 %v382_v44 }
  0x4e   :  { %v347_v25 = vmax.f32 %v283_v42, 0.0  ;;  %1304 = vmatprep.mubr.bf16.mxu1 %v383_v45  ;;  %v220_v58 = vmul.f32 %v1163_v11, %v1393_v5  ;;  %v221_v7 = vmul.f32 %v1164_v13, %v1393_v5 }
  0x50   :  { %v384_v8 = vpack.c.bf16 %v348_v57, %v347_v25  ;;  %v291_v22 = vadd.f32 %v1404_v10, %v220_v58  ;;  %v292_v23 = vadd.f32 %v1404_v10, %v221_v7 }
  0x52   :  { %1277 = vmatmul.mubr.bf16.gmra.mxu0 %v370_v31  ;;  %v355_v26 = vmax.f32 %v291_v22, 0.0  ;;  %v356_v60 = vmax.f32 %v292_v23, 0.0 }
  0x53   :  { %1280 = vmatprep.mubr.bf16.mxu0 %v371_v34 }
  0x54   :  { %v388_v27 = vpack.c.bf16 %v356_v60, %v355_v26 }
  0x55   :  { %1305 = vmatmul.mubr.bf16.gmra.mxu1 %v384_v8 }
  0x56   :  { %1308 = vmatprep.mubr.bf16.mxu1 %v385_v14 }
  0x5a   :  { %1281 = vmatmul.mubr.bf16.gmra.mxu0 %v372_v55 }
  0x5d   :  { %1309 = vmatmul.mubr.bf16.gmra.mxu1 %v386_v21 }
  0x5e   :  { %1312 = vmatprep.mubr.bf16.mxu1 %v387_v24 }
  0x65   :  { %1313 = vmatmul.mubr.bf16.gmra.mxu1 %v388_v27 }
  0xe2   :  { %v1254_v5 = vpop.f32.mrf.mxu0 }
  0xe3   :  { %v503_v12 = vadd.f32 %v1254_v5, %v1670_v52 }
  0xe4   :  { %v494_v28 = vpop.f32.mrf.mxu0 }
  0xe5   :  { %751 = vst [vmem:[%s2128_s5 + $0x10] sm:$0xff] %v503_v12  ;;  %v495_v10 = vadd.f32 %v1670_v52, %v494_v28  ;;  %v884_v6 = vmul.f32 %v503_v12, %v503_v12 }
  0xe6   :  { %v1255_v29 = vpop.f32.mrf.mxu0 }
  0xe7   :  { %749 = vst [vmem:[%s2128_s5] sm:$0xff] %v495_v10  ;;  %v506_v30 = vadd.f32 %v1255_v29, %v1670_v52  ;;  %v882_v34 = vmul.f32 %v495_v10, %v495_v10 }
  0xe8   :  { %v497_v31 = vpop.f32.mrf.mxu0  ;;  %v1286_v9 = vpop.f32.mrf.mxu1 }
  0xe9   :  { %752 = vst [vmem:[%s2128_s5 + $0x18] sm:$0xff] %v506_v30  ;;  %v498_v32 = vadd.f32 %v1670_v52, %v497_v31  ;;  %v885_v39 = vmul.f32 %v506_v30, %v506_v30  ;;  %v1718_v18 = vadd.f32 %v1286_v9, %v1670_v52 }
  0xea   :  { %v1258_v33 = vpop.f32.mrf.mxu0  ;;  %v622_v3 = vpop.f32.mrf.mxu1 }
  0xeb   :  { %750 = vst [vmem:[%s2128_s5 + $0x8] sm:$0xff] %v498_v32  ;;  %v813_v50 = vadd.f32 %v498_v32, %v495_v10  ;;  %v883_v35 = vmul.f32 %v498_v32, %v498_v32  ;;  %v519_v53 = vadd.f32 %v1258_v33, %v1670_v52  ;;  %783 = vst [vmem:[%s2128_s5 + $0x110] sm:$0xff] %v1718_v18 }
  0xec   :  { %v510_v2 = vpop.f32.mrf.mxu0  ;;  %v1729_v22 = vadd.f32 %v1670_v52, %v622_v3  ;;  %v1287_v23 = vpop.f32.mrf.mxu1 }
  0xed   :  { %v814_v16 = vadd.f32 %v813_v50, %v503_v12  ;;  %v946_v36 = vadd.f32 %v883_v35, %v882_v34  ;;  %755 = vst [vmem:[%s2128_s5 + $0x30] sm:$0xff] %v519_v53  ;;  %v511_v37 = vadd.f32 %v1670_v52, %v510_v2  ;;  %v888_v25 = vmul.f32 %v519_v53, %v519_v53 }
  0xee   :  { %v1259_v38 = vpop.f32.mrf.mxu0  ;;  %781 = vst [vmem:[%s2128_s5 + $0x100] sm:$0xff] %v1729_v22  ;;  %v1740_v12 = vadd.f32 %v1287_v23, %v1670_v52  ;;  %v625_v28 = vpop.f32.mrf.mxu1 }
  0xef   :  { %v947_v40 = vadd.f32 %v946_v36, %v884_v6  ;;  %753 = vst [vmem:[%s2128_s5 + $0x20] sm:$0xff] %v511_v37  ;;  %v815_v41 = vadd.f32 %v814_v16, %v506_v30  ;;  %v522_v42 = vadd.f32 %v1259_v38, %v1670_v52  ;;  %v886_v45 = vmul.f32 %v511_v37, %v511_v37 }
  0xf0   :  { %v513_v43 = vpop.f32.mrf.mxu0  ;;  %784 = vst [vmem:[%s2128_s5 + $0x118] sm:$0xff] %v1740_v12  ;;  %v1751_v33 = vadd.f32 %v1670_v52, %v625_v28 }
  0xf1   :  { %v816_v44 = vadd.f32 %v815_v41, %v511_v37  ;;  %v948_v46 = vadd.f32 %v947_v40, %v885_v39  ;;  %756 = vst [vmem:[%s2128_s5 + $0x38] sm:$0xff] %v522_v42  ;;  %v514_v47 = vadd.f32 %v1670_v52, %v513_v43  ;;  %v889_v63 = vmul.f32 %v522_v42, %v522_v42 }
  0xf2   :  { %v1262_v48 = vpop.f32.mrf.mxu0  ;;  %v1290_v34 = vpop.f32.mrf.mxu1  ;;  %782 = vst [vmem:[%s2128_s5 + $0x108] sm:$0xff] %v1751_v33 }
  0xf3   :  { %v949_v49 = vadd.f32 %v948_v46, %v886_v45  ;;  %754 = vst [vmem:[%s2128_s5 + $0x28] sm:$0xff] %v514_v47  ;;  %v817_v51 = vadd.f32 %v816_v44, %v514_v47  ;;  %v887_v54 = vmul.f32 %v514_v47, %v514_v47  ;;  %v535_v55 = vadd.f32 %v1262_v48, %v1670_v52 }
  0xf4   :  { %v526_v56 = vpop.f32.mrf.mxu0  ;;  %v1762_v16 = vadd.f32 %v1290_v34, %v1670_v52  ;;  %v638_v36 = vpop.f32.mrf.mxu1 }
  0xf5   :  { %v818_v57 = vadd.f32 %v817_v51, %v519_v53  ;;  %v950_v59 = vadd.f32 %v949_v49, %v887_v54  ;;  %759 = vst [vmem:[%s2128_s5 + $0x50] sm:$0xff] %v535_v55  ;;  %v527_v61 = vadd.f32 %v1670_v52, %v526_v56  ;;  %v892_v24 = vmul.f32 %v535_v55, %v535_v55 }
  0xf6   :  { %v1263_v62 = vpop.f32.mrf.mxu0  ;;  %787 = vst [vmem:[%s2128_s5 + $0x130] sm:$0xff] %v1762_v16  ;;  %v1291_v43 = vpop.f32.mrf.mxu1 }
  0xf7   :  { %v951_v0 = vadd.f32 %v950_v59, %v888_v25  ;;  %757 = vst [vmem:[%s2128_s5 + $0x40] sm:$0xff] %v527_v61  ;;  %v819_v1 = vadd.f32 %v818_v57, %v522_v42  ;;  %v538_v4 = vadd.f32 %v1263_v62, %v1670_v52  ;;  %v890_v13 = vmul.f32 %v527_v61, %v527_v61 }
  0xf8   :  { %v529_v8 = vpop.f32.mrf.mxu0  ;;  %v1773_v42 = vadd.f32 %v1670_v52, %v638_v36  ;;  %v1784_v49 = vadd.f32 %v1291_v43, %v1670_v52  ;;  %v641_v51 = vpop.f32.mrf.mxu1 }
  0xf9   :  { %v820_v11 = vadd.f32 %v819_v1, %v527_v61  ;;  %v952_v14 = vadd.f32 %v951_v0, %v889_v63  ;;  %760 = vst [vmem:[%s2128_s5 + $0x58] sm:$0xff] %v538_v4  ;;  %v530_v15 = vadd.f32 %v1670_v52, %v529_v8  ;;  %v893_v10 = vmul.f32 %v538_v4, %v538_v4 }
  0xfa   :  { %v1266_v17 = vpop.f32.mrf.mxu0  ;;  %785 = vst [vmem:[%s2128_s5 + $0x120] sm:$0xff] %v1773_v42  ;;  %788 = vst [vmem:[%s2128_s5 + $0x138] sm:$0xff] %v1784_v49  ;;  %v1795_v59 = vadd.f32 %v1670_v52, %v641_v51 }
  0xfb   :  { %v953_v58 = vadd.f32 %v952_v14, %v890_v13  ;;  %758 = vst [vmem:[%s2128_s5 + $0x48] sm:$0xff] %v530_v15  ;;  %v821_v7 = vadd.f32 %v820_v11, %v530_v15  ;;  %v891_v19 = vmul.f32 %v530_v15, %v530_v15  ;;  %v551_v20 = vadd.f32 %v1266_v17, %v1670_v52  ;;  %v1294_v61 = vpop.f32.mrf.mxu1 }
  0xfc   :  { %v542_v21 = vpop.f32.mrf.mxu0  ;;  %786 = vst [vmem:[%s2128_s5 + $0x128] sm:$0xff] %v1795_v59  ;;  %v1806_v8 = vadd.f32 %v1294_v61, %v1670_v52 }
  0xfd   :  { %v822_v26 = vadd.f32 %v821_v7, %v535_v55  ;;  %v954_v60 = vadd.f32 %v953_v58, %v891_v19  ;;  %763 = vst [vmem:[%s2128_s5 + $0x70] sm:$0xff] %v551_v20  ;;  %v543_v27 = vadd.f32 %v1670_v52, %v542_v21  ;;  %v896_v44 = vmul.f32 %v551_v20, %v551_v20  ;;  %v654_v9 = vpop.f32.mrf.mxu1 }
  0xfe   :  { %v1267_v5 = vpop.f32.mrf.mxu0  ;;  %791 = vst [vmem:[%s2128_s5 + $0x150] sm:$0xff] %v1806_v8  ;;  %v1817_v3 = vadd.f32 %v1670_v52, %v654_v9 }
  0xff   :  { %v955_v29 = vadd.f32 %v954_v60, %v892_v24  ;;  %761 = vst [vmem:[%s2128_s5 + $0x60] sm:$0xff] %v543_v27  ;;  %v823_v30 = vadd.f32 %v822_v26, %v538_v4  ;;  %v554_v31 = vadd.f32 %v1267_v5, %v1670_v52  ;;  %v894_v35 = vmul.f32 %v543_v27, %v543_v27  ;;  %v1295_v58 = vpop.f32.mrf.mxu1 }
 0x100   :  { %v545_v32 = vpop.f32.mrf.mxu0  ;;  %789 = vst [vmem:[%s2128_s5 + $0x140] sm:$0xff] %v1817_v3  ;;  %v1828_v24 = vadd.f32 %v1295_v58, %v1670_v52 }
 0x101   :  { %v824_v50 = vadd.f32 %v823_v30, %v543_v27  ;;  %v956_v53 = vadd.f32 %v955_v29, %v893_v10  ;;  %764 = vst [vmem:[%s2128_s5 + $0x78] sm:$0xff] %v554_v31  ;;  %v546_v2 = vadd.f32 %v1670_v52, %v545_v32  ;;  %v897_v54 = vmul.f32 %v554_v31, %v554_v31  ;;  %v657_v26 = vpop.f32.mrf.mxu1 }
 0x102   :  { %v1270_v6 = vpop.f32.mrf.mxu0  ;;  %792 = vst [vmem:[%s2128_s5 + $0x158] sm:$0xff] %v1828_v24  ;;  %v1839_v29 = vadd.f32 %v1670_v52, %v657_v26 }
 0x103   :  { %v957_v37 = vadd.f32 %v956_v53, %v894_v35  ;;  %762 = vst [vmem:[%s2128_s5 + $0x68] sm:$0xff] %v546_v2  ;;  %v825_v38 = vadd.f32 %v824_v50, %v546_v2  ;;  %v895_v39 = vmul.f32 %v546_v2, %v546_v2  ;;  %v567_v40 = vadd.f32 %v1270_v6, %v1670_v52 }
 0x104   :  { %v558_v41 = vpop.f32.mrf.mxu0  ;;  %790 = vst [vmem:[%s2128_s5 + $0x148] sm:$0xff] %v1839_v29 }
 0x105   :  { %v826_v45 = vadd.f32 %v825_v38, %v551_v20  ;;  %v958_v46 = vadd.f32 %v957_v37, %v895_v39  ;;  %767 = vst [vmem:[%s2128_s5 + $0x90] sm:$0xff] %v567_v40  ;;  %v559_v47 = vadd.f32 %v1670_v52, %v558_v41  ;;  %v900_v7 = vmul.f32 %v567_v40, %v567_v40  ;;  %v1298_v30 = vpop.f32.mrf.mxu1 }
 0x106   :  { %v1271_v48 = vpop.f32.mrf.mxu0  ;;  %v1850_v53 = vadd.f32 %v1298_v30, %v1670_v52 }
 0x107   :  { %v959_v55 = vadd.f32 %v958_v46, %v896_v44  ;;  %765 = vst [vmem:[%s2128_s5 + $0x80] sm:$0xff] %v559_v47  ;;  %v827_v56 = vadd.f32 %v826_v45, %v554_v31  ;;  %v570_v25 = vadd.f32 %v1271_v48, %v1670_v52  ;;  %v898_v63 = vmul.f32 %v559_v47, %v559_v47  ;;  %v670_v2 = vpop.f32.mrf.mxu1 }
 0x108   :  { %v561_v57 = vpop.f32.mrf.mxu0  ;;  %795 = vst [vmem:[%s2128_s5 + $0x170] sm:$0xff] %v1850_v53 }
 0x109   :  { %v828_v62 = vadd.f32 %v827_v56, %v559_v47  ;;  %v960_v0 = vadd.f32 %v959_v55, %v897_v54  ;;  %768 = vst [vmem:[%s2128_s5 + $0x98] sm:$0xff] %v570_v25  ;;  %v562_v1 = vadd.f32 %v1670_v52, %v561_v57  ;;  %v901_v60 = vmul.f32 %v570_v25, %v570_v25  ;;  %v1299_v41 = vpop.f32.mrf.mxu1 }
 0x10a   :  { %v1274_v4 = vpop.f32.mrf.mxu0  ;;  %v1872_v48 = vadd.f32 %v1299_v41, %v1670_v52 }
 0x10b   :  { %v961_v11 = vadd.f32 %v960_v0, %v898_v63  ;;  %766 = vst [vmem:[%s2128_s5 + $0x88] sm:$0xff] %v562_v1  ;;  %v829_v13 = vadd.f32 %v828_v62, %v562_v1  ;;  %v899_v14 = vmul.f32 %v562_v1, %v562_v1  ;;  %v583_v15 = vadd.f32 %v1274_v4, %v1670_v52  ;;  %v673_v51 = vpop.f32.mrf.mxu1 }
 0x10c   :  { %v574_v17 = vpop.f32.mrf.mxu0  ;;  %796 = vst [vmem:[%s2128_s5 + $0x178] sm:$0xff] %v1872_v48  ;;  %v1883_v61 = vadd.f32 %v1670_v52, %v673_v51 }
 0x10d   :  { %v830_v19 = vadd.f32 %v829_v13, %v567_v40  ;;  %v962_v20 = vadd.f32 %v961_v11, %v899_v14  ;;  %771 = vst [vmem:[%s2128_s5 + $0xb0] sm:$0xff] %v583_v15  ;;  %v575_v21 = vadd.f32 %v1670_v52, %v574_v17  ;;  %v1861_v40 = vadd.f32 %v1670_v52, %v670_v2  ;;  %v1302_v62 = vpop.f32.mrf.mxu1 }
 0x10e   :  { %v1275_v23 = vpop.f32.mrf.mxu0  ;;  %v904_v43 = vmul.f32 %v583_v15, %v583_v15  ;;  %794 = vst [vmem:[%s2128_s5 + $0x168] sm:$0xff] %v1883_v61  ;;  %v1894_v11 = vadd.f32 %v1302_v62, %v1670_v52 }
 0x10f   :  { %v963_v27 = vadd.f32 %v962_v20, %v900_v7  ;;  %769 = vst [vmem:[%s2128_s5 + $0xa0] sm:$0xff] %v575_v21  ;;  %v831_v5 = vadd.f32 %v830_v19, %v570_v25  ;;  %v586_v28 = vadd.f32 %v1275_v23, %v1670_v52  ;;  %v902_v32 = vmul.f32 %v575_v21, %v575_v21  ;;  %v686_v13 = vpop.f32.mrf.mxu1 }
 0x110   :  { %v577_v10 = vpop.f32.mrf.mxu0  ;;  %793 = vst [vmem:[%s2128_s5 + $0x160] sm:$0xff] %v1861_v40  ;;  %799 = vst [vmem:[%s2128_s5 + $0x190] sm:$0xff] %v1894_v11  ;;  %v1905_v19 = vadd.f32 %v1670_v52, %v686_v13 }
 0x111   :  { %v832_v31 = vadd.f32 %v831_v5, %v575_v21  ;;  %v964_v34 = vadd.f32 %v963_v27, %v901_v60  ;;  %772 = vst [vmem:[%s2128_s5 + $0xb8] sm:$0xff] %v586_v28  ;;  %v578_v50 = vadd.f32 %v1670_v52, %v577_v10  ;;  %v905_v54 = vmul.f32 %v586_v28, %v586_v28  ;;  %v1303_v20 = vpop.f32.mrf.mxu1 }
 0x112   :  { %v1278_v35 = vpop.f32.mrf.mxu0  ;;  %797 = vst [vmem:[%s2128_s5 + $0x180] sm:$0xff] %v1905_v19  ;;  %v1916_v5 = vadd.f32 %v1303_v20, %v1670_v52  ;;  %v916_v20 = vmul.f32 %v1718_v18, %v1718_v18 }
 0x113   :  { %v965_v6 = vadd.f32 %v964_v34, %v902_v32  ;;  %770 = vst [vmem:[%s2128_s5 + $0xa8] sm:$0xff] %v578_v50  ;;  %v833_v36 = vadd.f32 %v832_v31, %v578_v50  ;;  %v903_v37 = vmul.f32 %v578_v50, %v578_v50  ;;  %v599_v38 = vadd.f32 %v1278_v35, %v1670_v52 }
 0x114   :  { %v590_v39 = vpop.f32.mrf.mxu0  ;;  %800 = vst [vmem:[%s2128_s5 + $0x198] sm:$0xff] %v1916_v5 }
 0x115   :  { %v834_v44 = vadd.f32 %v833_v36, %v583_v15  ;;  %v966_v45 = vadd.f32 %v965_v6, %v903_v37  ;;  %775 = vst [vmem:[%s2128_s5 + $0xd0] sm:$0xff] %v599_v38  ;;  %v591_v46 = vadd.f32 %v1670_v52, %v590_v39  ;;  %v908_v21 = vmul.f32 %v599_v38, %v599_v38 }
 0x116   :  { %v1279_v47 = vpop.f32.mrf.mxu0 }
 0x117   :  { %v967_v55 = vadd.f32 %v966_v45, %v904_v43  ;;  %773 = vst [vmem:[%s2128_s5 + $0xc0] sm:$0xff] %v591_v46  ;;  %v835_v56 = vadd.f32 %v834_v44, %v586_v28  ;;  %v602_v25 = vadd.f32 %v1279_v47, %v1670_v52  ;;  %v906_v0 = vmul.f32 %v591_v46, %v591_v46  ;;  %v689_v28 = vpop.f32.mrf.mxu1 }
 0x118   :  { %v593_v57 = vpop.f32.mrf.mxu0  ;;  %v1927_v50 = vadd.f32 %v1670_v52, %v689_v28 }
 0x119   :  { %v836_v63 = vadd.f32 %v835_v56, %v591_v46  ;;  %v968_v1 = vadd.f32 %v967_v55, %v905_v54  ;;  %776 = vst [vmem:[%s2128_s5 + $0xd8] sm:$0xff] %v602_v25  ;;  %v594_v4 = vadd.f32 %v1670_v52, %v593_v57  ;;  %v909_v10 = vmul.f32 %v602_v25, %v602_v25  ;;  %v1306_v35 = vpop.f32.mrf.mxu1 }
 0x11a   :  { %v1282_v9 = vpop.f32.mrf.mxu0  ;;  %798 = vst [vmem:[%s2128_s5 + $0x188] sm:$0xff] %v1927_v50 }
 0x11b   :  { %v969_v14 = vadd.f32 %v968_v1, %v906_v0  ;;  %774 = vst [vmem:[%s2128_s5 + $0xc8] sm:$0xff] %v594_v4  ;;  %v837_v15 = vadd.f32 %v836_v63, %v594_v4  ;;  %v907_v17 = vmul.f32 %v594_v4, %v594_v4  ;;  %v615_v58 = vadd.f32 %v1282_v9, %v1670_v52  ;;  %v702_v39 = vpop.f32.mrf.mxu1 }
 0x11c   :  { %v606_v7 = vpop.f32.mrf.mxu0  ;;  %v1944_v45 = vadd.f32 %v1670_v52, %v702_v39  ;;  %v914_v1 = vmul.f32 %v1729_v22, %v1729_v22 }
 0x11d   :  { %v838_v23 = vadd.f32 %v837_v15, %v599_v38  ;;  %v970_v26 = vadd.f32 %v969_v14, %v907_v17  ;;  %779 = vst [vmem:[%s2128_s5 + $0xf0] sm:$0xff] %v615_v58  ;;  %v607_v60 = vadd.f32 %v1670_v52, %v606_v7  ;;  %v1938_v38 = vadd.f32 %v1306_v35, %v1670_v52  ;;  %v1307_v46 = vpop.f32.mrf.mxu1 }
 0x11e   :  { %v1283_v27 = vpop.f32.mrf.mxu0  ;;  %v912_v47 = vmul.f32 %v615_v58, %v615_v58  ;;  %801 = vst [vmem:[%s2128_s5 + $0x1a0] sm:$0xff] %v1944_v45  ;;  %v1955_v55 = vadd.f32 %v1307_v46, %v1670_v52  ;;  %v915_v17 = vmul.f32 %v1751_v33, %v1751_v33 }
 0x11f   :  { %v971_v30 = vadd.f32 %v970_v26, %v908_v21  ;;  %777 = vst [vmem:[%s2128_s5 + $0xe0] sm:$0xff] %v607_v60  ;;  %v839_v31 = vadd.f32 %v838_v23, %v602_v25  ;;  %v618_v32 = vadd.f32 %v1283_v27, %v1670_v52  ;;  %v910_v6 = vmul.f32 %v607_v60, %v607_v60  ;;  %v705_v56 = vpop.f32.mrf.mxu1 }
 0x120   :  { %v609_v34 = vpop.f32.mrf.mxu0  ;;  %803 = vst [vmem:[%s2128_s5 + $0x1b0] sm:$0xff] %v1938_v38  ;;  %804 = vst [vmem:[%s2128_s5 + $0x1b8] sm:$0xff] %v1955_v55  ;;  %v1962_v63 = vadd.f32 %v1670_v52, %v705_v56 }
 0x121   :  { %v840_v2 = vadd.f32 %v839_v31, %v607_v60  ;;  %v972_v36 = vadd.f32 %v971_v30, %v909_v10  ;;  %780 = vst [vmem:[%s2128_s5 + $0xf8] sm:$0xff] %v618_v32  ;;  %v610_v37 = vadd.f32 %v1670_v52, %v609_v34  ;;  %v913_v25 = vmul.f32 %v618_v32, %v618_v32  ;;  %v1310_v0 = vpop.f32.mrf.mxu1 }
 0x122   :  { %802 = vst [vmem:[%s2128_s5 + $0x1a8] sm:$0xff] %v1962_v63  ;;  %v1972_v13 = vadd.f32 %v1310_v0, %v1670_v52  ;;  %v917_v60 = vmul.f32 %v1740_v12, %v1740_v12  ;;  %v918_v31 = vmul.f32 %v1773_v42, %v1773_v42 }
 0x123   :  { %v973_v41 = vadd.f32 %v972_v36, %v910_v6  ;;  %778 = vst [vmem:[%s2128_s5 + $0xe8] sm:$0xff] %v610_v37  ;;  %v841_v43 = vadd.f32 %v840_v2, %v610_v37  ;;  %v911_v44 = vmul.f32 %v610_v37, %v610_v37  ;;  %v718_v14 = vpop.f32.mrf.mxu1  ;;  %v919_v6 = vmul.f32 %v1795_v59, %v1795_v59 }
 0x124   :  { %807 = vst [vmem:[%s2128_s5 + $0x1d0] sm:$0xff] %v1972_v13  ;;  %v920_v37 = vmul.f32 %v1762_v16, %v1762_v16 }
 0x125   :  { %v842_v51 = vadd.f32 %v841_v43, %v615_v58  ;;  %v974_v54 = vadd.f32 %v973_v41, %v911_v44  ;;  %v1311_v7 = vpop.f32.mrf.mxu1  ;;  %v921_v44 = vmul.f32 %v1784_v49, %v1784_v49 }
 0x127   :  { %v975_v57 = vadd.f32 %v974_v54, %v912_v47  ;;  %v843_v62 = vadd.f32 %v842_v51, %v618_v32  ;;  %v721_v26 = vpop.f32.mrf.mxu1  ;;  %v922_v54 = vmul.f32 %v1817_v3, %v1817_v3 }
 0x129   :  { %v844_v4 = vadd.f32 %v843_v62, %v1729_v22  ;;  %v976_v9 = vadd.f32 %v975_v57, %v913_v25  ;;  %v1982_v22 = vadd.f32 %v1670_v52, %v718_v14  ;;  %v1314_v10 = vpop.f32.mrf.mxu1  ;;  %v923_v57 = vmul.f32 %v1839_v29, %v1839_v29 }
 0x12a   :  { %v926_v14 = vmul.f32 %v1861_v40, %v1861_v40 }
 0x12b   :  { %v845_v15 = vadd.f32 %v844_v4, %v1751_v33  ;;  %v977_v58 = vadd.f32 %v976_v9, %v914_v1  ;;  %805 = vst [vmem:[%s2128_s5 + $0x1c0] sm:$0xff] %v1982_v22  ;;  %v1992_v33 = vadd.f32 %v1311_v7, %v1670_v52  ;;  %v734_v34 = vpop.f32.mrf.mxu1 }
 0x12d   :  { %v846_v21 = vadd.f32 %v845_v15, %v1718_v18  ;;  %v978_v23 = vadd.f32 %v977_v58, %v915_v17  ;;  %808 = vst [vmem:[%s2128_s5 + $0x1d8] sm:$0xff] %v1992_v33  ;;  %v2002_v18 = vadd.f32 %v1670_v52, %v721_v26  ;;  %v1315_v36 = vpop.f32.mrf.mxu1  ;;  %v927_v58 = vmul.f32 %v1883_v61, %v1883_v61 }
 0x12e   :  { %v930_v26 = vmul.f32 %v1905_v19, %v1905_v19 }
 0x12f   :  { %v979_v27 = vadd.f32 %v978_v23, %v916_v20  ;;  %v847_v28 = vadd.f32 %v846_v21, %v1740_v12  ;;  %806 = vst [vmem:[%s2128_s5 + $0x1c8] sm:$0xff] %v2002_v18  ;;  %v2012_v12 = vadd.f32 %v1314_v10, %v1670_v52  ;;  %v737_v43 = vpop.f32.mrf.mxu1 }
 0x131   :  { %v848_v30 = vadd.f32 %v847_v28, %v1773_v42  ;;  %v980_v32 = vadd.f32 %v979_v27, %v917_v60  ;;  %811 = vst [vmem:[%s2128_s5 + $0x1f0] sm:$0xff] %v2012_v12  ;;  %v2022_v42 = vadd.f32 %v1670_v52, %v734_v34  ;;  %v931_v28 = vmul.f32 %v1927_v50, %v1927_v50 }
 0x132   :  { %v934_v34 = vmul.f32 %v1944_v45, %v1944_v45 }
 0x133   :  { %v981_v35 = vadd.f32 %v980_v32, %v918_v31  ;;  %v849_v2 = vadd.f32 %v848_v30, %v1795_v59  ;;  %809 = vst [vmem:[%s2128_s5 + $0x1e0] sm:$0xff] %v2022_v42  ;;  %v2032_v59 = vadd.f32 %v1315_v36, %v1670_v52 }
 0x135   :  { %v850_v39 = vadd.f32 %v849_v2, %v1762_v16  ;;  %v982_v41 = vadd.f32 %v981_v35, %v919_v6  ;;  %812 = vst [vmem:[%s2128_s5 + $0x1f8] sm:$0xff] %v2032_v59  ;;  %v2042_v16 = vadd.f32 %v1670_v52, %v737_v43  ;;  %v924_v52 = vmul.f32 %v1806_v8, %v1806_v8 }
 0x136   :  { %v935_v6 = vmul.f32 %v1962_v63, %v1962_v63  ;;  %v938_v43 = vmul.f32 %v1982_v22, %v1982_v22 }
 0x137   :  { %v983_v46 = vadd.f32 %v982_v41, %v920_v37  ;;  %v851_v47 = vadd.f32 %v850_v39, %v1784_v49  ;;  %810 = vst [vmem:[%s2128_s5 + $0x1e8] sm:$0xff] %v2042_v16 }
 0x139   :  { %v852_v51 = vadd.f32 %v851_v47, %v1817_v3  ;;  %v984_v56 = vadd.f32 %v983_v46, %v921_v44  ;;  %v925_v3 = vmul.f32 %v1828_v24, %v1828_v24  ;;  %v939_v47 = vmul.f32 %v2002_v18, %v2002_v18 }
 0x13b   :  { %v985_v49 = vadd.f32 %v984_v56, %v922_v54  ;;  %v853_v25 = vadd.f32 %v852_v51, %v1839_v29 }
 0x13d   :  { %v854_v62 = vadd.f32 %v853_v25, %v1806_v8  ;;  %v986_v0 = vadd.f32 %v985_v49, %v923_v57  ;;  %v928_v8 = vmul.f32 %v1850_v53, %v1850_v53  ;;  %v942_v25 = vmul.f32 %v2022_v42, %v2022_v42 }
 0x13f   :  { %v987_v1 = vadd.f32 %v986_v0, %v924_v52  ;;  %v855_v4 = vadd.f32 %v854_v62, %v1828_v24  ;;  %v929_v24 = vmul.f32 %v1872_v48, %v1872_v48  ;;  %v943_v62 = vmul.f32 %v2042_v16, %v2042_v16 }
 0x141   :  { %v856_v9 = vadd.f32 %v855_v4, %v1861_v40  ;;  %v988_v15 = vadd.f32 %v987_v1, %v925_v3 }
 0x143   :  { %v989_v17 = vadd.f32 %v988_v15, %v926_v14  ;;  %v857_v29 = vadd.f32 %v856_v9, %v1883_v61 }
 0x145   :  { %v858_v7 = vadd.f32 %v857_v29, %v1850_v53  ;;  %v990_v20 = vadd.f32 %v989_v17, %v927_v58  ;;  %v932_v53 = vmul.f32 %v1894_v11, %v1894_v11 }
 0x147   :  { %v991_v21 = vadd.f32 %v990_v20, %v928_v8  ;;  %v859_v23 = vadd.f32 %v858_v7, %v1872_v48  ;;  %v933_v48 = vmul.f32 %v1916_v5, %v1916_v5 }
 0x149   :  { %v860_v40 = vadd.f32 %v859_v23, %v1905_v19  ;;  %v992_v60 = vadd.f32 %v991_v21, %v929_v24 }
 0x14b   :  { %v993_v27 = vadd.f32 %v992_v60, %v930_v26  ;;  %v861_v61 = vadd.f32 %v860_v40, %v1927_v50 }
 0x14d   :  { %v862_v10 = vadd.f32 %v861_v61, %v1894_v11  ;;  %v994_v30 = vadd.f32 %v993_v27, %v931_v28  ;;  %v936_v11 = vmul.f32 %v1938_v38, %v1938_v38 }
 0x14f   :  { %v995_v31 = vadd.f32 %v994_v30, %v932_v53  ;;  %v863_v32 = vadd.f32 %v862_v10, %v1916_v5  ;;  %v937_v5 = vmul.f32 %v1955_v55, %v1955_v55 }
 0x151   :  { %v864_v19 = vadd.f32 %v863_v32, %v1944_v45  ;;  %v996_v35 = vadd.f32 %v995_v31, %v933_v48 }
 0x153   :  { %v997_v2 = vadd.f32 %v996_v35, %v934_v34  ;;  %v865_v50 = vadd.f32 %v864_v19, %v1962_v63 }
 0x155   :  { %v866_v36 = vadd.f32 %v865_v50, %v1938_v38  ;;  %v998_v37 = vadd.f32 %v997_v2, %v935_v6  ;;  %v940_v38 = vmul.f32 %v1972_v13, %v1972_v13 }
 0x157   :  { %v999_v39 = vadd.f32 %v998_v37, %v936_v11  ;;  %v867_v41 = vadd.f32 %v866_v36, %v1955_v55  ;;  %v941_v55 = vmul.f32 %v1992_v33, %v1992_v33 }
 0x159   :  { %v868_v45 = vadd.f32 %v867_v41, %v1982_v22  ;;  %v1000_v44 = vadd.f32 %v999_v39, %v937_v5 }
 0x15b   :  { %v1001_v46 = vadd.f32 %v1000_v44, %v938_v43  ;;  %v869_v63 = vadd.f32 %v868_v45, %v2002_v18 }
 0x15d   :  { %v870_v51 = vadd.f32 %v869_v63, %v1972_v13  ;;  %v1002_v54 = vadd.f32 %v1001_v46, %v939_v47  ;;  %v944_v13 = vmul.f32 %v2012_v12, %v2012_v12 }
 0x15f   :  { %v1003_v56 = vadd.f32 %v1002_v54, %v940_v38  ;;  %v871_v49 = vadd.f32 %v870_v51, %v1992_v33  ;;  %v945_v33 = vmul.f32 %v2032_v59, %v2032_v59 }
 0x161   :  { %v872_v22 = vadd.f32 %v871_v49, %v2022_v42  ;;  %v1004_v57 = vadd.f32 %v1003_v56, %v941_v55 }
 0x163   :  { %v1005_v52 = vadd.f32 %v1004_v57, %v942_v25  ;;  %v873_v18 = vadd.f32 %v872_v22, %v2042_v16 }
 0x165   :  { %v874_v0 = vadd.f32 %v873_v18, %v2012_v12  ;;  %v1006_v3 = vadd.f32 %v1005_v52, %v943_v62 }
 0x167   :  { %v875_v1 = vadd.f32 %v874_v0, %v2032_v59  ;;  %v1007_v4 = vadd.f32 %v1006_v3, %v944_v13 }
 0x169   :  { %v876_v42 = vrot.slane %v875_v1, 4  ;;  %v1008_v9 = vadd.f32 %v1007_v4, %v945_v33 }
 0x16b   :  { %v877_v14 = vadd.f32 %v876_v42, %v875_v1  ;;  %v1009_v15 = vrot.slane %v1008_v9, 4 }
 0x16d   :  { %v878_v17 = vrot.slane %v877_v14, 2  ;;  %v1010_v29 = vadd.f32 %v1009_v15, %v1008_v9 }
 0x16f   :  { %v879_v58 = vadd.f32 %v878_v17, %v877_v14  ;;  %v1011_v16 = vrot.slane %v1010_v29, 2 }
 0x171   :  { %v880_v8 = vrot.slane %v879_v58, 1  ;;  %v1012_v7 = vadd.f32 %v1011_v16, %v1010_v29 }
 0x173   :  { %v1013_v20 = vrot.slane %v1012_v7, 1  ;;  %v881_v12 = vadd.f32 %v880_v8, %v879_v58 }
 0x175   :  { %v1014_v24 = vadd.f32 %v1013_v20, %v1012_v7 }
 0x177   :  { %v1016_v21 = vsel %vm1015_vm0, %v881_v12, %v1014_v24 }
 0x178   :  { %1017 = vst [vmem:[%s2129_s6] sm:$0x3] %v1016_v21 }

// kernel: my_bottleneck.4
= control target key start
LH: loop header
LB: loop body
LE: loop exit
PB: predicated region body
PF: predicated region fallthrough
CT: control target
= control target key end

     0   :  { %vm1155_vm0 = vcmask 1040384   ;;  %s2207_s1 = inlined_call_operand.vmem [shape: bf16[128,128], index: 1, kind: input, shape index: {}]   ;;  %s2208_s0 = inlined_call_operand.vmem [shape: bf16[512,128], index: 0, kind: input, shape index: {}]   ;;  %s2209_s2 = inlined_call_operand.vmem [shape: f32[1,128], index: 2, kind: input, shape index: {}]   ;;  %s2210_s3 = inlined_call_operand.vmem [shape: bf16[512,128], index: 3, kind: output, shape index: {0}]   ;;  %s2211_s4 = inlined_call_operand.vmem [shape: f32[1,2,128], index: 4, kind: output, shape index: {1}]  }
   0x1   :  { %v1662_v0 = vld [vmem:[%s2207_s1 + $0x38] sm:$0xff]   ;;  %v1663_v1 = vld [vmem:[%s2207_s1 + $0x30] sm:$0xff]   ;;  %v1664_v2 = vld [vmem:[%s2207_s1 + $0x28] sm:$0xff]  }
   0x2   :  { %1566 = vmatprep.subr.bf16.mxu0 %v1662_v0  ;;  %1646 = vmatprep.subr.bf16.mxu1 %v1662_v0  ;;  %v1665_v3 = vld [vmem:[%s2207_s1 + $0x20] sm:$0xff]   ;;  %v1666_v5 = vld [vmem:[%s2207_s1 + $0x18] sm:$0xff]   ;;  %v1667_v6 = vld [vmem:[%s2207_s1 + $0x10] sm:$0xff]  }
   0x3   :  { %1567 = vmatpush3.bf16.msra.mxu0 %v1662_v0  ;;  %1654 = vmatpush3.bf16.msra.mxu1 %v1662_v0  ;;  %v1670_v4 = vld [vmem:[%s2208_s0] sm:$0xff]   ;;  %v1668_v7 = vld [vmem:[%s2207_s1 + $0x8] sm:$0xff]   ;;  %v1672_v11 = vld [vmem:[%s2208_s0 + $0x10] sm:$0xff]  }
   0x4   :  { %1568 = vmatprep.subr.bf16.mxu0 %v1663_v1  ;;  %1647 = vmatprep.subr.bf16.mxu1 %v1663_v1  ;;  %v1669_v8 = vld [vmem:[%s2207_s1] sm:$0xff]   ;;  %v1671_v10 = vld [vmem:[%s2208_s0 + $0x8] sm:$0xff]   ;;  %v1688_v13 = vld [vmem:[%s2208_s0 + $0x90] sm:$0xff]  }
   0x5   :  { %1582 = vmatprep.mubr.bf16.mxu0 %v1670_v4  ;;  %v1686_v9 = vld [vmem:[%s2208_s0 + $0x80] sm:$0xff]   ;;  %v1687_v12 = vld [vmem:[%s2208_s0 + $0x88] sm:$0xff]   ;;  %v1673_v14 = vld [vmem:[%s2208_s0 + $0x18] sm:$0xff]  }
   0x6   :  { %1614 = vmatprep.mubr.bf16.mxu1 %v1686_v9  ;;  %v1674_v15 = vld [vmem:[%s2208_s0 + $0x20] sm:$0xff]   ;;  %v1689_v16 = vld [vmem:[%s2208_s0 + $0x98] sm:$0xff]   ;;  %v1675_v18 = vld [vmem:[%s2208_s0 + $0x28] sm:$0xff]  }
   0x7   :  { %1569 = vmatpush3.bf16.msra.mxu0 %v1663_v1  ;;  %1655 = vmatpush3.bf16.msra.mxu1 %v1663_v1  ;;  %v1690_v17 = vld [vmem:[%s2208_s0 + $0xa0] sm:$0xff]   ;;  %v1691_v19 = vld [vmem:[%s2208_s0 + $0xa8] sm:$0xff]   ;;  %v1676_v20 = vld [vmem:[%s2208_s0 + $0x30] sm:$0xff]  }
   0x8   :  { %1570 = vmatprep.subr.bf16.mxu0 %v1664_v2  ;;  %1648 = vmatprep.subr.bf16.mxu1 %v1664_v2  ;;  %v1692_v21 = vld [vmem:[%s2208_s0 + $0xb0] sm:$0xff]   ;;  %v1677_v22 = vld [vmem:[%s2208_s0 + $0x38] sm:$0xff]   ;;  %v1678_v24 = vld [vmem:[%s2208_s0 + $0x40] sm:$0xff]  }
   0x9   :  { %v1693_v23 = vld [vmem:[%s2208_s0 + $0xb8] sm:$0xff]   ;;  %v1694_v25 = vld [vmem:[%s2208_s0 + $0xc0] sm:$0xff]   ;;  %v1679_v26 = vld [vmem:[%s2208_s0 + $0x48] sm:$0xff]  }
   0xa   :  { %v1695_v27 = vld [vmem:[%s2208_s0 + $0xc8] sm:$0xff]   ;;  %v1680_v28 = vld [vmem:[%s2208_s0 + $0x50] sm:$0xff]   ;;  %v1681_v30 = vld [vmem:[%s2208_s0 + $0x58] sm:$0xff]  }
   0xb   :  { %1571 = vmatpush3.bf16.msra.mxu0 %v1664_v2  ;;  %1656 = vmatpush3.bf16.msra.mxu1 %v1664_v2  ;;  %v1696_v29 = vld [vmem:[%s2208_s0 + $0xd0] sm:$0xff]   ;;  %v1697_v31 = vld [vmem:[%s2208_s0 + $0xd8] sm:$0xff]   ;;  %v1682_v32 = vld [vmem:[%s2208_s0 + $0x60] sm:$0xff]  }
   0xc   :  { %1572 = vmatprep.subr.bf16.mxu0 %v1665_v3  ;;  %1649 = vmatprep.subr.bf16.mxu1 %v1665_v3  ;;  %v1698_v33 = vld [vmem:[%s2208_s0 + $0xe0] sm:$0xff]   ;;  %v1683_v34 = vld [vmem:[%s2208_s0 + $0x68] sm:$0xff]   ;;  %v1684_v36 = vld [vmem:[%s2208_s0 + $0x70] sm:$0xff]  }
   0xd   :  { %v1699_v35 = vld [vmem:[%s2208_s0 + $0xe8] sm:$0xff]   ;;  %v1700_v37 = vld [vmem:[%s2208_s0 + $0xf0] sm:$0xff]   ;;  %v1685_v38 = vld [vmem:[%s2208_s0 + $0x78] sm:$0xff]  }
   0xe   :  { %v1701_v39 = vld [vmem:[%s2208_s0 + $0xf8] sm:$0xff]   ;;  %v1850_v42 = vld [vmem:[%s2209_s2] ss:$0 sm:$0xff] }
   0xf   :  { %1573 = vmatpush3.bf16.msra.mxu0 %v1665_v3  ;;  %1657 = vmatpush3.bf16.msra.mxu1 %v1665_v3 }
  0x10   :  { %1574 = vmatprep.subr.bf16.mxu0 %v1666_v5  ;;  %1650 = vmatprep.subr.bf16.mxu1 %v1666_v5 }
  0x13   :  { %1575 = vmatpush3.bf16.msra.mxu0 %v1666_v5  ;;  %1658 = vmatpush3.bf16.msra.mxu1 %v1666_v5 }
  0x14   :  { %1576 = vmatprep.subr.bf16.mxu0 %v1667_v6  ;;  %1651 = vmatprep.subr.bf16.mxu1 %v1667_v6 }
  0x17   :  { %1577 = vmatpush3.bf16.msra.mxu0 %v1667_v6  ;;  %1659 = vmatpush3.bf16.msra.mxu1 %v1667_v6 }
  0x18   :  { %1578 = vmatprep.subr.bf16.mxu0 %v1668_v7  ;;  %1652 = vmatprep.subr.bf16.mxu1 %v1668_v7 }
  0x1b   :  { %1579 = vmatpush3.bf16.msra.mxu0 %v1668_v7  ;;  %1660 = vmatpush3.bf16.msra.mxu1 %v1668_v7 }
  0x1c   :  { %1580 = vmatprep.subr.bf16.mxu0 %v1669_v8  ;;  %1653 = vmatprep.subr.bf16.mxu1 %v1669_v8 }
  0x1f   :  { %1581 = vmatpush3.bf16.msra.mxu0 %v1669_v8  ;;  %1661 = vmatpush3.bf16.msra.mxu1 %v1669_v8 }
  0x22   :  { %1583 = vmatmul.mubr.bf16.vlgmr.msra.gmra.mxu0 %v1671_v10  ;;  %1615 = vmatmul.mubr.bf16.vlgmr.msra.gmra.mxu1 %v1687_v12 }
  0x23   :  { %1586 = vmatprep.mubr.bf16.mxu0 %v1672_v11  ;;  %1618 = vmatprep.mubr.bf16.mxu1 %v1688_v13 }
  0x2a   :  { %1587 = vmatmul.mubr.bf16.gmra.mxu0 %v1673_v14  ;;  %1619 = vmatmul.mubr.bf16.gmra.mxu1 %v1689_v16 }
  0x2b   :  { %1590 = vmatprep.mubr.bf16.mxu0 %v1674_v15  ;;  %1622 = vmatprep.mubr.bf16.mxu1 %v1690_v17 }
  0x32   :  { %1591 = vmatmul.mubr.bf16.gmra.mxu0 %v1675_v18  ;;  %1623 = vmatmul.mubr.bf16.gmra.mxu1 %v1691_v19 }
  0x33   :  { %1594 = vmatprep.mubr.bf16.mxu0 %v1676_v20  ;;  %1626 = vmatprep.mubr.bf16.mxu1 %v1692_v21 }
  0x3a   :  { %1595 = vmatmul.mubr.bf16.gmra.mxu0 %v1677_v22  ;;  %1627 = vmatmul.mubr.bf16.gmra.mxu1 %v1693_v23 }
  0x3b   :  { %1598 = vmatprep.mubr.bf16.mxu0 %v1678_v24  ;;  %1630 = vmatprep.mubr.bf16.mxu1 %v1694_v25 }
  0x42   :  { %1599 = vmatmul.mubr.bf16.gmra.mxu0 %v1679_v26  ;;  %1631 = vmatmul.mubr.bf16.gmra.mxu1 %v1695_v27 }
  0x43   :  { %1602 = vmatprep.mubr.bf16.mxu0 %v1680_v28  ;;  %1634 = vmatprep.mubr.bf16.mxu1 %v1696_v29 }
  0x4a   :  { %1603 = vmatmul.mubr.bf16.gmra.mxu0 %v1681_v30  ;;  %1635 = vmatmul.mubr.bf16.gmra.mxu1 %v1697_v31 }
  0x4b   :  { %1606 = vmatprep.mubr.bf16.mxu0 %v1682_v32  ;;  %1638 = vmatprep.mubr.bf16.mxu1 %v1698_v33 }
  0x52   :  { %1607 = vmatmul.mubr.bf16.gmra.mxu0 %v1683_v34  ;;  %1639 = vmatmul.mubr.bf16.gmra.mxu1 %v1699_v35 }
  0x53   :  { %1610 = vmatprep.mubr.bf16.mxu0 %v1684_v36  ;;  %1642 = vmatprep.mubr.bf16.mxu1 %v1700_v37 }
  0x5a   :  { %1611 = vmatmul.mubr.bf16.gmra.mxu0 %v1685_v38  ;;  %1643 = vmatmul.mubr.bf16.gmra.mxu1 %v1701_v39 }
  0xe2   :  { %v1584_v40 = vpop.f32.mrf.mxu0  ;;  %v1616_v41 = vpop.f32.mrf.mxu1 }
  0xe3   :  { %v1853_v45 = vadd.f32 %v1616_v41, %v1850_v42  ;;  %v387_v48 = vadd.f32 %v1584_v40, %v1850_v42 }
  0xe4   :  { %v378_v43 = vpop.f32.mrf.mxu0  ;;  %v506_v44 = vpop.f32.mrf.mxu1 }
  0xe5   :  { %v379_v49 = vadd.f32 %v1850_v42, %v378_v43  ;;  %v1862_v53 = vadd.f32 %v1850_v42, %v506_v44  ;;  %v1024_v4 = vmul.f32 %v387_v48, %v387_v48 }
  0xe6   :  { %v1585_v46 = vpop.f32.mrf.mxu0  ;;  %v1617_v47 = vpop.f32.mrf.mxu1 }
  0xe7   :  { %v390_v50 = vadd.f32 %v1585_v46, %v1850_v42  ;;  %v1859_v51 = vadd.f32 %v1617_v47, %v1850_v42  ;;  %v1022_v61 = vmul.f32 %v379_v49, %v379_v49 }
  0xe8   :  { %v381_v52 = vpop.f32.mrf.mxu0  ;;  %v509_v54 = vpop.f32.mrf.mxu1 }
  0xe9   :  { %v1343_v55 = vpack.c.bf16 %v390_v50, %v387_v48  ;;  %v382_v56 = vadd.f32 %v1850_v42, %v381_v52  ;;  %v1423_v57 = vpack.c.bf16 %v1859_v51, %v1853_v45  ;;  %v1868_v59 = vadd.f32 %v1850_v42, %v509_v54 }
  0xea   :  { %v1588_v58 = vpop.f32.mrf.mxu0  ;;  %v1620_v60 = vpop.f32.mrf.mxu1  ;;  %v1025_v8 = vmul.f32 %v390_v50, %v390_v50 }
  0xeb   :  { %1495 = vst [vmem:[%s2210_s3 + $0x8] sm:$0xff] %v1343_v55   ;;  %v1338_v62 = vpack.c.bf16 %v382_v56, %v379_v49  ;;  %v953_v63 = vadd.f32 %v382_v56, %v379_v49  ;;  %v1023_v0 = vmul.f32 %v382_v56, %v382_v56  ;;  %1511 = vst [vmem:[%s2210_s3 + $0x88] sm:$0xff] %v1423_v57  }
  0xec   :  { %v394_v1 = vpop.f32.mrf.mxu0  ;;  %v1418_v2 = vpack.c.bf16 %v1868_v59, %v1862_v53  ;;  %v522_v3 = vpop.f32.mrf.mxu1  ;;  %v1886_v10 = vadd.f32 %v1620_v60, %v1850_v42  ;;  %v403_v13 = vadd.f32 %v1588_v58, %v1850_v42 }
  0xed   :  { %1339 = vst [vmem:[%s2210_s3] sm:$0xff] %v1338_v62   ;;  %v954_v5 = vadd.f32 %v953_v63, %v387_v48  ;;  %v1086_v6 = vadd.f32 %v1023_v0, %v1022_v61  ;;  %v395_v7 = vadd.f32 %v1850_v42, %v394_v1  ;;  %v1891_v17 = vadd.f32 %v1850_v42, %v522_v3 }
  0xee   :  { %v1589_v9 = vpop.f32.mrf.mxu0  ;;  %1510 = vst [vmem:[%s2210_s3 + $0x80] sm:$0xff] %v1418_v2   ;;  %v1621_v11 = vpop.f32.mrf.mxu1  ;;  %v1028_v37 = vmul.f32 %v403_v13, %v403_v13 }
  0xef   :  { %v1087_v12 = vadd.f32 %v1086_v6, %v1024_v4  ;;  %v955_v14 = vadd.f32 %v954_v5, %v390_v50  ;;  %v406_v15 = vadd.f32 %v1589_v9, %v1850_v42  ;;  %v1894_v18 = vadd.f32 %v1621_v11, %v1850_v42 }
  0xf0   :  { %v397_v16 = vpop.f32.mrf.mxu0  ;;  %v525_v19 = vpop.f32.mrf.mxu1  ;;  %v1026_v21 = vmul.f32 %v395_v7, %v395_v7 }
  0xf1   :  { %v956_v20 = vadd.f32 %v955_v14, %v395_v7  ;;  %v1088_v22 = vadd.f32 %v1087_v12, %v1025_v8  ;;  %v1353_v23 = vpack.c.bf16 %v406_v15, %v403_v13  ;;  %v398_v24 = vadd.f32 %v1850_v42, %v397_v16 }
  0xf2   :  { %v1592_v25 = vpop.f32.mrf.mxu0  ;;  %v1433_v26 = vpack.c.bf16 %v1894_v18, %v1886_v10  ;;  %v1900_v27 = vadd.f32 %v1850_v42, %v525_v19  ;;  %v1624_v28 = vpop.f32.mrf.mxu1  ;;  %v1029_v48 = vmul.f32 %v406_v15, %v406_v15 }
  0xf3   :  { %v1089_v29 = vadd.f32 %v1088_v22, %v1026_v21  ;;  %1497 = vst [vmem:[%s2210_s3 + $0x18] sm:$0xff] %v1353_v23   ;;  %v1348_v30 = vpack.c.bf16 %v398_v24, %v395_v7  ;;  %v957_v31 = vadd.f32 %v956_v20, %v398_v24  ;;  %v1027_v32 = vmul.f32 %v398_v24, %v398_v24 }
  0xf4   :  { %v410_v33 = vpop.f32.mrf.mxu0  ;;  %1513 = vst [vmem:[%s2210_s3 + $0x98] sm:$0xff] %v1433_v26   ;;  %v1428_v34 = vpack.c.bf16 %v1900_v27, %v1891_v17  ;;  %v538_v35 = vpop.f32.mrf.mxu1  ;;  %v1911_v36 = vadd.f32 %v1624_v28, %v1850_v42  ;;  %v419_v44 = vadd.f32 %v1592_v25, %v1850_v42 }
  0xf5   :  { %1496 = vst [vmem:[%s2210_s3 + $0x10] sm:$0xff] %v1348_v30   ;;  %v958_v38 = vadd.f32 %v957_v31, %v403_v13  ;;  %v1090_v39 = vadd.f32 %v1089_v29, %v1027_v32  ;;  %v411_v40 = vadd.f32 %v1850_v42, %v410_v33  ;;  %v1926_v54 = vadd.f32 %v1850_v42, %v538_v35 }
  0xf6   :  { %v1593_v41 = vpop.f32.mrf.mxu0  ;;  %1512 = vst [vmem:[%s2210_s3 + $0x90] sm:$0xff] %v1428_v34   ;;  %v1625_v43 = vpop.f32.mrf.mxu1  ;;  %v1032_v11 = vmul.f32 %v419_v44, %v419_v44 }
  0xf7   :  { %v422_v46 = vadd.f32 %v1593_v41, %v1850_v42  ;;  %v1923_v47 = vadd.f32 %v1625_v43, %v1850_v42  ;;  %v1091_v49 = vadd.f32 %v1090_v39, %v1028_v37  ;;  %v959_v50 = vadd.f32 %v958_v38, %v406_v15 }
  0xf8   :  { %v413_v52 = vpop.f32.mrf.mxu0  ;;  %v541_v55 = vpop.f32.mrf.mxu1  ;;  %v1030_v61 = vmul.f32 %v411_v40, %v411_v40 }
  0xf9   :  { %v1363_v56 = vpack.c.bf16 %v422_v46, %v419_v44  ;;  %v414_v57 = vadd.f32 %v1850_v42, %v413_v52  ;;  %v1443_v58 = vpack.c.bf16 %v1923_v47, %v1911_v36  ;;  %v960_v60 = vadd.f32 %v959_v50, %v411_v40 }
  0xfa   :  { %v1092_v62 = vadd.f32 %v1091_v49, %v1029_v48  ;;  %v1596_v63 = vpop.f32.mrf.mxu0  ;;  %v1932_v0 = vadd.f32 %v1850_v42, %v541_v55  ;;  %v1628_v1 = vpop.f32.mrf.mxu1  ;;  %v1033_v22 = vmul.f32 %v422_v46, %v422_v46 }
  0xfb   :  { %1499 = vst [vmem:[%s2210_s3 + $0x28] sm:$0xff] %v1363_v56   ;;  %v1358_v2 = vpack.c.bf16 %v414_v57, %v411_v40  ;;  %v1031_v3 = vmul.f32 %v414_v57, %v414_v57  ;;  %1515 = vst [vmem:[%s2210_s3 + $0xa8] sm:$0xff] %v1443_v58   ;;  %v961_v5 = vadd.f32 %v960_v60, %v414_v57 }
  0xfc   :  { %v1093_v4 = vadd.f32 %v1092_v62, %v1030_v61  ;;  %v426_v6 = vpop.f32.mrf.mxu0  ;;  %v1438_v7 = vpack.c.bf16 %v1932_v0, %v1926_v54  ;;  %v554_v8 = vpop.f32.mrf.mxu1  ;;  %v1946_v9 = vadd.f32 %v1628_v1, %v1850_v42  ;;  %v435_v19 = vadd.f32 %v1596_v63, %v1850_v42 }
  0xfd   :  { %1498 = vst [vmem:[%s2210_s3 + $0x20] sm:$0xff] %v1358_v2   ;;  %v962_v12 = vadd.f32 %v961_v5, %v419_v44  ;;  %v427_v14 = vadd.f32 %v1850_v42, %v426_v6  ;;  %v1958_v26 = vadd.f32 %v1850_v42, %v554_v8 }
  0xfe   :  { %v1094_v13 = vadd.f32 %v1093_v4, %v1031_v3  ;;  %v1597_v15 = vpop.f32.mrf.mxu0  ;;  %1514 = vst [vmem:[%s2210_s3 + $0xa0] sm:$0xff] %v1438_v7   ;;  %v1629_v16 = vpop.f32.mrf.mxu1  ;;  %v1036_v50 = vmul.f32 %v435_v19, %v435_v19 }
  0xff   :  { %v438_v20 = vadd.f32 %v1597_v15, %v1850_v42  ;;  %v1955_v21 = vadd.f32 %v1629_v16, %v1850_v42  ;;  %v963_v24 = vadd.f32 %v962_v12, %v422_v46  ;;  %v1034_v33 = vmul.f32 %v427_v14, %v427_v14 }
 0x100   :  { %v1095_v23 = vadd.f32 %v1094_v13, %v1032_v11  ;;  %v429_v25 = vpop.f32.mrf.mxu0  ;;  %v557_v28 = vpop.f32.mrf.mxu1 }
 0x101   :  { %v1373_v29 = vpack.c.bf16 %v438_v20, %v435_v19  ;;  %v430_v30 = vadd.f32 %v1850_v42, %v429_v25  ;;  %v1453_v31 = vpack.c.bf16 %v1955_v21, %v1946_v9  ;;  %v964_v32 = vadd.f32 %v963_v24, %v427_v14 }
 0x102   :  { %v1096_v34 = vadd.f32 %v1095_v23, %v1033_v22  ;;  %v1600_v35 = vpop.f32.mrf.mxu0  ;;  %v1964_v37 = vadd.f32 %v1850_v42, %v557_v28  ;;  %v1632_v38 = vpop.f32.mrf.mxu1  ;;  %v1037_v63 = vmul.f32 %v438_v20, %v438_v20 }
 0x103   :  { %1501 = vst [vmem:[%s2210_s3 + $0x38] sm:$0xff] %v1373_v29   ;;  %v1368_v39 = vpack.c.bf16 %v430_v30, %v427_v14  ;;  %v1035_v40 = vmul.f32 %v430_v30, %v430_v30  ;;  %1517 = vst [vmem:[%s2210_s3 + $0xb8] sm:$0xff] %v1453_v31   ;;  %v965_v43 = vadd.f32 %v964_v32, %v430_v30 }
 0x104   :  { %v1097_v41 = vadd.f32 %v1096_v34, %v1034_v33  ;;  %v442_v44 = vpop.f32.mrf.mxu0  ;;  %v1448_v46 = vpack.c.bf16 %v1964_v37, %v1958_v26  ;;  %v570_v48 = vpop.f32.mrf.mxu1  ;;  %v1978_v49 = vadd.f32 %v1632_v38, %v1850_v42  ;;  %v451_v60 = vadd.f32 %v1600_v35, %v1850_v42 }
 0x105   :  { %1500 = vst [vmem:[%s2210_s3 + $0x30] sm:$0xff] %v1368_v39   ;;  %v966_v52 = vadd.f32 %v965_v43, %v435_v19  ;;  %v443_v56 = vadd.f32 %v1850_v42, %v442_v44  ;;  %v1990_v4 = vadd.f32 %v1850_v42, %v570_v48 }
 0x106   :  { %v1098_v55 = vadd.f32 %v1097_v41, %v1035_v40  ;;  %v1601_v57 = vpop.f32.mrf.mxu0  ;;  %1516 = vst [vmem:[%s2210_s3 + $0xb0] sm:$0xff] %v1448_v46   ;;  %v1633_v58 = vpop.f32.mrf.mxu1  ;;  %v1040_v30 = vmul.f32 %v451_v60, %v451_v60 }
 0x107   :  { %v454_v61 = vadd.f32 %v1601_v57, %v1850_v42  ;;  %v1987_v62 = vadd.f32 %v1633_v58, %v1850_v42  ;;  %v967_v2 = vadd.f32 %v966_v52, %v438_v20  ;;  %v1038_v12 = vmul.f32 %v443_v56, %v443_v56 }
 0x108   :  { %v1099_v1 = vadd.f32 %v1098_v55, %v1036_v50  ;;  %v445_v3 = vpop.f32.mrf.mxu0  ;;  %v573_v5 = vpop.f32.mrf.mxu1 }
 0x109   :  { %v1383_v6 = vpack.c.bf16 %v454_v61, %v451_v60  ;;  %v446_v7 = vadd.f32 %v1850_v42, %v445_v3  ;;  %v1463_v8 = vpack.c.bf16 %v1987_v62, %v1978_v49  ;;  %v968_v11 = vadd.f32 %v967_v2, %v443_v56 }
 0x10a   :  { %v1100_v13 = vadd.f32 %v1099_v1, %v1037_v63  ;;  %v1604_v14 = vpop.f32.mrf.mxu0  ;;  %v1996_v15 = vadd.f32 %v1850_v42, %v573_v5  ;;  %v1636_v16 = vpop.f32.mrf.mxu1  ;;  %v1041_v41 = vmul.f32 %v454_v61, %v454_v61 }
 0x10b   :  { %1503 = vst [vmem:[%s2210_s3 + $0x48] sm:$0xff] %v1383_v6   ;;  %v1378_v19 = vpack.c.bf16 %v446_v7, %v443_v56  ;;  %v1039_v20 = vmul.f32 %v446_v7, %v446_v7  ;;  %1519 = vst [vmem:[%s2210_s3 + $0xc8] sm:$0xff] %v1463_v8   ;;  %v969_v23 = vadd.f32 %v968_v11, %v446_v7 }
 0x10c   :  { %v1101_v22 = vadd.f32 %v1100_v13, %v1038_v12  ;;  %v458_v24 = vpop.f32.mrf.mxu0  ;;  %v1458_v25 = vpack.c.bf16 %v1996_v15, %v1990_v4  ;;  %v586_v28 = vpop.f32.mrf.mxu1  ;;  %v2010_v29 = vadd.f32 %v1636_v16, %v1850_v42  ;;  %v467_v38 = vadd.f32 %v1604_v14, %v1850_v42 }
 0x10d   :  { %1502 = vst [vmem:[%s2210_s3 + $0x40] sm:$0xff] %v1378_v19   ;;  %v970_v31 = vadd.f32 %v969_v23, %v451_v60  ;;  %v459_v33 = vadd.f32 %v1850_v42, %v458_v24  ;;  %v2022_v48 = vadd.f32 %v1850_v42, %v586_v28 }
 0x10e   :  { %v1102_v32 = vadd.f32 %v1101_v22, %v1039_v20  ;;  %v1605_v34 = vpop.f32.mrf.mxu0  ;;  %1518 = vst [vmem:[%s2210_s3 + $0xc0] sm:$0xff] %v1458_v25   ;;  %v1637_v35 = vpop.f32.mrf.mxu1  ;;  %v1044_v13 = vmul.f32 %v467_v38, %v467_v38 }
 0x10f   :  { %v470_v39 = vadd.f32 %v1605_v34, %v1850_v42  ;;  %v2019_v40 = vadd.f32 %v1637_v35, %v1850_v42  ;;  %v971_v44 = vadd.f32 %v970_v31, %v454_v61  ;;  %v1042_v58 = vmul.f32 %v459_v33, %v459_v33 }
 0x110   :  { %v1103_v43 = vadd.f32 %v1102_v32, %v1040_v30  ;;  %v461_v46 = vpop.f32.mrf.mxu0  ;;  %v589_v50 = vpop.f32.mrf.mxu1 }
 0x111   :  { %v1393_v52 = vpack.c.bf16 %v470_v39, %v467_v38  ;;  %v462_v55 = vadd.f32 %v1850_v42, %v461_v46  ;;  %v1473_v56 = vpack.c.bf16 %v2019_v40, %v2010_v29  ;;  %v972_v57 = vadd.f32 %v971_v44, %v459_v33 }
 0x112   :  { %v1104_v60 = vadd.f32 %v1103_v43, %v1041_v41  ;;  %v1608_v63 = vpop.f32.mrf.mxu0  ;;  %v2028_v1 = vadd.f32 %v1850_v42, %v589_v50  ;;  %v1640_v2 = vpop.f32.mrf.mxu1  ;;  %v1045_v28 = vmul.f32 %v470_v39, %v470_v39 }
 0x113   :  { %1505 = vst [vmem:[%s2210_s3 + $0x58] sm:$0xff] %v1393_v52   ;;  %v1388_v61 = vpack.c.bf16 %v462_v55, %v459_v33  ;;  %v1043_v3 = vmul.f32 %v462_v55, %v462_v55  ;;  %1521 = vst [vmem:[%s2210_s3 + $0xd8] sm:$0xff] %v1473_v56   ;;  %v973_v6 = vadd.f32 %v972_v57, %v462_v55 }
 0x114   :  { %v1105_v5 = vadd.f32 %v1104_v60, %v1042_v58  ;;  %v474_v7 = vpop.f32.mrf.mxu0  ;;  %v1468_v8 = vpack.c.bf16 %v2028_v1, %v2022_v48  ;;  %v602_v11 = vpop.f32.mrf.mxu1  ;;  %v2042_v12 = vadd.f32 %v1640_v2, %v1850_v42  ;;  %v483_v23 = vadd.f32 %v1608_v63, %v1850_v42 }
 0x115   :  { %1504 = vst [vmem:[%s2210_s3 + $0x50] sm:$0xff] %v1388_v61   ;;  %v974_v14 = vadd.f32 %v973_v6, %v467_v38  ;;  %v475_v19 = vadd.f32 %v1850_v42, %v474_v7  ;;  %v2054_v33 = vadd.f32 %v1850_v42, %v602_v11 }
 0x116   :  { %v1106_v16 = vadd.f32 %v1105_v5, %v1043_v3  ;;  %v1609_v20 = vpop.f32.mrf.mxu0  ;;  %1520 = vst [vmem:[%s2210_s3 + $0xd0] sm:$0xff] %v1468_v8   ;;  %v1641_v22 = vpop.f32.mrf.mxu1  ;;  %v1048_v3 = vmul.f32 %v483_v23, %v483_v23 }
 0x117   :  { %v486_v24 = vadd.f32 %v1609_v20, %v1850_v42  ;;  %v2051_v25 = vadd.f32 %v1641_v22, %v1850_v42  ;;  %v975_v31 = vadd.f32 %v974_v14, %v470_v39  ;;  %v1046_v44 = vmul.f32 %v475_v19, %v475_v19 }
 0x118   :  { %v1107_v30 = vadd.f32 %v1106_v16, %v1044_v13  ;;  %v477_v32 = vpop.f32.mrf.mxu0  ;;  %v605_v34 = vpop.f32.mrf.mxu1 }
 0x119   :  { %v1403_v35 = vpack.c.bf16 %v486_v24, %v483_v23  ;;  %v478_v38 = vadd.f32 %v1850_v42, %v477_v32  ;;  %v1483_v41 = vpack.c.bf16 %v2051_v25, %v2042_v12  ;;  %v976_v43 = vadd.f32 %v975_v31, %v475_v19 }
 0x11a   :  { %v1108_v46 = vadd.f32 %v1107_v30, %v1045_v28  ;;  %v1612_v50 = vpop.f32.mrf.mxu0  ;;  %v2060_v52 = vadd.f32 %v1850_v42, %v605_v34  ;;  %v1644_v55 = vpop.f32.mrf.mxu1 }
 0x11b   :  { %1507 = vst [vmem:[%s2210_s3 + $0x68] sm:$0xff] %v1403_v35   ;;  %v1398_v39 = vpack.c.bf16 %v478_v38, %v475_v19  ;;  %v1047_v56 = vmul.f32 %v478_v38, %v478_v38  ;;  %1523 = vst [vmem:[%s2210_s3 + $0xe8] sm:$0xff] %v1483_v41   ;;  %v977_v58 = vadd.f32 %v976_v43, %v478_v38 }
 0x11c   :  { %v1109_v57 = vadd.f32 %v1108_v46, %v1046_v44  ;;  %v490_v60 = vpop.f32.mrf.mxu0  ;;  %v1478_v63 = vpack.c.bf16 %v2060_v52, %v2054_v33  ;;  %v618_v2 = vpop.f32.mrf.mxu1  ;;  %v2074_v61 = vadd.f32 %v1644_v55, %v1850_v42  ;;  %v499_v13 = vadd.f32 %v1612_v50, %v1850_v42 }
 0x11d   :  { %1506 = vst [vmem:[%s2210_s3 + $0x60] sm:$0xff] %v1398_v39   ;;  %v978_v5 = vadd.f32 %v977_v58, %v483_v23  ;;  %v491_v7 = vadd.f32 %v1850_v42, %v490_v60  ;;  %v1049_v19 = vmul.f32 %v486_v24, %v486_v24  ;;  %v2086_v28 = vadd.f32 %v1850_v42, %v618_v2 }
 0x11e   :  { %v1110_v6 = vadd.f32 %v1109_v57, %v1047_v56  ;;  %v1613_v8 = vpop.f32.mrf.mxu0  ;;  %1522 = vst [vmem:[%s2210_s3 + $0xe0] sm:$0xff] %v1478_v63   ;;  %v1645_v11 = vpop.f32.mrf.mxu1  ;;  %v1054_v63 = vmul.f32 %v1862_v53, %v1862_v53 }
 0x11f   :  { %v502_v14 = vadd.f32 %v1613_v8, %v1850_v42  ;;  %v2083_v16 = vadd.f32 %v1645_v11, %v1850_v42  ;;  %v979_v22 = vadd.f32 %v978_v5, %v486_v24  ;;  %v1050_v38 = vmul.f32 %v491_v7, %v491_v7 }
 0x120   :  { %v1111_v20 = vadd.f32 %v1110_v6, %v1048_v3  ;;  %v493_v23 = vpop.f32.mrf.mxu0  ;;  %v621_v30 = vpop.f32.mrf.mxu1  ;;  %v1055_v6 = vmul.f32 %v1868_v59, %v1868_v59  ;;  %v1056_v8 = vmul.f32 %v1853_v45, %v1853_v45 }
 0x121   :  { %v1413_v31 = vpack.c.bf16 %v502_v14, %v499_v13  ;;  %v494_v32 = vadd.f32 %v1850_v42, %v493_v23  ;;  %v1493_v34 = vpack.c.bf16 %v2083_v16, %v2074_v61  ;;  %v980_v35 = vadd.f32 %v979_v22, %v491_v7 }
 0x122   :  { %v1112_v41 = vadd.f32 %v1111_v20, %v1049_v19  ;;  %v2092_v43 = vadd.f32 %v1850_v42, %v621_v30  ;;  %v1052_v42 = vmul.f32 %v499_v13, %v499_v13  ;;  %v1053_v57 = vmul.f32 %v502_v14, %v502_v14 }
 0x123   :  { %1509 = vst [vmem:[%s2210_s3 + $0x78] sm:$0xff] %v1413_v31   ;;  %v1408_v24 = vpack.c.bf16 %v494_v32, %v491_v7  ;;  %v1051_v44 = vmul.f32 %v494_v32, %v494_v32  ;;  %1525 = vst [vmem:[%s2210_s3 + $0xf8] sm:$0xff] %v1493_v34   ;;  %v981_v50 = vadd.f32 %v980_v35, %v494_v32 }
 0x124   :  { %v1113_v46 = vadd.f32 %v1112_v41, %v1050_v38  ;;  %v1488_v55 = vpack.c.bf16 %v2092_v43, %v2086_v28  ;;  %v1058_v22 = vmul.f32 %v1891_v17, %v1891_v17  ;;  %v1059_v31 = vmul.f32 %v1900_v27, %v1900_v27 }
 0x125   :  { %1508 = vst [vmem:[%s2210_s3 + $0x70] sm:$0xff] %v1408_v24   ;;  %v982_v39 = vadd.f32 %v981_v50, %v499_v13  ;;  %v1062_v41 = vmul.f32 %v1926_v54, %v1926_v54 }
 0x126   :  { %v1114_v56 = vadd.f32 %v1113_v46, %v1051_v44  ;;  %1524 = vst [vmem:[%s2210_s3 + $0xf0] sm:$0xff] %v1488_v55   ;;  %v1063_v46 = vmul.f32 %v1932_v0, %v1932_v0 }
 0x127   :  { %v983_v60 = vadd.f32 %v982_v39, %v502_v14  ;;  %v1057_v14 = vmul.f32 %v1859_v51, %v1859_v51 }
 0x128   :  { %v1115_v58 = vadd.f32 %v1114_v56, %v1052_v42  ;;  %v1066_v56 = vmul.f32 %v1958_v26, %v1958_v26 }
 0x129   :  { %v984_v2 = vadd.f32 %v983_v60, %v1862_v53  ;;  %v1067_v60 = vmul.f32 %v1964_v37, %v1964_v37 }
 0x12a   :  { %v1116_v3 = vadd.f32 %v1115_v58, %v1053_v57 }
 0x12b   :  { %v985_v5 = vadd.f32 %v984_v2, %v1868_v59 }
 0x12c   :  { %v1117_v7 = vadd.f32 %v1116_v3, %v1054_v63 }
 0x12d   :  { %v986_v11 = vadd.f32 %v985_v5, %v1853_v45  ;;  %v1060_v45 = vmul.f32 %v1886_v10, %v1886_v10 }
 0x12e   :  { %v1118_v13 = vadd.f32 %v1117_v7, %v1055_v6  ;;  %v1070_v6 = vmul.f32 %v1990_v4, %v1990_v4 }
 0x12f   :  { %v987_v20 = vadd.f32 %v986_v11, %v1859_v51  ;;  %v1061_v51 = vmul.f32 %v1894_v18, %v1894_v18  ;;  %v1071_v11 = vmul.f32 %v1996_v15, %v1996_v15 }
 0x130   :  { %v1119_v19 = vadd.f32 %v1118_v13, %v1056_v8 }
 0x131   :  { %v988_v53 = vadd.f32 %v987_v20, %v1891_v17 }
 0x132   :  { %v1120_v23 = vadd.f32 %v1119_v19, %v1057_v14 }
 0x133   :  { %v989_v30 = vadd.f32 %v988_v53, %v1900_v27  ;;  %v1074_v53 = vmul.f32 %v2022_v48, %v2022_v48 }
 0x134   :  { %v1121_v59 = vadd.f32 %v1120_v23, %v1058_v22 }
 0x135   :  { %v990_v32 = vadd.f32 %v989_v30, %v1886_v10  ;;  %v1064_v10 = vmul.f32 %v1911_v36, %v1911_v36 }
 0x136   :  { %v1122_v34 = vadd.f32 %v1121_v59, %v1059_v31  ;;  %v1075_v59 = vmul.f32 %v2028_v1, %v2028_v1 }
 0x137   :  { %v991_v38 = vadd.f32 %v990_v32, %v1894_v18  ;;  %v1065_v18 = vmul.f32 %v1923_v47, %v1923_v47 }
 0x138   :  { %v1123_v35 = vadd.f32 %v1122_v34, %v1060_v45  ;;  %v1078_v34 = vmul.f32 %v2054_v33, %v2054_v33 }
 0x139   :  { %v992_v17 = vadd.f32 %v991_v38, %v1926_v54  ;;  %v1079_v38 = vmul.f32 %v2060_v52, %v2060_v52 }
 0x13a   :  { %v1124_v24 = vadd.f32 %v1123_v35, %v1061_v51 }
 0x13b   :  { %v993_v27 = vadd.f32 %v992_v17, %v1932_v0 }
 0x13c   :  { %v1125_v44 = vadd.f32 %v1124_v24, %v1062_v41 }
 0x13d   :  { %v994_v50 = vadd.f32 %v993_v27, %v1911_v36  ;;  %v1068_v36 = vmul.f32 %v1946_v9, %v1946_v9  ;;  %v1082_v27 = vmul.f32 %v2086_v28, %v2086_v28 }
 0x13e   :  { %v1126_v55 = vadd.f32 %v1125_v44, %v1063_v46 }
 0x13f   :  { %v995_v39 = vadd.f32 %v994_v50, %v1923_v47  ;;  %v1069_v47 = vmul.f32 %v1955_v21, %v1955_v21  ;;  %v1083_v50 = vmul.f32 %v2092_v43, %v2092_v43 }
 0x140   :  { %v1127_v42 = vadd.f32 %v1126_v55, %v1064_v10 }
 0x141   :  { %v996_v54 = vadd.f32 %v995_v39, %v1958_v26 }
 0x142   :  { %v1128_v57 = vadd.f32 %v1127_v42, %v1065_v18 }
 0x143   :  { %v997_v0 = vadd.f32 %v996_v54, %v1964_v37 }
 0x144   :  { %v1129_v58 = vadd.f32 %v1128_v57, %v1066_v56 }
 0x145   :  { %v998_v63 = vadd.f32 %v997_v0, %v1946_v9  ;;  %v1072_v9 = vmul.f32 %v1978_v49, %v1978_v49 }
 0x146   :  { %v1130_v2 = vadd.f32 %v1129_v58, %v1067_v60 }
 0x147   :  { %v999_v5 = vadd.f32 %v998_v63, %v1955_v21  ;;  %v1073_v21 = vmul.f32 %v1987_v62, %v1987_v62 }
 0x148   :  { %v1131_v3 = vadd.f32 %v1130_v2, %v1068_v36 }
 0x149   :  { %v1000_v26 = vadd.f32 %v999_v5, %v1990_v4 }
 0x14a   :  { %v1132_v7 = vadd.f32 %v1131_v3, %v1069_v47 }
 0x14b   :  { %v1001_v37 = vadd.f32 %v1000_v26, %v1996_v15 }
 0x14c   :  { %v1133_v8 = vadd.f32 %v1132_v7, %v1070_v6 }
 0x14d   :  { %v1002_v13 = vadd.f32 %v1001_v37, %v1978_v49  ;;  %v1076_v49 = vmul.f32 %v2010_v29, %v2010_v29 }
 0x14e   :  { %v1134_v14 = vadd.f32 %v1133_v8, %v1071_v11 }
 0x14f   :  { %v1003_v20 = vadd.f32 %v1002_v13, %v1987_v62  ;;  %v1077_v62 = vmul.f32 %v2019_v40, %v2019_v40 }
 0x150   :  { %v1135_v19 = vadd.f32 %v1134_v14, %v1072_v9 }
 0x151   :  { %v1004_v4 = vadd.f32 %v1003_v20, %v2022_v48 }
 0x152   :  { %v1136_v22 = vadd.f32 %v1135_v19, %v1073_v21 }
 0x153   :  { %v1005_v15 = vadd.f32 %v1004_v4, %v2028_v1 }
 0x154   :  { %v1137_v23 = vadd.f32 %v1136_v22, %v1074_v53 }
 0x155   :  { %v1006_v30 = vadd.f32 %v1005_v15, %v2010_v29  ;;  %v1080_v29 = vmul.f32 %v2042_v12, %v2042_v12 }
 0x156   :  { %v1138_v31 = vadd.f32 %v1137_v23, %v1075_v59 }
 0x157   :  { %v1007_v32 = vadd.f32 %v1006_v30, %v2019_v40  ;;  %v1081_v40 = vmul.f32 %v2051_v25, %v2051_v25 }
 0x158   :  { %v1139_v45 = vadd.f32 %v1138_v31, %v1076_v49 }
 0x159   :  { %v1008_v48 = vadd.f32 %v1007_v32, %v2054_v33 }
 0x15a   :  { %v1140_v51 = vadd.f32 %v1139_v45, %v1077_v62 }
 0x15b   :  { %v1009_v1 = vadd.f32 %v1008_v48, %v2060_v52 }
 0x15c   :  { %v1141_v35 = vadd.f32 %v1140_v51, %v1078_v34 }
 0x15d   :  { %v1010_v17 = vadd.f32 %v1009_v1, %v2042_v12  ;;  %v1084_v12 = vmul.f32 %v2074_v61, %v2074_v61 }
 0x15e   :  { %v1142_v41 = vadd.f32 %v1141_v35, %v1079_v38 }
 0x15f   :  { %v1011_v44 = vadd.f32 %v1010_v17, %v2051_v25  ;;  %v1085_v25 = vmul.f32 %v2083_v16, %v2083_v16 }
 0x160   :  { %v1143_v24 = vadd.f32 %v1142_v41, %v1080_v29 }
 0x161   :  { %v1012_v33 = vadd.f32 %v1011_v44, %v2086_v28 }
 0x162   :  { %v1144_v46 = vadd.f32 %v1143_v24, %v1081_v40 }
 0x163   :  { %v1013_v52 = vadd.f32 %v1012_v33, %v2092_v43 }
 0x164   :  { %v1145_v10 = vadd.f32 %v1144_v46, %v1082_v27 }
 0x165   :  { %v1014_v55 = vadd.f32 %v1013_v52, %v2074_v61 }
 0x166   :  { %v1146_v18 = vadd.f32 %v1145_v10, %v1083_v50 }
 0x167   :  { %v1015_v42 = vadd.f32 %v1014_v55, %v2083_v16 }
 0x168   :  { %v1147_v39 = vadd.f32 %v1146_v18, %v1084_v12 }
 0x169   :  { %v1016_v28 = vrot.slane %v1015_v42, 4 }
 0x16a   :  { %v1148_v54 = vadd.f32 %v1147_v39, %v1085_v25 }
 0x16b   :  { %v1017_v56 = vadd.f32 %v1016_v28, %v1015_v42 }
 0x16c   :  { %v1149_v57 = vrot.slane %v1148_v54, 4 }
 0x16d   :  { %v1018_v58 = vrot.slane %v1017_v56, 2 }
 0x16e   :  { %v1150_v0 = vadd.f32 %v1149_v57, %v1148_v54 }
 0x16f   :  { %v1019_v60 = vadd.f32 %v1018_v58, %v1017_v56 }
 0x170   :  { %v1151_v43 = vrot.slane %v1150_v0, 2 }
 0x171   :  { %v1020_v36 = vrot.slane %v1019_v60, 1 }
 0x172   :  { %v1152_v63 = vadd.f32 %v1151_v43, %v1150_v0 }
 0x173   :  { %v1021_v61 = vadd.f32 %v1020_v36, %v1019_v60 }
 0x174   :  { %v1153_v2 = vrot.slane %v1152_v63, 1 }
 0x176   :  { %v1154_v47 = vadd.f32 %v1153_v2, %v1152_v63 }
 0x178   :  { %v1156_v3 = vsel %vm1155_vm0, %v1021_v61, %v1154_v47 }
 0x179   :  { %1157 = vst [vmem:[%s2211_s4] sm:$0x3] %v1156_v3 }

// kernel: my_bottleneck.5
= control target key start
LH: loop header
LB: loop body
LE: loop exit
PB: predicated region body
PF: predicated region fallthrough
CT: control target
= control target key end

     0   :  { %s4057_s21 = smov 0   ;;  %s5332_s0 = inlined_call_operand.vmem [shape: bf16[2,16,16,128], index: 0, kind: input, shape index: {}]   ;;  %s5333_s1 = inlined_call_operand.vmem [shape: f32[1,128], index: 1, kind: input, shape index: {}]   ;;  %s5334_s2 = inlined_call_operand.vmem [shape: f32[1,128], index: 2, kind: input, shape index: {}]   ;;  %s5335_s3 = inlined_call_operand.vmem [shape: bf16[3,384,128], index: 3, kind: input, shape index: {}]   ;;  %s5336_s4 = inlined_call_operand.vmem [shape: f32[1,128], index: 4, kind: input, shape index: {}]   ;;  %s5337_s5 = inlined_call_operand.vmem [shape: bf16[2,256,128], index: 5, kind: output, shape index: {0}]   ;;  %s5338_s6 = inlined_call_operand.vmem [shape: f32[2,2,128], index: 6, kind: output, shape index: {1}]  }
   0x1 LB: > { %s2939_s22 = sadd.s32 4294967295, %s4019_s21   ;;  %p2943_p0 = scmp.ge.s32.totalorder %s4019_s21, 1  ;;  %s4019_s21 = sphi %s4057_s21, %s17_s21  }
   0x2   : > { %p215_p1 = scmp.lt.s32.totalorder %s4019_s21, 3 }
   0x4   : > { %p216_p2 = pnand %p2943_p0, %p215_p1 }
   0x6   : > { %219 = sbr.rel (%p216_p2) target bundleno = 559 (0x22f), region = 40 }
   0xb   : > { %v3939_v0 = vld [vmem:[%s5335_s3 + $0x138] sm:$0xff]   ;;  %v3941_v2 = vld [vmem:[%s5335_s3 + $0x130] sm:$0xff]   ;;  %p249_p3 = scmp.lt.s32.totalorder %s2939_s22, 1  ;;  %v3943_v4 = vld [vmem:[%s5335_s3 + $0x128] sm:$0xff]   ;;  %vm607_vm0 = vcmask 1040384   ;;  %vm885_vm4 = vcmask 1046528  }
   0xc   : > { %v3940_v1 = vld [vmem:[%s5335_s3 + $0xf8] sm:$0xff]   ;;  %3362 = vmatprep.subr.bf16.mxu0 %v3939_v0  ;;  %3914 = vmatprep.subr.bf16.mxu1 %v3939_v0  ;;  %v3942_v3 = vld [vmem:[%s5335_s3 + $0xf0] sm:$0xff]   ;;  %v3944_v5 = vld [vmem:[%s5335_s3 + $0xe8] sm:$0xff]   ;;  %vm608_vm1 = vsmask.f32 256 }
   0xd   : > { %3363 = vmatpush3.bf16.msra.mxu0 %v3940_v1  ;;  %3922 = vmatpush3.bf16.msra.mxu1 %v3940_v1  ;;  %s5379_s22 = smov (!%p249_p3, %s2939_s22), 1  ;;  %v3945_v6 = vld [vmem:[%s5335_s3 + $0x120] sm:$0xff]   ;;  %v3947_v8 = vld [vmem:[%s5335_s3 + $0x118] sm:$0xff]   ;;  %v3949_v10 = vld [vmem:[%s5335_s3 + $0x110] sm:$0xff]   ;;  %vm644_vm2 = vsmask.f32 7424 }
   0xe   : > { %3364 = vmatprep.subr.bf16.mxu0 %v3941_v2  ;;  %3915 = vmatprep.subr.bf16.mxu1 %v3941_v2  ;;  %s3154_s13 = sshll.u32 %s5379_s22, 7  ;;  %v3946_v7 = vld [vmem:[%s5335_s3 + $0xe0] sm:$0xff]   ;;  %v3948_v9 = vld [vmem:[%s5335_s3 + $0xd8] sm:$0xff]   ;;  %v3950_v19 = vld [vmem:[%s5335_s3 + $0xd0] sm:$0xff]  }
   0xf   : > { %s4100_s20 = scalar_lea.vmem %s5332_s0, %s3154_s13  ;;  %v4112_v12 = vld [vmem:[%s5333_s1] ss:$0 sm:$0xff]  ;;  %v3951_v22 = vld [vmem:[%s5335_s3 + $0x108] sm:$0xff]   ;;  %v4157_v58 = vld [vmem:[%s5335_s3 + $0x178] sm:$0xff]   ;;  %s5182_s14 = scalar_lea.vmem %s5337_s5, %s3154_s13 }
  0x10   : > { %v3189_v11 = vld [vmem:[%s4100_s20] sm:$0xff]   ;;  %v3332_v27 = vld [vmem:[%s4100_s20 + $0x8] sm:$0xff]   ;;  %v3333_v46 = vld [vmem:[%s4100_s20 + $0x10] sm:$0xff]   ;;  %s2948_s13 = sshll.u32 %s5379_s22, 1 }
  0x11   : > { %3365 = vmatpush3.bf16.msra.mxu0 %v3942_v3  ;;  %3923 = vmatpush3.bf16.msra.mxu1 %v3942_v3  ;;  %v3190_v13 = vunpack.c.l.bf16 %v3189_v11  ;;  %v3191_v14 = vunpack.c.h.bf16 %v3189_v11  ;;  %v3343_v15 = vld [vmem:[%s4100_s20 + $0x60] sm:$0xff]   ;;  %v3344_v28 = vld [vmem:[%s4100_s20 + $0x68] sm:$0xff]   ;;  %v3194_v31 = vunpack.c.l.bf16 %v3332_v27  ;;  %v3195_v32 = vunpack.c.h.bf16 %v3332_v27  ;;  %v4162_v59 = vld [vmem:[%s5335_s3 + $0xb8] sm:$0xff]   ;;  %s262_s17 = scalar_lea.vmem %s5338_s6, %s2948_s13 }
  0x12   : > { %3366 = vmatprep.subr.bf16.mxu0 %v3943_v4  ;;  %3916 = vmatprep.subr.bf16.mxu1 %v3943_v4  ;;  %v4118_v16 = vld [vmem:[%s5334_s2] ss:$0 sm:$0xff]  ;;  %v3238_v17 = vunpack.c.l.bf16 %v3343_v15  ;;  %v3239_v18 = vunpack.c.h.bf16 %v3343_v15  ;;  %v3952_v33 = vld [vmem:[%s5335_s3 + $0xc8] sm:$0xff]   ;;  %v3242_v37 = vunpack.c.l.bf16 %v3344_v28  ;;  %v3243_v38 = vunpack.c.h.bf16 %v3344_v28  ;;  %vm4166_vm3 = vmand %vm607_vm0, %vm608_vm1 }
  0x13   : > { %v335_v20 = vmul.f32 %v3190_v13, %v4112_v12  ;;  %v336_v21 = vmul.f32 %v3191_v14, %v4112_v12  ;;  %v3953_v34 = vld [vmem:[%s5335_s3 + $0x100] sm:$0xff]   ;;  %v337_v41 = vmul.f32 %v3194_v31, %v4112_v12  ;;  %v338_v42 = vmul.f32 %v3195_v32, %v4112_v12 }
  0x14   : > { %v359_v23 = vmul.f32 %v3238_v17, %v4112_v12  ;;  %v360_v24 = vmul.f32 %v3239_v18, %v4112_v12  ;;  %v361_v44 = vmul.f32 %v3242_v37, %v4112_v12  ;;  %v362_v45 = vmul.f32 %v3243_v38, %v4112_v12  ;;  %v3954_v51 = vld [vmem:[%s5335_s3 + $0xc0] sm:$0xff]  }
  0x15   : > { %3367 = vmatpush3.bf16.msra.mxu0 %v3944_v5  ;;  %3924 = vmatpush3.bf16.msra.mxu1 %v3944_v5  ;;  %v374_v25 = vadd.f32 %v4118_v16, %v335_v20  ;;  %v375_v26 = vadd.f32 %v4118_v16, %v336_v21  ;;  %v376_v48 = vadd.f32 %v4118_v16, %v337_v41  ;;  %v3198_v50 = vunpack.c.l.bf16 %v3333_v46  ;;  %v3345_v20 = vld [vmem:[%s4100_s20 + $0x70] sm:$0xff]  }
  0x16   : > { %3368 = vmatprep.subr.bf16.mxu0 %v3945_v6  ;;  %3917 = vmatprep.subr.bf16.mxu1 %v3945_v6  ;;  %v398_v29 = vadd.f32 %v4118_v16, %v359_v23  ;;  %v399_v30 = vadd.f32 %v4118_v16, %v360_v24  ;;  %v377_v49 = vadd.f32 %v4118_v16, %v338_v42  ;;  %v3199_v1 = vunpack.c.h.bf16 %v3333_v46 }
  0x17   : > { %v406_v35 = vmax.f32 %v374_v25, 0.0  ;;  %v407_v36 = vmax.f32 %v375_v26, 0.0  ;;  %v400_v54 = vadd.f32 %v4118_v16, %v361_v44  ;;  %v401_v55 = vadd.f32 %v4118_v16, %v362_v45  ;;  %v3960_v44 = vld [vmem:[%s5335_s3 + $0xb0] sm:$0xff]  }
  0x18   : > { %v430_v39 = vmax.f32 %v398_v29, 0.0  ;;  %v431_v40 = vmax.f32 %v399_v30, 0.0  ;;  %v408_v60 = vmax.f32 %v376_v48, 0.0  ;;  %v409_v61 = vmax.f32 %v377_v49, 0.0 }
  0x19   : > { %3369 = vmatpush3.bf16.msra.mxu0 %v3946_v7  ;;  %3925 = vmatpush3.bf16.msra.mxu1 %v3946_v7  ;;  %v438_v43 = vpack.c.bf16 %v407_v36, %v406_v35  ;;  %v432_v63 = vmax.f32 %v400_v54, 0.0  ;;  %v433_v0 = vmax.f32 %v401_v55, 0.0  ;;  %v339_v5 = vmul.f32 %v3198_v50, %v4112_v12  ;;  %v3334_v50 = vld [vmem:[%s4100_s20 + $0x18] sm:$0xff]  }
  0x1a   : > { %3370 = vmatprep.subr.bf16.mxu0 %v3947_v8  ;;  %3918 = vmatprep.subr.bf16.mxu1 %v3947_v8  ;;  %v450_v47 = vpack.c.bf16 %v431_v40, %v430_v39  ;;  %v439_v4 = vpack.c.bf16 %v409_v61, %v408_v60  ;;  %v3246_v40 = vunpack.c.l.bf16 %v3345_v20  ;;  %v3247_v61 = vunpack.c.h.bf16 %v3345_v20 }
  0x1b   : > { %v462_v52 = vshrl.u32 %v438_v43, 16  ;;  %v465_v53 = vshll.u32 %v438_v43, 16  ;;  %v451_v8 = vpack.c.bf16 %v433_v0, %v432_v63  ;;  %v378_v32 = vadd.f32 %v4118_v16, %v339_v5 }
  0x1c   : > { %v546_v56 = vshrl.u32 %v450_v47, 16  ;;  %v549_v57 = vshll.u32 %v450_v47, 16  ;;  %v469_v14 = vshrl.u32 %v439_v4, 16  ;;  %v472_v18 = vshll.u32 %v439_v4, 16 }
  0x1d   : > { %3371 = vmatpush3.bf16.msra.mxu0 %v3948_v9  ;;  %3926 = vmatpush3.bf16.msra.mxu1 %v3948_v9  ;;  %v464_v62 = vrot.slane %v462_v52, 7  ;;  %v340_v9 = vmul.f32 %v3199_v1, %v4112_v12  ;;  %v556_v31 = vshll.u32 %v451_v8, 16  ;;  %v410_v45 = vmax.f32 %v378_v32, 0.0  ;;  %v3957_v52 = vld [vmem:[%s5335_s3 + $0x170] sm:$0xff]   ;;  %v3959_v32 = vld [vmem:[%s5335_s3 + $0x160] sm:$0xff]  }
  0x1e   : > { %3372 = vmatprep.subr.bf16.mxu0 %v3949_v10  ;;  %3919 = vmatprep.subr.bf16.mxu1 %v3949_v10  ;;  %v548_v3 = vrot.slane %v546_v56, 7  ;;  %v471_v28 = vrot.slane %v469_v14, 7  ;;  %v363_v0 = vmul.f32 %v3246_v40, %v4112_v12  ;;  %v3202_v1 = vunpack.c.l.bf16 %v3334_v50 }
  0x1f   : > { %v467_v6 = vor.u32 %v465_v53, %v464_v62  ;;  %v4173_v7 = vsel %vm4166_vm3, %v464_v62, 0  ;;  %v379_v36 = vadd.f32 %v4118_v16, %v340_v9  ;;  %v3964_v9 = vld [vmem:[%s5335_s3 + $0xa8] sm:$0xff]  }
  0x20   : > { %v665_v10 = vshll.u32 %v4173_v7, 16  ;;  %v551_v11 = vor.u32 %v549_v57, %v548_v3  ;;  %v4179_v13 = vsel %vm4166_vm3, %v548_v3, 0  ;;  %v4200_v35 = vsel %vm4166_vm3, %v471_v28, 0  ;;  %v3346_v3 = vld [vmem:[%s4100_s20 + $0x78] sm:$0xff]  }
  0x21   : > { %3373 = vmatpush3.bf16.msra.mxu0 %v3950_v19  ;;  %3927 = vmatpush3.bf16.msra.mxu1 %v3950_v19  ;;  %v4185_v15 = vsel %vm4166_vm3, 0, %v467_v6  ;;  %v809_v17 = vshll.u32 %v4179_v13, 16  ;;  %v553_v19 = vshrl.u32 %v451_v8, 16  ;;  %v677_v38 = vshll.u32 %v4200_v35, 16 }
  0x22   : > { %3374 = vmatprep.subr.bf16.mxu0 %v3951_v22  ;;  %3920 = vmatprep.subr.bf16.mxu1 %v3951_v22  ;;  %v658_v21 = vshrl.u32 %v4185_v15, 16  ;;  %v660_v22 = vshll.u32 %v4185_v15, 16  ;;  %v667_v23 = vrot.slane %v665_v10, 1  ;;  %v4193_v24 = vsel %vm4166_vm3, 0, %v551_v11 }
  0x23   : > { %v802_v25 = vshrl.u32 %v4193_v24, 16  ;;  %v804_v26 = vshll.u32 %v4193_v24, 16  ;;  %v811_v27 = vrot.slane %v809_v17, 1  ;;  %v555_v30 = vrot.slane %v553_v19, 7 }
  0x24   : > { %v662_v29 = vrot.slane %v660_v22, 1  ;;  %v679_v49 = vrot.slane %v677_v38, 1  ;;  %v411_v55 = vmax.f32 %v379_v36, 0.0  ;;  %v364_v6 = vmul.f32 %v3247_v61, %v4112_v12 }
  0x25   : > { %3375 = vmatpush3.bf16.msra.mxu0 %v3952_v33  ;;  %3928 = vmatpush3.bf16.msra.mxu1 %v3952_v33  ;;  %v806_v33 = vrot.slane %v804_v26, 1  ;;  %v558_v39 = vor.u32 %v556_v31, %v555_v30  ;;  %v4210_v43 = vsel %vm4166_vm3, %v555_v30, 0  ;;  %v3203_v8 = vunpack.c.h.bf16 %v3334_v50  ;;  %v3335_v26 = vld [vmem:[%s4100_s20 + $0x20] sm:$0xff]  }
  0x26   : > { %3376 = vmatprep.subr.bf16.mxu0 %v3953_v34  ;;  %3921 = vmatprep.subr.bf16.mxu1 %v3953_v34  ;;  %v474_v34 = vor.u32 %v472_v18, %v471_v28  ;;  %v663_v37 = vor.u32 %v662_v29, %v658_v21  ;;  %v821_v54 = vshll.u32 %v4210_v43, 16  ;;  %v440_v63 = vpack.c.bf16 %v411_v55, %v410_v45  ;;  %v3968_v31 = vld [vmem:[%s5335_s3 + $0xa0] sm:$0xff]   ;;  %v3961_v55 = vld [vmem:[%s5335_s3 + $0x158] sm:$0xff]  }
  0x27   : > { %v807_v41 = vor.u32 %v806_v33, %v802_v25  ;;  %v4230_v53 = vsel %vm4166_vm3, 0, %v558_v39  ;;  %v341_v14 = vmul.f32 %v3202_v1, %v4112_v12  ;;  %v403_v19 = vadd.f32 %v4118_v16, %v364_v6 }
  0x28   : > { %v4206_v42 = vsel %vm4166_vm3, 0, %v474_v34  ;;  %v4216_v46 = vsel %vm644_vm2, %v663_v37, %v667_v23  ;;  %v814_v57 = vshrl.u32 %v4230_v53, 16  ;;  %v816_v60 = vshll.u32 %v4230_v53, 16 }
  0x29   : > { %3377 = vmatpush3.bf16.msra.mxu0 %v3954_v51  ;;  %3929 = vmatpush3.bf16.msra.mxu1 %v3954_v51  ;;  %v670_v47 = vshrl.u32 %v4206_v42, 16  ;;  %v672_v48 = vshll.u32 %v4206_v42, 16  ;;  %v4223_v51 = vsel %vm644_vm2, %v807_v41, %v811_v27  ;;  %v823_v62 = vrot.slane %v821_v54, 1 }
  0x2a   : > { %3770 = vmatprep.subr.bf16.mxu1 %v4157_v58  ;;  %3818 = vmatprep.subr.bf16.mxu0 %v4162_v59  ;;  %v818_v5 = vrot.slane %v816_v60, 1  ;;  %v476_v10 = vshrl.u32 %v440_v63, 16  ;;  %v479_v11 = vshll.u32 %v440_v63, 16  ;;  %v342_v20 = vmul.f32 %v3203_v8, %v4112_v12 }
  0x2b   : > { %1242 = vmatprep.mubr.bf16.mxu0 %v4216_v46  ;;  %1338 = vmatprep.mubr.bf16.mxu1 %v4223_v51  ;;  %v674_v56 = vrot.slane %v672_v48, 1  ;;  %v380_v23 = vadd.f32 %v4118_v16, %v341_v14  ;;  %v3250_v25 = vunpack.c.l.bf16 %v3346_v3  ;;  %v435_v28 = vmax.f32 %v403_v19, 0.0  ;;  %v3976_v14 = vld [vmem:[%s5335_s3 + $0x90] sm:$0xff]  }
  0x2c   : > { %1243 = vmatmul.mubr.bf16.vlgmr.msra.gmra.mxu0 %v4185_v15  ;;  %1339 = vmatmul.mubr.bf16.vlgmr.msra.gmra.mxu1 %v4193_v24  ;;  %v819_v18 = vor.u32 %v818_v5, %v814_v57  ;;  %v478_v21 = vrot.slane %v476_v10, 7  ;;  %v381_v29 = vadd.f32 %v4118_v16, %v342_v20  ;;  %v3251_v30 = vunpack.c.h.bf16 %v3346_v3  ;;  %v3962_v5 = vld [vmem:[%s5335_s3 + $0x150] sm:$0xff]  }
  0x2d   : > { %3819 = vmatpush3.bf16.msra.mxu0 %v4162_v59  ;;  %3771 = vmatpush3.bf16.msra.mxu1 %v4157_v58  ;;  %v675_v4 = vor.u32 %v674_v56, %v670_v47  ;;  %v3958_v59 = vld [vmem:[%s5335_s3 + $0x168] sm:$0xff]   ;;  %v402_v58 = vadd.f32 %v4118_v16, %v363_v0  ;;  %v412_v36 = vmax.f32 %v380_v23, 0.0  ;;  %v365_v37 = vmul.f32 %v3250_v25, %v4112_v12  ;;  %v3973_v56 = vld [vmem:[%s5335_s3 + $0x98] sm:$0xff]  }
  0x2e   : > { %3820 = vmatprep.subr.bf16.mxu0 %v3960_v44  ;;  %3772 = vmatprep.subr.bf16.mxu1 %v3957_v52  ;;  %v4260_v27 = vsel %vm644_vm2, %v819_v18, %v823_v62  ;;  %v481_v33 = vor.u32 %v479_v11, %v478_v21  ;;  %v4272_v34 = vsel %vm4166_vm3, %v478_v21, 0  ;;  %v413_v40 = vmax.f32 %v381_v29, 0.0 }
  0x2f   : > { %v4252_v17 = vsel %vm644_vm2, %v675_v4, %v679_v49  ;;  %v434_v22 = vmax.f32 %v402_v58, 0.0  ;;  %1346 = vmatprep.mubr.bf16.mxu1 %v4260_v27  ;;  %v689_v38 = vshll.u32 %v4272_v34, 16  ;;  %v366_v41 = vmul.f32 %v3251_v30, %v4112_v12 }
  0x30   : > { %1250 = vmatprep.mubr.bf16.mxu0 %v4252_v17  ;;  %v404_v45 = vadd.f32 %v4118_v16, %v365_v37  ;;  %v3206_v47 = vunpack.c.l.bf16 %v3335_v26  ;;  %v3207_v48 = vunpack.c.h.bf16 %v3335_v26  ;;  %v441_v60 = vpack.c.bf16 %v413_v40, %v412_v36  ;;  %v3981_v36 = vld [vmem:[%s5335_s3 + $0x88] sm:$0xff]  }
  0x31   : > { %3821 = vmatpush3.bf16.msra.mxu0 %v3960_v44  ;;  %3773 = vmatpush3.bf16.msra.mxu1 %v3957_v52  ;;  %v452_v39 = vpack.c.bf16 %v435_v28, %v434_v22  ;;  %v4281_v44 = vsel %vm4166_vm3, 0, %v481_v33  ;;  %v691_v52 = vrot.slane %v689_v38, 1  ;;  %v405_v61 = vadd.f32 %v4118_v16, %v366_v41  ;;  %v3336_v28 = vld [vmem:[%s4100_s20 + $0x28] sm:$0xff]  }
  0x32   : > { %3822 = vmatprep.subr.bf16.mxu0 %v3964_v9  ;;  %3774 = vmatprep.subr.bf16.mxu1 %v3958_v59  ;;  %v682_v49 = vshrl.u32 %v4281_v44, 16  ;;  %v684_v50 = vshll.u32 %v4281_v44, 16  ;;  %v436_v62 = vmax.f32 %v404_v45, 0.0  ;;  %v343_v1 = vmul.f32 %v3206_v47, %v4112_v12 }
  0x33   : > { %v560_v54 = vshrl.u32 %v452_v39, 16  ;;  %v563_v57 = vshll.u32 %v452_v39, 16  ;;  %v344_v3 = vmul.f32 %v3207_v48, %v4112_v12  ;;  %v893_v4 = vrot.slane %v4200_v35, 1 }
  0x34   : > { %1251 = vmatmul.mubr.bf16.gmra.mxu0 %v4206_v42  ;;  %1347 = vmatmul.mubr.bf16.gmra.mxu1 %v4230_v53  ;;  %v686_v63 = vrot.slane %v684_v50, 1  ;;  %v483_v6 = vshrl.u32 %v441_v60, 16  ;;  %v486_v8 = vshll.u32 %v441_v60, 16  ;;  %v382_v58 = vadd.f32 %v4118_v16, %v343_v1  ;;  %v3984_v1 = vld [vmem:[%s5335_s3 + $0x80] sm:$0xff]  }
  0x35   : > { %3823 = vmatpush3.bf16.msra.mxu0 %v3964_v9  ;;  %3775 = vmatpush3.bf16.msra.mxu1 %v3958_v59  ;;  %v562_v0 = vrot.slane %v560_v54, 7  ;;  %v437_v9 = vmax.f32 %v405_v61, 0.0  ;;  %v383_v21 = vadd.f32 %v4118_v16, %v344_v3  ;;  %v889_v26 = vrot.slane %v4185_v15, 1 }
  0x36   : > { %3824 = vmatprep.subr.bf16.mxu0 %v3968_v31  ;;  %3776 = vmatprep.subr.bf16.mxu1 %v3959_v32  ;;  %v687_v59 = vor.u32 %v686_v63, %v682_v49  ;;  %v485_v19 = vrot.slane %v483_v6, 7  ;;  %v414_v25 = vmax.f32 %v382_v58, 0.0  ;;  %v890_v33 = vrot.slane %v4173_v7, 1 }
  0x37   : > { %v565_v10 = vor.u32 %v563_v57, %v562_v0  ;;  %v4301_v11 = vsel %vm4166_vm3, %v562_v0, 0  ;;  %v453_v20 = vpack.c.bf16 %v437_v9, %v436_v62  ;;  %v415_v40 = vmax.f32 %v383_v21, 0.0 }
  0x38   : > { %v833_v18 = vshll.u32 %v4301_v11, 16  ;;  %v4310_v22 = vsel %vm644_vm2, %v687_v59, %v691_v52  ;;  %v4331_v37 = vsel %vm4166_vm3, %v485_v19, 0  ;;  %v892_v57 = vrot.slane %v4206_v42, 1 }
  0x39   : > { %3825 = vmatpush3.bf16.msra.mxu0 %v3968_v31  ;;  %3777 = vmatpush3.bf16.msra.mxu1 %v3959_v32  ;;  %v4314_v23 = vsel %vm4166_vm3, 0, %v565_v10  ;;  %v488_v31 = vor.u32 %v486_v8, %v485_v19  ;;  %v3963_v32 = vld [vmem:[%s5335_s3 + $0x148] sm:$0xff]   ;;  %v567_v38 = vshrl.u32 %v453_v20, 16  ;;  %v570_v39 = vshll.u32 %v453_v20, 16 }
  0x3a   : > { %3826 = vmatprep.subr.bf16.mxu0 %v3973_v56  ;;  %3778 = vmatprep.subr.bf16.mxu1 %v3961_v55  ;;  %v826_v29 = vshrl.u32 %v4314_v23, 16  ;;  %v828_v30 = vshll.u32 %v4314_v23, 16  ;;  %v835_v45 = vrot.slane %v833_v18, 1  ;;  %v701_v47 = vshll.u32 %v4331_v37, 16 }
  0x3b   : > { %1258 = vmatprep.mubr.bf16.mxu0 %v4310_v22  ;;  %v4335_v7 = vsel %vm4166_vm3, 0, %v488_v31  ;;  %v569_v50 = vrot.slane %v567_v38, 7  ;;  %v442_v52 = vpack.c.bf16 %v415_v40, %v414_v25  ;;  %v3210_v60 = vunpack.c.l.bf16 %v3336_v28 }
  0x3c   : > { %1259 = vmatmul.mubr.bf16.gmra.mxu0 %v4281_v44  ;;  %v830_v41 = vrot.slane %v828_v30, 1  ;;  %v694_v48 = vshrl.u32 %v4335_v7, 16  ;;  %v696_v49 = vshll.u32 %v4335_v7, 16  ;;  %v3211_v58 = vunpack.c.h.bf16 %v3336_v28 }
  0x3d   : > { %3827 = vmatpush3.bf16.msra.mxu0 %v3973_v56  ;;  %3779 = vmatpush3.bf16.msra.mxu1 %v3961_v55  ;;  %v703_v55 = vrot.slane %v701_v47, 1  ;;  %v3965_v56 = vld [vmem:[%s5335_s3 + $0x140] sm:$0xff]   ;;  %v572_v62 = vor.u32 %v570_v39, %v569_v50  ;;  %v4346_v63 = vsel %vm4166_vm3, %v569_v50, 0  ;;  %v490_v0 = vshrl.u32 %v442_v52, 16 }
  0x3e   : > { %3780 = vmatprep.subr.bf16.mxu1 %v3962_v5  ;;  %3828 = vmatprep.subr.bf16.mxu0 %v3976_v14  ;;  %v831_v54 = vor.u32 %v830_v41, %v826_v29  ;;  %v698_v61 = vrot.slane %v696_v49, 1  ;;  %v1006_v6 = vshll.u32 %v4346_v63, 16  ;;  %v493_v8 = vshll.u32 %v442_v52, 16  ;;  %v3988_v29 = vld [vmem:[%s5335_s3 + $0x1f8] sm:$0xff]  }
  0x3f   : > { %v4361_v59 = vsel %vm4166_vm3, 0, %v572_v62  ;;  %v492_v10 = vrot.slane %v490_v0, 7  ;;  %v345_v20 = vmul.f32 %v3210_v60, %v4112_v12  ;;  %v346_v28 = vmul.f32 %v3211_v58, %v4112_v12  ;;  %v3338_v52 = vld [vmem:[%s4100_s20 + $0x38] sm:$0xff]  }
  0x40   : > { %v4352_v3 = vsel %vm644_vm2, %v831_v54, %v835_v45  ;;  %v699_v9 = vor.u32 %v698_v61, %v694_v48  ;;  %v1001_v18 = vshll.u32 %v4361_v59, 16  ;;  %v1008_v19 = vrot.slane %v1006_v6, 1  ;;  %v3337_v45 = vld [vmem:[%s4100_s20 + $0x30] sm:$0xff]  }
  0x41   : > { %3829 = vmatpush3.bf16.msra.mxu0 %v3976_v14  ;;  %3781 = vmatpush3.bf16.msra.mxu1 %v3962_v5  ;;  %5344 = vst [vmem:[#allocation2_spill] sm:$0xff] %v4352_v3  ;;  %v4356_v5 = vsel %vm885_vm4, %v889_v26, %v890_v33  ;;  %v999_v14 = vshrl.u32 %v4361_v59, 16  ;;  %v495_v25 = vor.u32 %v493_v8, %v492_v10  ;;  %v4372_v26 = vsel %vm4166_vm3, %v492_v10, 0 }
  0x42   : > { %3830 = vmatprep.subr.bf16.mxu0 %v3981_v36  ;;  %3782 = vmatprep.subr.bf16.mxu1 %v3963_v32  ;;  %v4368_v21 = vsel %vm644_vm2, %v699_v9, %v703_v55  ;;  %v1003_v30 = vrot.slane %v1001_v18, 1  ;;  %v713_v31 = vshll.u32 %v4372_v26, 16  ;;  %v384_v33 = vadd.f32 %v4118_v16, %v345_v20  ;;  %v4421_v20 = vld [vmem:[%s4100_s20 + $0x48] sm:$0xff]  }
  0x43   : > { %1354 = vmatprep.mubr.bf16.mxu1 %v4352_v3  ;;  %1266 = vmatprep.mubr.bf16.mxu0 %v4368_v21  ;;  %v4388_v38 = vsel %vm4166_vm3, 0, %v495_v25  ;;  %v385_v39 = vadd.f32 %v4118_v16, %v346_v28  ;;  %v896_v40 = vrot.slane %v4272_v34, 1  ;;  %v898_v41 = vrot.slane %v4335_v7, 1 }
  0x44   : > { %1355 = vmatmul.mubr.bf16.gmra.mxu1 %v4314_v23  ;;  %1267 = vmatmul.mubr.bf16.gmra.mxu0 %v4335_v7  ;;  %v1004_v47 = vor.u32 %v1003_v30, %v999_v14  ;;  %v706_v48 = vshrl.u32 %v4388_v38, 16  ;;  %v708_v49 = vshll.u32 %v4388_v38, 16  ;;  %v4399_v50 = vsel %vm885_vm4, %v892_v57, %v893_v4 }
  0x45   : > { %3831 = vmatpush3.bf16.msra.mxu0 %v3981_v36  ;;  %3783 = vmatpush3.bf16.msra.mxu1 %v3963_v32  ;;  %v3966_v32 = vld [vmem:[%s5335_s3 + $0x78] sm:$0xff]   ;;  %v895_v36 = vrot.slane %v4281_v44, 1  ;;  %v715_v54 = vrot.slane %v713_v31, 1  ;;  %v416_v55 = vmax.f32 %v384_v33, 0.0  ;;  %v417_v34 = vmax.f32 %v385_v39, 0.0 }
  0x46   : > { %3832 = vmatprep.subr.bf16.mxu0 %v3984_v1  ;;  %3784 = vmatprep.subr.bf16.mxu1 %v3965_v56  ;;  %v899_v60 = vrot.slane %v4331_v37, 1  ;;  %v4404_v61 = vsel %vm644_vm2, %v1004_v47, %v1008_v19  ;;  %v710_v62 = vrot.slane %v708_v49, 1  ;;  %v3214_v0 = vunpack.c.l.bf16 %v3337_v45 }
  0x47   : > { %5345 = vst [vmem:[#allocation3_spill] sm:$0xff] %v4404_v61  ;;  %v3215_v35 = vunpack.c.h.bf16 %v3337_v45  ;;  %1362 = vmatprep.mubr.bf16.mxu1 %v4404_v61  ;;  %v443_v4 = vpack.c.bf16 %v417_v34, %v416_v55  ;;  %v901_v37 = vrot.slane %v4388_v38, 1  ;;  %v3218_v10 = vunpack.c.l.bf16 %v3338_v52  ;;  %v3967_v45 = vld [vmem:[%s5335_s3 + $0x38] sm:$0xff]   ;;  %v3969_v55 = vld [vmem:[%s5335_s3 + $0x70] sm:$0xff]  }
  0x48   : > { %v4411_v57 = vsel %vm885_vm4, %v898_v41, %v899_v60  ;;  %v711_v6 = vor.u32 %v710_v62, %v706_v48  ;;  %v347_v8 = vmul.f32 %v3214_v0, %v4112_v12  ;;  %v902_v18 = vrot.slane %v4372_v26, 1 }
  0x49   : > { %3833 = vmatpush3.bf16.msra.mxu0 %v3984_v1  ;;  %3785 = vmatpush3.bf16.msra.mxu1 %v3965_v56  ;;  %v4408_v56 = vsel %vm885_vm4, %v895_v36, %v896_v40  ;;  %v3339_v1 = vld [vmem:[%s4100_s20 + $0x40] sm:$0xff]   ;;  %v348_v9 = vmul.f32 %v3215_v35, %v4112_v12  ;;  %v497_v58 = vshrl.u32 %v443_v4, 16  ;;  %v500_v14 = vshll.u32 %v443_v4, 16 }
  0x4a   : > { %3634 = vmatprep.subr.bf16.mxu0 %v3988_v29  ;;  %3498 = vmatprep.subr.bf16.mxu1 %v3966_v32  ;;  %v3219_v19 = vunpack.c.h.bf16 %v3338_v52  ;;  %v4424_v25 = vsel %vm644_vm2, %v711_v6, %v715_v54  ;;  %v386_v28 = vadd.f32 %v4118_v16, %v347_v8  ;;  %v349_v30 = vmul.f32 %v3218_v10, %v4112_v12 }
  0x4b   : > { %v387_v29 = vadd.f32 %v4118_v16, %v348_v9  ;;  %1274 = vmatprep.mubr.bf16.mxu0 %v4424_v25  ;;  %v499_v31 = vrot.slane %v497_v58, 7  ;;  %v3222_v33 = vunpack.c.l.bf16 %v3339_v1  ;;  %v3223_v36 = vunpack.c.h.bf16 %v3339_v1  ;;  %v3970_v58 = vld [vmem:[%s5335_s3 + $0x30] sm:$0xff]  }
  0x4c   : > { %1363 = vmatmul.mubr.bf16.gmra.mxu1 %v4361_v59  ;;  %v350_v32 = vmul.f32 %v3219_v19, %v4112_v12  ;;  %1275 = vmatmul.mubr.bf16.gmra.mxu0 %v4388_v38  ;;  %v418_v26 = vmax.f32 %v386_v28, 0.0  ;;  %v388_v40 = vadd.f32 %v4118_v16, %v349_v30  ;;  %v3226_v41 = vunpack.c.l.bf16 %v4421_v20 }
  0x4d   : > { %3786 = vmatprep.mubr.bf16.mxu1 %v4356_v5  ;;  %v419_v39 = vmax.f32 %v387_v29, 0.0  ;;  %v502_v47 = vor.u32 %v500_v14, %v499_v31  ;;  %v633_v48 = vsel %vm4166_vm3, %v499_v31, 0  ;;  %v351_v52 = vmul.f32 %v3222_v33, %v4112_v12 }
  0x4e   : > { %v389_v49 = vadd.f32 %v4118_v16, %v350_v32  ;;  %v725_v54 = vshll.u32 %v633_v48, 16  ;;  %v905_v60 = vrot.slane %v633_v48, 1  ;;  %v420_v62 = vmax.f32 %v388_v40, 0.0  ;;  %v3971_v32 = vld [vmem:[%s5335_s3 + $0x68] sm:$0xff]  }
  0x4f   : > { %v444_v34 = vpack.c.bf16 %v419_v39, %v418_v26  ;;  %v4446_v0 = vsel %vm4166_vm3, 0, %v502_v47  ;;  %v352_v4 = vmul.f32 %v3223_v36, %v4112_v12  ;;  %v390_v1 = vadd.f32 %v4118_v16, %v351_v52 }
  0x50   : > { %v421_v35 = vmax.f32 %v389_v49, 0.0  ;;  %v718_v6 = vshrl.u32 %v4446_v0, 16  ;;  %v720_v8 = vshll.u32 %v4446_v0, 16  ;;  %v727_v9 = vrot.slane %v725_v54, 1 }
  0x51   : > { %v504_v10 = vshrl.u32 %v444_v34, 16  ;;  %v507_v14 = vshll.u32 %v444_v34, 16  ;;  %v904_v19 = vrot.slane %v4446_v0, 1  ;;  %v391_v29 = vadd.f32 %v4118_v16, %v352_v4 }
  0x52   : > { %v445_v28 = vpack.c.bf16 %v421_v35, %v420_v62  ;;  %v722_v30 = vrot.slane %v720_v8, 1  ;;  %v422_v33 = vmax.f32 %v390_v1, 0.0  ;;  %v3227_v36 = vunpack.c.h.bf16 %v4421_v20  ;;  %v3974_v20 = vld [vmem:[%s5335_s3 + $0x60] sm:$0xff]  }
  0x53   : > { %v506_v31 = vrot.slane %v504_v10, 7  ;;  %v4464_v26 = vsel %vm885_vm4, %v901_v37, %v902_v18  ;;  %v353_v52 = vmul.f32 %v3226_v41, %v4112_v12  ;;  %v3972_v37 = vld [vmem:[%s5335_s3 + $0x28] sm:$0xff]   ;;  %v3975_v8 = vld [vmem:[%s5335_s3 + $0x20] sm:$0xff]   ;;  %v3341_v10 = vld [vmem:[%s4100_s20 + $0x50] sm:$0xff]   ;;  %v1013_v2 = vrot.slane %v4361_v59, 1 }
  0x54   : > { %3787 = vmatmul.mubr.bf16.vlgmr.msra.gmra.mxu1 %v4399_v50  ;;  %v511_v39 = vshrl.u32 %v445_v28, 16  ;;  %v514_v40 = vshll.u32 %v445_v28, 16  ;;  %v723_v47 = vor.u32 %v722_v30, %v718_v6  ;;  %v354_v35 = vmul.f32 %v3227_v36, %v4112_v12  ;;  %v3977_v28 = vld [vmem:[%s5335_s3 + $0x58] sm:$0xff]  }
  0x55   : > { %3499 = vmatpush3.bf16.msra.mxu1 %v3967_v45  ;;  %3790 = vmatprep.mubr.bf16.mxu1 %v4408_v56  ;;  %v423_v45 = vmax.f32 %v391_v29, 0.0  ;;  %v509_v48 = vor.u32 %v507_v14, %v506_v31  ;;  %v634_v49 = vsel %vm4166_vm3, %v506_v31, 0 }
  0x56   : > { %3500 = vmatprep.subr.bf16.mxu1 %v3969_v55  ;;  %v737_v54 = vshll.u32 %v634_v49, 16  ;;  %v4470_v55 = vsel %vm885_vm4, %v904_v19, %v905_v60  ;;  %v513_v18 = vrot.slane %v511_v39, 7  ;;  %v4479_v62 = vsel %vm644_vm2, %v723_v47, %v727_v9 }
  0x57   : > { %v446_v34 = vpack.c.bf16 %v423_v45, %v422_v33  ;;  %v4483_v41 = vsel %vm4166_vm3, 0, %v509_v48  ;;  %v908_v60 = vrot.slane %v634_v49, 1  ;;  %1282 = vmatprep.mubr.bf16.mxu0 %v4479_v62  ;;  %v392_v9 = vadd.f32 %v4118_v16, %v353_v52  ;;  %v4011_v49 = vld [vmem:[%s5334_s2] ss:$0 sm:$0xff] }
  0x58   : > { %v730_v4 = vshrl.u32 %v4483_v41, 16  ;;  %v732_v1 = vshll.u32 %v4483_v41, 16  ;;  %v516_v6 = vor.u32 %v514_v40, %v513_v18  ;;  %1283 = vmatmul.mubr.bf16.gmra.mxu0 %v4446_v0  ;;  %v4498_v12 = vsel %vm4166_vm3, %v513_v18, 0  ;;  %v3342_v40 = vld [vmem:[%s4100_s20 + $0x58] sm:$0xff]  }
  0x59   : > { %3501 = vmatpush3.bf16.msra.mxu1 %v3970_v58  ;;  %v739_v58 = vrot.slane %v737_v54, 1  ;;  %v907_v14 = vrot.slane %v4483_v41, 1  ;;  %v518_v19 = vshrl.u32 %v446_v34, 16  ;;  %v749_v30 = vshll.u32 %v4498_v12, 16 }
  0x5a   : > { %3502 = vmatprep.subr.bf16.mxu1 %v3971_v32  ;;  %v734_v29 = vrot.slane %v732_v1, 1  ;;  %v4507_v16 = vsel %vm4166_vm3, 0, %v516_v6  ;;  %v521_v31 = vshll.u32 %v446_v34, 16  ;;  %v911_v39 = vrot.slane %v4498_v12, 1 }
  0x5b   : > { %v742_v32 = vshrl.u32 %v4507_v16, 16  ;;  %v744_v33 = vshll.u32 %v4507_v16, 16  ;;  %v910_v36 = vrot.slane %v4507_v16, 1  ;;  %v751_v47 = vrot.slane %v749_v30, 1 }
  0x5c   : > { %3791 = vmatmul.mubr.bf16.gmra.mxu1 %v4411_v57  ;;  %v735_v45 = vor.u32 %v734_v29, %v730_v4  ;;  %v520_v48 = vrot.slane %v518_v19, 7  ;;  %v393_v52 = vadd.f32 %v4011_v49, %v354_v35  ;;  %v424_v18 = vmax.f32 %v392_v9, 0.0 }
  0x5d   : > { %3794 = vmatprep.mubr.bf16.mxu1 %v4464_v26  ;;  %3503 = vmatpush3.bf16.msra.mxu1 %v3972_v37  ;;  %v746_v54 = vrot.slane %v744_v33, 1  ;;  %v4519_v37 = vsel %vm885_vm4, %v907_v14, %v908_v60  ;;  %v3230_v34 = vunpack.c.l.bf16 %v3341_v10  ;;  %v3978_v60 = vld [vmem:[%s5335_s3 + $0x18] sm:$0xff]   ;;  %v3231_v9 = vunpack.c.h.bf16 %v3341_v10  ;;  %v4012_v14 = vld [vmem:[%s5333_s1] ss:$0 sm:$0xff] }
  0x5e   : > { %3504 = vmatprep.subr.bf16.mxu1 %v3974_v20  ;;  %v4522_v1 = vsel %vm644_vm2, %v735_v45, %v739_v58  ;;  %v523_v20 = vor.u32 %v521_v31, %v520_v48  ;;  %v636_v4 = vsel %vm4166_vm3, %v520_v48, 0  ;;  %v425_v6 = vmax.f32 %v393_v52, 0.0 }
  0x5f   : > { %1290 = vmatprep.mubr.bf16.mxu0 %v4522_v1  ;;  %v747_v12 = vor.u32 %v746_v54, %v742_v32  ;;  %v761_v19 = vshll.u32 %v636_v4, 16  ;;  %v914_v35 = vrot.slane %v636_v4, 1  ;;  %v355_v29 = vmul.f32 %v4012_v14, %v3230_v34  ;;  %v3980_v4 = vld [vmem:[%s5335_s3 + $0x10] sm:$0xff]  }
  0x60   : > { %v4532_v58 = vsel %vm4166_vm3, 0, %v523_v20  ;;  %v3234_v30 = vunpack.c.l.bf16 %v3342_v40  ;;  %1291 = vmatmul.mubr.bf16.gmra.mxu0 %v4483_v41  ;;  %v356_v54 = vmul.f32 %v4012_v14, %v3231_v9  ;;  %v3235_v20 = vunpack.c.h.bf16 %v3342_v40 }
  0x61   : > { %3505 = vmatpush3.bf16.msra.mxu1 %v3975_v8  ;;  %v447_v8 = vpack.c.bf16 %v425_v6, %v424_v18  ;;  %v4543_v10 = vsel %vm644_vm2, %v747_v12, %v751_v47  ;;  %v754_v31 = vshrl.u32 %v4532_v58, 16  ;;  %v756_v32 = vshll.u32 %v4532_v58, 16 }
  0x62   : > { %3506 = vmatprep.subr.bf16.mxu1 %v3977_v28  ;;  %v3979_v28 = vld [vmem:[%s5335_s3 + $0x50] sm:$0xff]   ;;  %v763_v33 = vrot.slane %v761_v19, 1  ;;  %1298 = vmatprep.mubr.bf16.mxu0 %v4543_v10  ;;  %v913_v45 = vrot.slane %v4532_v58, 1  ;;  %v394_v34 = vadd.f32 %v4011_v49, %v355_v29  ;;  %v357_v47 = vmul.f32 %v4012_v14, %v3234_v30  ;;  %v3982_v19 = vld [vmem:[%s5335_s3 + $0x48] sm:$0xff]  }
  0x63   : > { %v525_v48 = vshrl.u32 %v447_v8, 16  ;;  %v528_v52 = vshll.u32 %v447_v8, 16  ;;  %v758_v18 = vrot.slane %v756_v32, 1  ;;  %v395_v12 = vadd.f32 %v4011_v49, %v356_v54 }
  0x64   : > { %3795 = vmatmul.mubr.bf16.gmra.mxu1 %v4470_v55  ;;  %v426_v3 = vmax.f32 %v394_v34, 0.0  ;;  %v358_v8 = vmul.f32 %v4012_v14, %v3235_v20  ;;  %v396_v9 = vadd.f32 %v4011_v49, %v357_v47  ;;  %v3983_v14 = vld [vmem:[%s5335_s3 + $0x8] sm:$0xff]   ;;  %v3986_v47 = vld [vmem:[%s5335_s3] sm:$0xff]  }
  0x65   : > { %3798 = vmatprep.mubr.bf16.mxu1 %v4519_v37  ;;  %3507 = vmatpush3.bf16.msra.mxu1 %v3978_v60  ;;  %v527_v6 = vrot.slane %v525_v48, 7  ;;  %v759_v61 = vor.u32 %v758_v18, %v754_v31  ;;  %v4557_v60 = vsel %vm885_vm4, %v910_v36, %v911_v39  ;;  %v427_v30 = vmax.f32 %v395_v12, 0.0  ;;  %v4590_v12 = vld [vmem:[%s5335_s3 + $0x238] sm:$0xff]  }
  0x66   : > { %3508 = vmatprep.subr.bf16.mxu1 %v3979_v28  ;;  %v4565_v28 = vsel %vm885_vm4, %v913_v45, %v914_v35  ;;  %v397_v54 = vadd.f32 %v4011_v49, %v358_v8  ;;  %v428_v31 = vmax.f32 %v396_v9, 0.0 }
  0x67   : > { %v530_v40 = vor.u32 %v528_v52, %v527_v6  ;;  %v637_v29 = vsel %vm4166_vm3, %v527_v6, 0  ;;  %v4562_v32 = vsel %vm644_vm2, %v759_v61, %v763_v33  ;;  %v448_v39 = vpack.c.bf16 %v427_v30, %v426_v3  ;;  %v3985_v61 = vld [vmem:[%s5335_s3 + $0x40] sm:$0xff]  }
  0x68   : > { %v773_v48 = vshll.u32 %v637_v29, 16  ;;  %1299 = vmatmul.mubr.bf16.gmra.mxu0 %v4507_v16  ;;  %v917_v35 = vrot.slane %v637_v29, 1  ;;  %v429_v18 = vmax.f32 %v397_v54, 0.0 }
  0x69   : > { %3509 = vmatpush3.bf16.msra.mxu1 %v3980_v4  ;;  %v4572_v36 = vsel %vm4166_vm3, 0, %v530_v40  ;;  %1306 = vmatprep.mubr.bf16.mxu0 %v4562_v32  ;;  %v532_v3 = vshrl.u32 %v448_v39, 16  ;;  %v535_v52 = vshll.u32 %v448_v39, 16 }
  0x6a   : > { %3510 = vmatprep.subr.bf16.mxu1 %v3982_v19  ;;  %v916_v49 = vrot.slane %v4572_v36, 1  ;;  %v766_v33 = vshrl.u32 %v4572_v36, 16  ;;  %v768_v45 = vshll.u32 %v4572_v36, 16  ;;  %v775_v20 = vrot.slane %v773_v48, 1 }
  0x6b   : > { %v534_v4 = vrot.slane %v532_v3, 7  ;;  %v449_v6 = vpack.c.bf16 %v429_v18, %v428_v31  ;;  %v925_v18 = vrot.slane %v4193_v24, 1 }
  0x6c   : > { %3799 = vmatmul.mubr.bf16.gmra.mxu1 %v4557_v60  ;;  %v770_v34 = vrot.slane %v768_v45, 1  ;;  %v4593_v19 = vsel %vm885_vm4, %v916_v49, %v917_v35 }
  0x6d   : > { %3802 = vmatprep.mubr.bf16.mxu1 %v4565_v28  ;;  %3511 = vmatpush3.bf16.msra.mxu1 %v3983_v14  ;;  %v537_v9 = vor.u32 %v535_v52, %v534_v4  ;;  %v638_v40 = vsel %vm4166_vm3, %v534_v4, 0  ;;  %v539_v29 = vshrl.u32 %v449_v6, 16  ;;  %v542_v30 = vshll.u32 %v449_v6, 16 }
  0x6e   : > { %3512 = vmatprep.subr.bf16.mxu1 %v3985_v61  ;;  %v771_v8 = vor.u32 %v770_v34, %v766_v33  ;;  %v920_v54 = vrot.slane %v638_v40, 1  ;;  %v785_v14 = vshll.u32 %v638_v40, 16  ;;  %v4021_v33 = vmov 0  }
  0x6f   : > { %v4602_v39 = vsel %vm4166_vm3, 0, %v537_v9  ;;  %v541_v31 = vrot.slane %v539_v29, 7  ;;  %v457_v45 = vrot.slane %v4021_v33, 7  ;;  %v926_v34 = vrot.slane %v4179_v13, 1 }
  0x70   : > { %v4598_v48 = vsel %vm644_vm2, %v771_v8, %v775_v20  ;;  %1307 = vmatmul.mubr.bf16.gmra.mxu0 %v4532_v58  ;;  %v919_v61 = vrot.slane %v4602_v39, 1  ;;  %v778_v49 = vshrl.u32 %v4602_v39, 16  ;;  %v780_v35 = vshll.u32 %v4602_v39, 16 }
  0x71   : > { %3513 = vmatpush3.bf16.msra.mxu1 %v3986_v47  ;;  %1314 = vmatprep.mubr.bf16.mxu0 %v4598_v48  ;;  %v544_v3 = vor.u32 %v542_v30, %v541_v31  ;;  %v639_v52 = vsel %vm4166_vm3, %v541_v31, 0  ;;  %v787_v6 = vrot.slane %v785_v14, 1  ;;  %v4626_v30 = vsel %vm885_vm4, %v925_v18, %v926_v34 }
  0x72   : > { %3866 = vmatprep.subr.bf16.mxu1 %v4590_v12  ;;  %v4616_v20 = vsel %vm885_vm4, %v919_v61, %v920_v54  ;;  %v923_v47 = vrot.slane %v639_v52, 1  ;;  %v782_v4 = vrot.slane %v780_v35, 1  ;;  %v797_v13 = vshll.u32 %v639_v52, 16 }
  0x73   : > { %v4621_v8 = vsel %vm4166_vm3, 0, %v544_v3  ;;  %v4630_v54 = vsel %vm4166_vm3, 0, %v457_v45  ;;  %v929_v33 = vrot.slane %v4210_v43, 1  ;;  %v931_v34 = vrot.slane %v4314_v23, 1 }
  0x74   : > { %3803 = vmatmul.mubr.bf16.gmra.mxu1 %v4593_v19  ;;  %v922_v9 = vrot.slane %v4621_v8, 1  ;;  %v783_v40 = vor.u32 %v782_v4, %v778_v49  ;;  %v792_v29 = vshll.u32 %v4621_v8, 16  ;;  %v790_v61 = vshrl.u32 %v4621_v8, 16 }
  0x75   : > { %3806 = vmatprep.mubr.bf16.mxu1 %v4616_v20  ;;  %v928_v49 = vrot.slane %v4230_v53, 1  ;;  %v648_v3 = vshll.u32 %v4630_v54, 16  ;;  %v799_v18 = vrot.slane %v797_v13, 1  ;;  %v627_v4 = vsel %vm4166_vm3, %v457_v45, 0 }
  0x76   : > { %v4633_v14 = vsel %vm885_vm4, %v922_v9, %v923_v47  ;;  %v4636_v31 = vsel %vm644_vm2, %v783_v40, %v787_v6  ;;  %v794_v35 = vrot.slane %v792_v29, 1  ;;  %v932_v47 = vrot.slane %v4301_v11, 1 }
  0x77   : > { %v4651_v6 = vsel %vm885_vm4, %v928_v49, %v929_v33  ;;  %v646_v9 = vshrl.u32 %v4630_v54, 16  ;;  %v650_v29 = vrot.slane %v648_v3, 1  ;;  %v653_v13 = vshll.u32 %v627_v4, 16 }
  0x78   : > { %1315 = vmatmul.mubr.bf16.gmra.mxu0 %v4572_v36  ;;  %v795_v52 = vor.u32 %v794_v35, %v790_v61  ;;  %v4658_v43 = vsel %vm885_vm4, %v931_v34, %v932_v47  ;;  %v1014_v11 = vrot.slane %v4346_v63, 1  ;;  %v886_v35 = vrot.slane %v4630_v54, 1  ;;  %v3989_v63 = vld [vmem:[%s5335_s3 + $0x1b8] sm:$0xff]   ;;  %v3992_v34 = vld [vmem:[%s5335_s3 + $0x230] sm:$0xff]  }
  0x79   : > { %1322 = vmatprep.mubr.bf16.mxu0 %v4636_v31  ;;  %v651_v45 = vor.u32 %v650_v29, %v646_v9  ;;  %v655_v61 = vrot.slane %v653_v13, 1  ;;  %v887_v49 = vrot.slane %v627_v4, 1  ;;  %v3991_v47 = vld [vmem:[%s5335_s3 + $0x1b0] sm:$0xff]   ;;  %v3993_v4 = vld [vmem:[%s5335_s3 + $0x1e8] sm:$0xff]   ;;  %v3996_v29 = vld [vmem:[%s5335_s3 + $0x1a0] sm:$0xff]  }
  0x7a   : > { %v4655_v40 = vsel %vm644_vm2, %v795_v52, %v799_v18  ;;  %v4668_v33 = vsel %vm885_vm4, %v1013_v2, %v1014_v11  ;;  %v3990_v18 = vld [vmem:[%s5335_s3 + $0x1f0] sm:$0xff]   ;;  %v3997_v9 = vld [vmem:[%s5335_s3 + $0x228] sm:$0xff]   ;;  %v3998_v13 = vld [vmem:[%s5335_s3 + $0x1d8] sm:$0xff]  }
  0x7b   : > { %v4671_v3 = vsel %vm644_vm2, %v651_v45, %v655_v61  ;;  %v4674_v52 = vsel %vm885_vm4, %v886_v35, %v887_v49  ;;  %v3999_v2 = vld [vmem:[%s5335_s3 + $0x198] sm:$0xff]   ;;  %v4000_v11 = vld [vmem:[%s5335_s3 + $0x1d0] sm:$0xff]   ;;  %v4003_v35 = vld [vmem:[%s5335_s3 + $0x1c8] sm:$0xff]  }
  0x7c   : > { %3807 = vmatmul.mubr.bf16.gmra.mxu1 %v4633_v14  ;;  %v4008_v45 = vld [vmem:[%s5335_s3 + $0x210] sm:$0xff]   ;;  %v4009_v49 = vld [vmem:[%s5335_s3 + $0x208] sm:$0xff]  }
  0x7d   : > { %3810 = vmatprep.mubr.bf16.mxu1 %v4626_v30  ;;  %v4001_v61 = vld [vmem:[%s5335_s3 + $0x190] sm:$0xff]  }
  0x80   : > { %1323 = vmatmul.mubr.bf16.gmra.mxu0 %v4602_v39 }
  0x81   : > { %1330 = vmatprep.mubr.bf16.mxu0 %v4655_v40 }
  0x84   : > { %3811 = vmatmul.mubr.bf16.gmra.mxu1 %v4651_v6 }
  0x85   : > { %3814 = vmatprep.mubr.bf16.mxu1 %v4658_v43 }
  0x88   : > { %1331 = vmatmul.mubr.bf16.gmra.mxu0 %v4621_v8 }
  0x89   : > { %3834 = vmatprep.mubr.bf16.mxu0 %v4674_v52 }
  0x8c   : > { %3815 = vmatmul.mubr.bf16.gmra.mxu1 %v4668_v33 }
  0x8d   : > { %1708 = vmatprep.mubr.bf16.mxu1 %v4671_v3 }
  0x90   : > { %3835 = vmatmul.mubr.bf16.vlgmr.msra.gmra.mxu0 %v4356_v5  ;;  %v3994_v5 = vld [vmem:[%s5335_s3 + $0x1a8] sm:$0xff]  }
  0x91   : > { %3635 = vmatpush3.bf16.msra.mxu0 %v3989_v63  ;;  %3838 = vmatprep.mubr.bf16.mxu0 %v4399_v50  ;;  %v4004_v63 = vld [vmem:[%s5335_s3 + $0x188] sm:$0xff]  }
  0x92   : > { %3636 = vmatprep.subr.bf16.mxu0 %v3990_v18  ;;  %v4005_v18 = vld [vmem:[%s5335_s3 + $0x1c0] sm:$0xff]  }
  0x94   : > { %1709 = vmatmul.mubr.bf16.vlgmr.msra.gmra.mxu1 %v4630_v54 }
  0x95   : > { %3867 = vmatpush3.bf16.msra.mxu1 %v4590_v12  ;;  %1716 = vmatprep.mubr.bf16.mxu1 %v4216_v46  ;;  %v3995_v46 = vld [vmem:[%s5335_s3 + $0x1e0] sm:$0xff]  }
  0x96   : > { %3868 = vmatprep.subr.bf16.mxu1 %v3992_v34  ;;  %3637 = vmatpush3.bf16.msra.mxu0 %v3991_v47  ;;  %v4002_v12 = vld [vmem:[%s5335_s3 + $0x220] sm:$0xff]  }
  0x97   : > { %3638 = vmatprep.subr.bf16.mxu0 %v3993_v4  ;;  %v4006_v47 = vld [vmem:[%s5335_s3 + $0x180] sm:$0xff]  }
  0x98   : > { %3839 = vmatmul.mubr.bf16.gmra.mxu0 %v4408_v56 }
  0x99   : > { %3869 = vmatpush3.bf16.msra.mxu1 %v3992_v34  ;;  %3842 = vmatprep.mubr.bf16.mxu0 %v4411_v57  ;;  %v4010_v34 = vld [vmem:[%s5335_s3 + $0x200] sm:$0xff]  }
  0x9a   : > { %3870 = vmatprep.subr.bf16.mxu1 %v3997_v9  ;;  %3639 = vmatpush3.bf16.msra.mxu0 %v3994_v5 }
  0x9b   : > { %3640 = vmatprep.subr.bf16.mxu0 %v3995_v46 }
  0x9c   : > { %1717 = vmatmul.mubr.bf16.gmra.mxu1 %v4185_v15  ;;  %v4007_v15 = vld [vmem:[%s5335_s3 + $0x218] sm:$0xff]  }
  0x9d   : > { %1724 = vmatprep.mubr.bf16.mxu1 %v4252_v17  ;;  %3871 = vmatpush3.bf16.msra.mxu1 %v3997_v9 }
  0x9e   : > { %3872 = vmatprep.subr.bf16.mxu1 %v4002_v12  ;;  %3641 = vmatpush3.bf16.msra.mxu0 %v3996_v29 }
  0x9f   : > { %3642 = vmatprep.subr.bf16.mxu0 %v3998_v13 }
  0xa0   : > { %3843 = vmatmul.mubr.bf16.gmra.mxu0 %v4464_v26 }
  0xa1   : > { %3873 = vmatpush3.bf16.msra.mxu1 %v4002_v12  ;;  %3846 = vmatprep.mubr.bf16.mxu0 %v4470_v55 }
  0xa2   : > { %3874 = vmatprep.subr.bf16.mxu1 %v4007_v15  ;;  %3643 = vmatpush3.bf16.msra.mxu0 %v3999_v2 }
  0xa3   : > { %3644 = vmatprep.subr.bf16.mxu0 %v4000_v11 }
  0xa4   : > { %1725 = vmatmul.mubr.bf16.gmra.mxu1 %v4206_v42 }
  0xa5   : > { %1732 = vmatprep.mubr.bf16.mxu1 %v4310_v22  ;;  %3875 = vmatpush3.bf16.msra.mxu1 %v4007_v15 }
  0xa6   : > { %3876 = vmatprep.subr.bf16.mxu1 %v4008_v45  ;;  %3645 = vmatpush3.bf16.msra.mxu0 %v4001_v61 }
  0xa7   : > { %3646 = vmatprep.subr.bf16.mxu0 %v4003_v35 }
  0xa8   : > { %3847 = vmatmul.mubr.bf16.gmra.mxu0 %v4519_v37 }
  0xa9   : > { %3877 = vmatpush3.bf16.msra.mxu1 %v4008_v45  ;;  %3850 = vmatprep.mubr.bf16.mxu0 %v4557_v60 }
  0xaa   : > { %3878 = vmatprep.subr.bf16.mxu1 %v4009_v49  ;;  %3647 = vmatpush3.bf16.msra.mxu0 %v4004_v63 }
  0xab   : > { %3648 = vmatprep.subr.bf16.mxu0 %v4005_v18 }
  0xac   : > { %1733 = vmatmul.mubr.bf16.gmra.mxu1 %v4281_v44 }
  0xad   : > { %1740 = vmatprep.mubr.bf16.mxu1 %v4368_v21  ;;  %3879 = vmatpush3.bf16.msra.mxu1 %v4009_v49 }
  0xae   : > { %3880 = vmatprep.subr.bf16.mxu1 %v4010_v34  ;;  %3649 = vmatpush3.bf16.msra.mxu0 %v4006_v47 }
  0xb0   : > { %3851 = vmatmul.mubr.bf16.gmra.mxu0 %v4565_v28 }
  0xb1   : > { %3881 = vmatpush3.bf16.msra.mxu1 %v4010_v34  ;;  %3854 = vmatprep.mubr.bf16.mxu0 %v4593_v19 }
  0xb4   : > { %1741 = vmatmul.mubr.bf16.gmra.mxu1 %v4335_v7 }
  0xb5   : > { %1748 = vmatprep.mubr.bf16.mxu1 %v4424_v25 }
  0xb8   : > { %3855 = vmatmul.mubr.bf16.gmra.mxu0 %v4616_v20 }
  0xb9   : > { %3858 = vmatprep.mubr.bf16.mxu0 %v4633_v14 }
  0xbc   : > { %1749 = vmatmul.mubr.bf16.gmra.mxu1 %v4388_v38 }
  0xbd   : > { %1756 = vmatprep.mubr.bf16.mxu1 %v4479_v62 }
  0xc0   : > { %3859 = vmatmul.mubr.bf16.gmra.mxu0 %v4626_v30 }
  0xc1   : > { %3862 = vmatprep.mubr.bf16.mxu0 %v4651_v6 }
  0xc4   : > { %1757 = vmatmul.mubr.bf16.gmra.mxu1 %v4446_v0 }
  0xc5   : > { %1764 = vmatprep.mubr.bf16.mxu1 %v4522_v1 }
  0xc8   : > { %3863 = vmatmul.mubr.bf16.gmra.mxu0 %v4658_v43 }
  0xc9   : > { %2223 = vmatprep.mubr.bf16.mxu0 %v4252_v17 }
  0xcc   : > { %1765 = vmatmul.mubr.bf16.gmra.mxu1 %v4483_v41 }
  0xcd   : > { %1772 = vmatprep.mubr.bf16.mxu1 %v4543_v10 }
  0xd0   : > { %2224 = vmatmul.mubr.bf16.vlgmr.msra.gmra.mxu0 %v4206_v42 }
  0xd1   : > { %2231 = vmatprep.mubr.bf16.mxu0 %v4310_v22 }
  0xd4   : > { %1773 = vmatmul.mubr.bf16.gmra.mxu1 %v4507_v16 }
  0xd5   : > { %1780 = vmatprep.mubr.bf16.mxu1 %v4562_v32 }
  0xd8   : > { %2232 = vmatmul.mubr.bf16.gmra.mxu0 %v4281_v44 }
  0xd9   : > { %2239 = vmatprep.mubr.bf16.mxu0 %v4368_v21 }
  0xdc   : > { %1781 = vmatmul.mubr.bf16.gmra.mxu1 %v4532_v58 }
  0xdd   : > { %1788 = vmatprep.mubr.bf16.mxu1 %v4598_v48 }
  0xe0   : > { %2240 = vmatmul.mubr.bf16.gmra.mxu0 %v4335_v7 }
  0xe1   : > { %2247 = vmatprep.mubr.bf16.mxu0 %v4424_v25 }
  0xe4   : > { %1789 = vmatmul.mubr.bf16.gmra.mxu1 %v4572_v36 }
  0xe5   : > { %1796 = vmatprep.mubr.bf16.mxu1 %v4636_v31 }
  0xe8   : > { %2248 = vmatmul.mubr.bf16.gmra.mxu0 %v4388_v38 }
  0xe9   : > { %2255 = vmatprep.mubr.bf16.mxu0 %v4479_v62 }
  0xec   : > { %v3378_v42 = vpop.f32.mrf.mxu0  ;;  %1797 = vmatmul.mubr.bf16.gmra.mxu1 %v4602_v39  ;;  %v3450_v17 = vpop.f32.mrf.mxu1 }
  0xed   : > { %1804 = vmatprep.mubr.bf16.mxu1 %v4655_v40 }
  0xee   : > { %v3379_v44 = vpop.f32.mrf.mxu0  ;;  %v3451_v21 = vpop.f32.mrf.mxu1 }
  0xef   : > { %v4795_v22 = vadd.f32 %v3379_v44, %v3378_v42  ;;  %v4797_v4 = vadd.f32 %v3451_v21, %v3450_v17  ;;  %v5346_v44 = vld [vmem:[#allocation2_spill] sm:$0xff] }
  0xf0   : > { %v3381_v7 = vpop.f32.mrf.mxu0  ;;  %v3453_v9 = vpop.f32.mrf.mxu1  ;;  %2256 = vmatmul.mubr.bf16.gmra.mxu0 %v4446_v0 }
  0xf1   : > { %2263 = vmatprep.mubr.bf16.mxu0 %v4522_v1 }
  0xf2   : > { %v3382_v5 = vpop.f32.mrf.mxu0  ;;  %v3454_v46 = vpop.f32.mrf.mxu1 }
  0xf3   : > { %v4799_v25 = vadd.f32 %v3382_v5, %v3381_v7  ;;  %v4801_v12 = vadd.f32 %v3454_v46, %v3453_v9 }
  0xf4   : > { %v3384_v38 = vpop.f32.mrf.mxu0  ;;  %1805 = vmatmul.mubr.bf16.gmra.mxu1 %v4621_v8  ;;  %v3456_v62 = vpop.f32.mrf.mxu1 }
  0xf5   : > { %1812 = vmatprep.mubr.bf16.mxu1 %v4223_v51 }
  0xf6   : > { %v3385_v29 = vpop.f32.mrf.mxu0  ;;  %v3457_v15 = vpop.f32.mrf.mxu1 }
  0xf7   : > { %v3386_v13 = vadd.f32 %v3385_v29, %v3384_v38  ;;  %v4807_v2 = vadd.f32 %v3457_v15, %v3456_v62 }
  0xf8   : > { %v3387_v11 = vpop.f32.mrf.mxu0  ;;  %v3459_v45 = vpop.f32.mrf.mxu1  ;;  %2264 = vmatmul.mubr.bf16.gmra.mxu0 %v4483_v41 }
  0xf9   : > { %2271 = vmatprep.mubr.bf16.mxu0 %v4543_v10 }
  0xfa   : > { %v3388_v61 = vpop.f32.mrf.mxu0  ;;  %v3460_v49 = vpop.f32.mrf.mxu1 }
  0xfb   : > { %v3389_v35 = vadd.f32 %v3388_v61, %v3387_v11  ;;  %v4809_v63 = vadd.f32 %v3460_v49, %v3459_v45 }
  0xfc   : > { %1813 = vmatmul.mubr.bf16.gmra.mxu1 %v4193_v24  ;;  %v3390_v0 = vpop.f32.mrf.mxu0 }
  0xfd   : > { %1820 = vmatprep.mubr.bf16.mxu1 %v4260_v27 }
  0xfe   : > { %v3391_v1 = vpop.f32.mrf.mxu0 }
  0xff   : > { %v3392_v18 = vadd.f32 %v3391_v1, %v3390_v0 }
 0x100   : > { %v3393_v34 = vpop.f32.mrf.mxu0  ;;  %2272 = vmatmul.mubr.bf16.gmra.mxu0 %v4507_v16 }
 0x101   : > { %2279 = vmatprep.mubr.bf16.mxu0 %v4562_v32 }
 0x102   : > { %v3394_v47 = vpop.f32.mrf.mxu0 }
 0x103   : > { %v3395_v17 = vadd.f32 %v3394_v47, %v3393_v34 }
 0x104   : > { %v3462_v42 = vpop.f32.mrf.mxu1  ;;  %1821 = vmatmul.mubr.bf16.gmra.mxu1 %v4230_v53  ;;  %v3396_v7 = vpop.f32.mrf.mxu0 }
 0x105   : > { %1828 = vmatprep.mubr.bf16.mxu1 %v5346_v44 }
 0x106   : > { %v3463_v41 = vpop.f32.mrf.mxu1  ;;  %v3397_v9 = vpop.f32.mrf.mxu0 }
 0x107   : > { %v4819_v21 = vadd.f32 %v3463_v41, %v3462_v42  ;;  %v3398_v46 = vadd.f32 %v3397_v9, %v3396_v7 }
 0x108   : > { %v3465_v10 = vpop.f32.mrf.mxu1  ;;  %v3399_v62 = vpop.f32.mrf.mxu0  ;;  %2280 = vmatmul.mubr.bf16.gmra.mxu0 %v4532_v58 }
 0x109   : > { %2287 = vmatprep.mubr.bf16.mxu0 %v4598_v48 }
 0x10a   : > { %v3466_v5 = vpop.f32.mrf.mxu1  ;;  %v3400_v16 = vpop.f32.mrf.mxu0 }
 0x10b   : > { %v4821_v38 = vadd.f32 %v3466_v5, %v3465_v10  ;;  %v3401_v15 = vadd.f32 %v3400_v16, %v3399_v62 }
 0x10c   : > { %v3468_v29 = vpop.f32.mrf.mxu1  ;;  %1829 = vmatmul.mubr.bf16.gmra.mxu1 %v4314_v23  ;;  %v3402_v61 = vpop.f32.mrf.mxu0 }
 0x10d   : > { %3882 = vmatprep.mubr.bf16.mxu1 %v4399_v50 }
 0x10e   : > { %v3469_v32 = vpop.f32.mrf.mxu1  ;;  %v3403_v0 = vpop.f32.mrf.mxu0 }
 0x10f   : > { %v4827_v11 = vadd.f32 %v3469_v32, %v3468_v29  ;;  %v3404_v34 = vadd.f32 %v3403_v0, %v3402_v61 }
 0x110   : > { %v3471_v45 = vpop.f32.mrf.mxu1  ;;  %2288 = vmatmul.mubr.bf16.gmra.mxu0 %v4572_v36  ;;  %v3405_v58 = vpop.f32.mrf.mxu0 }
 0x111   : > { %2295 = vmatprep.mubr.bf16.mxu0 %v4636_v31 }
 0x112   : > { %v3472_v49 = vpop.f32.mrf.mxu1  ;;  %v3406_v42 = vpop.f32.mrf.mxu0 }
 0x113   : > { %v4829_v1 = vadd.f32 %v3472_v49, %v3471_v45  ;;  %v3407_v7 = vadd.f32 %v3406_v42, %v3405_v58 }
 0x114   : > { %v3788_v47 = vpop.f32.mrf.mxu1  ;;  %3883 = vmatmul.mubr.bf16.vlgmr.msra.gmra.mxu1 %v4408_v56 }
 0x115   : > { %v4833_v48 = vadd.f32 %v3788_v47, %v3386_v13  ;;  %3886 = vmatprep.mubr.bf16.mxu1 %v4411_v57 }
 0x116   : > { %v1405_v50 = vpop.f32.mrf.mxu1 }
 0x117   : > { %v4838_v41 = vadd.f32 %v4795_v22, %v1405_v50 }
 0x118   : > { %v3789_v10 = vpop.f32.mrf.mxu1  ;;  %v3408_v56 = vpop.f32.mrf.mxu0  ;;  %2296 = vmatmul.mubr.bf16.gmra.mxu0 %v4602_v39 }
 0x119   : > { %v4840_v9 = vadd.f32 %v3789_v10, %v3389_v35  ;;  %2303 = vmatprep.mubr.bf16.mxu0 %v4655_v40 }
 0x11a   : > { %v1408_v5 = vpop.f32.mrf.mxu1  ;;  %v3409_v31 = vpop.f32.mrf.mxu0 }
 0x11b   : > { %v4843_v36 = vadd.f32 %v4799_v25, %v1408_v5  ;;  %v3410_v35 = vadd.f32 %v3409_v31, %v3408_v56 }
 0x11c   : > { %v3792_v13 = vpop.f32.mrf.mxu1  ;;  %3887 = vmatmul.mubr.bf16.gmra.mxu1 %v4464_v26  ;;  %v3411_v29 = vpop.f32.mrf.mxu0 }
 0x11d   : > { %v4847_v57 = vadd.f32 %v3792_v13, %v3398_v46  ;;  %3890 = vmatprep.mubr.bf16.mxu1 %v4470_v55 }
 0x11e   : > { %v1421_v22 = vpop.f32.mrf.mxu1  ;;  %v3412_v32 = vpop.f32.mrf.mxu0 }
 0x11f   : > { %v4851_v62 = vadd.f32 %v3392_v18, %v1421_v22  ;;  %v3413_v39 = vadd.f32 %v3412_v32, %v3411_v29 }
 0x120   : > { %v3793_v25 = vpop.f32.mrf.mxu1  ;;  %v3414_v26 = vpop.f32.mrf.mxu0  ;;  %2304 = vmatmul.mubr.bf16.gmra.mxu0 %v4621_v8 }
 0x121   : > { %v4853_v16 = vadd.f32 %v3793_v25, %v3401_v15  ;;  %2311 = vmatprep.mubr.bf16.mxu0 %v4223_v51 }
 0x122   : > { %v1424_v45 = vpop.f32.mrf.mxu1  ;;  %v3415_v40 = vpop.f32.mrf.mxu0 }
 0x123   : > { %v4855_v61 = vadd.f32 %v3395_v17, %v1424_v45  ;;  %v3416_v15 = vadd.f32 %v3415_v40, %v3414_v26 }
 0x124   : > { %v3796_v46 = vpop.f32.mrf.mxu1  ;;  %3891 = vmatmul.mubr.bf16.gmra.mxu1 %v4519_v37  ;;  %v3417_v0 = vpop.f32.mrf.mxu0 }
 0x125   : > { %v4859_v55 = vadd.f32 %v3796_v46, %v3410_v35  ;;  %3894 = vmatprep.mubr.bf16.mxu1 %v4557_v60 }
 0x126   : > { %v1437_v18 = vpop.f32.mrf.mxu1  ;;  %v3418_v58 = vpop.f32.mrf.mxu0 }
 0x127   : > { %v4863_v49 = vadd.f32 %v3404_v34, %v1437_v18  ;;  %v3419_v8 = vadd.f32 %v3418_v58, %v3417_v0 }
 0x128   : > { %v3797_v17 = vpop.f32.mrf.mxu1  ;;  %v3420_v37 = vpop.f32.mrf.mxu0  ;;  %2312 = vmatmul.mubr.bf16.gmra.mxu0 %v4193_v24 }
 0x129   : > { %v4865_v47 = vadd.f32 %v3797_v17, %v3413_v39  ;;  %2319 = vmatprep.mubr.bf16.mxu0 %v4260_v27 }
 0x12a   : > { %v1440_v50 = vpop.f32.mrf.mxu1  ;;  %v3421_v51 = vpop.f32.mrf.mxu0 }
 0x12b   : > { %v4867_v42 = vadd.f32 %v3407_v7, %v1440_v50  ;;  %v3422_v34 = vadd.f32 %v3421_v51, %v3420_v37 }
 0x12c   : > { %v3800_v10 = vpop.f32.mrf.mxu1  ;;  %3895 = vmatmul.mubr.bf16.gmra.mxu1 %v4565_v28  ;;  %v3423_v56 = vpop.f32.mrf.mxu0 }
 0x12d   : > { %3898 = vmatprep.mubr.bf16.mxu1 %v4593_v19  ;;  %v4875_v31 = vadd.f32 %v3800_v10, %v3422_v34 }
 0x12e   : > { %v1453_v60 = vpop.f32.mrf.mxu1  ;;  %v3424_v7 = vpop.f32.mrf.mxu0 }
 0x12f   : > { %v4873_v5 = vadd.f32 %v3416_v15, %v1453_v60  ;;  %v3425_v35 = vadd.f32 %v3424_v7, %v3423_v56 }
 0x130   : > { %v3801_v13 = vpop.f32.mrf.mxu1  ;;  %v3426_v24 = vpop.f32.mrf.mxu0  ;;  %2320 = vmatmul.mubr.bf16.gmra.mxu0 %v4230_v53 }
 0x131   : > { %v4881_v27 = vadd.f32 %v3801_v13, %v3425_v35  ;;  %2327 = vmatprep.mubr.bf16.mxu0 %v5346_v44  ;;  %v5347_v44 = vld [vmem:[#allocation3_spill] sm:$0xff] }
 0x132   : > { %v1456_v22 = vpop.f32.mrf.mxu1  ;;  %v3427_v19 = vpop.f32.mrf.mxu0 }
 0x133   : > { %v4877_v29 = vadd.f32 %v3419_v8, %v1456_v22  ;;  %v3428_v32 = vadd.f32 %v3427_v19, %v3426_v24 }
 0x134   : > { %v3804_v28 = vpop.f32.mrf.mxu1  ;;  %3899 = vmatmul.mubr.bf16.gmra.mxu1 %v4616_v20  ;;  %v3429_v45 = vpop.f32.mrf.mxu0 }
 0x135   : > { %3902 = vmatprep.mubr.bf16.mxu1 %v4633_v14 }
 0x136   : > { %v1469_v25 = vpop.f32.mrf.mxu1  ;;  %v3430_v46 = vpop.f32.mrf.mxu0 }
 0x137   : > { %v4885_v26 = vadd.f32 %v3428_v32, %v1469_v25  ;;  %v3431_v18 = vadd.f32 %v3430_v46, %v3429_v45 }
 0x138   : > { %v3805_v39 = vpop.f32.mrf.mxu1  ;;  %v3432_v15 = vpop.f32.mrf.mxu0  ;;  %2328 = vmatmul.mubr.bf16.gmra.mxu0 %v4314_v23 }
 0x139   : > { %2335 = vmatprep.mubr.bf16.mxu0 %v5347_v44 }
 0x13a   : > { %v1472_v40 = vpop.f32.mrf.mxu1  ;;  %v3433_v14 = vpop.f32.mrf.mxu0 }
 0x13b   : > { %v4889_v20 = vadd.f32 %v3431_v18, %v1472_v40  ;;  %v3434_v17 = vadd.f32 %v3433_v14, %v3432_v15 }
 0x13c   : > { %v3808_v53 = vpop.f32.mrf.mxu1  ;;  %3903 = vmatmul.mubr.bf16.gmra.mxu1 %v4626_v30  ;;  %v3435_v58 = vpop.f32.mrf.mxu0 }
 0x13d   : > { %3906 = vmatprep.mubr.bf16.mxu1 %v4651_v6  ;;  %v4893_v8 = vadd.f32 %v3804_v28, %v3434_v17 }
 0x13e   : > { %v1485_v0 = vpop.f32.mrf.mxu1  ;;  %v3436_v37 = vpop.f32.mrf.mxu0 }
 0x13f   : > { %v3437_v51 = vadd.f32 %v3436_v37, %v3435_v58 }
 0x140   : > { %v3809_v50 = vpop.f32.mrf.mxu1  ;;  %v3438_v60 = vpop.f32.mrf.mxu0  ;;  %2336 = vmatmul.mubr.bf16.gmra.mxu0 %v4361_v59 }
 0x141   : > { %v4897_v30 = vadd.f32 %v3805_v39, %v3437_v51  ;;  %2343 = vmatprep.mubr.bf16.mxu0 %v4671_v3 }
 0x142   : > { %v1488_v10 = vpop.f32.mrf.mxu1  ;;  %v3439_v34 = vpop.f32.mrf.mxu0 }
 0x143   : > { %v3440_v13 = vadd.f32 %v3439_v34, %v3438_v60 }
 0x144   : > { %v3812_v23 = vpop.f32.mrf.mxu1  ;;  %3907 = vmatmul.mubr.bf16.gmra.mxu1 %v4658_v43  ;;  %v3441_v22 = vpop.f32.mrf.mxu0 }
 0x145   : > { %v4900_v6 = vadd.f32 %v3812_v23, %v4807_v2  ;;  %3910 = vmatprep.mubr.bf16.mxu1 %v4668_v33  ;;  %v4907_v59 = vadd.f32 %v3440_v13, %v1485_v0 }
 0x146   : > { %v1501_v56 = vpop.f32.mrf.mxu1  ;;  %v3442_v24 = vpop.f32.mrf.mxu0 }
 0x147   : > { %v4905_v7 = vadd.f32 %v4797_v4, %v1501_v56  ;;  %v3443_v28 = vadd.f32 %v3442_v24, %v3441_v22 }
 0x148   : > { %v3813_v35 = vpop.f32.mrf.mxu1  ;;  %v3444_v33 = vpop.f32.mrf.mxu0  ;;  %2344 = vmatmul.mubr.bf16.gmra.mxu0 %v4630_v54 }
 0x149   : > { %v4910_v43 = vadd.f32 %v3813_v35, %v4809_v63  ;;  %v4917_v4 = vadd.f32 %v3443_v28, %v1488_v10 }
 0x14a   : > { %v1504_v2 = vpop.f32.mrf.mxu1  ;;  %v3445_v32 = vpop.f32.mrf.mxu0 }
 0x14b   : > { %v4913_v3 = vadd.f32 %v4801_v12, %v1504_v2  ;;  %v3446_v45 = vadd.f32 %v3445_v32, %v3444_v33 }
 0x14c   : > { %v3816_v19 = vpop.f32.mrf.mxu1  ;;  %3911 = vmatmul.mubr.bf16.gmra.mxu1 %v4674_v52  ;;  %v3447_v46 = vpop.f32.mrf.mxu0 }
 0x14d   : > { %v4920_v25 = vadd.f32 %v3816_v19, %v4827_v11  ;;  %v4925_v40 = vadd.f32 %v3808_v53, %v3446_v45 }
 0x14e   : > { %v1517_v63 = vpop.f32.mrf.mxu1  ;;  %v3448_v54 = vpop.f32.mrf.mxu0 }
 0x14f   : > { %v4923_v39 = vadd.f32 %v4819_v21, %v1517_v63  ;;  %v3449_v15 = vadd.f32 %v3448_v54, %v3447_v46 }
 0x150   : > { %v3817_v12 = vpop.f32.mrf.mxu1  ;;  %v3836_v14 = vpop.f32.mrf.mxu0 }
 0x151   : > { %v4928_v18 = vadd.f32 %v3817_v12, %v4829_v1  ;;  %v4933_v0 = vadd.f32 %v3809_v50, %v3449_v15 }
 0x152   : > { %v1520_v52 = vpop.f32.mrf.mxu1  ;;  %v1871_v21 = vpop.f32.mrf.mxu0 }
 0x153   : > { %v4931_v44 = vadd.f32 %v4821_v38, %v1520_v52 }
 0x154   : > { %v3514_v11 = vpop.f32.mrf.mxu1  ;;  %v3837_v10 = vpop.f32.mrf.mxu0 }
 0x156   : > { %v3515_v17 = vpop.f32.mrf.mxu1  ;;  %v1874_v1 = vpop.f32.mrf.mxu0 }
 0x157   : > { %v3516_v58 = vadd.f32 %v3515_v17, %v3514_v11 }
 0x158   : > { %v3517_v37 = vpop.f32.mrf.mxu1  ;;  %v3840_v56 = vpop.f32.mrf.mxu0 }
 0x159   : > { %v1711_v53 = vadd.f32 %v3516_v58, %v4838_v41 }
 0x15a   : > { %v3518_v51 = vpop.f32.mrf.mxu1  ;;  %v1887_v22 = vpop.f32.mrf.mxu0 }
 0x15b   : > { %v4936_v60 = vadd.f32 %v1871_v21, %v1711_v53  ;;  %v3519_v23 = vadd.f32 %v3518_v51, %v3517_v37 }
 0x15c   : > { %v3520_v34 = vpop.f32.mrf.mxu1  ;;  %v3841_v2 = vpop.f32.mrf.mxu0 }
 0x15d   : > { %v1714_v38 = vadd.f32 %v3519_v23, %v4843_v36 }
 0x15e   : > { %v3521_v13 = vpop.f32.mrf.mxu1  ;;  %v1890_v41 = vpop.f32.mrf.mxu0 }
 0x15f   : > { %v4939_v50 = vadd.f32 %v1874_v1, %v1714_v38  ;;  %v3522_v35 = vadd.f32 %v3521_v13, %v3520_v34 }
 0x160   : > { %v3523_v24 = vpop.f32.mrf.mxu1  ;;  %v3844_v45 = vpop.f32.mrf.mxu0 }
 0x161   : > { %v1719_v28 = vadd.f32 %v3522_v35, %v4833_v48 }
 0x162   : > { %v3524_v33 = vpop.f32.mrf.mxu1  ;;  %v1903_v36 = vpop.f32.mrf.mxu0 }
 0x163   : > { %v3525_v19 = vadd.f32 %v3524_v33, %v3523_v24  ;;  %v4942_v32 = vadd.f32 %v3836_v14, %v1719_v28 }
 0x164   : > { %v3526_v63 = vpop.f32.mrf.mxu1  ;;  %v3845_v11 = vpop.f32.mrf.mxu0 }
 0x165   : > { %v1722_v46 = vadd.f32 %v3525_v19, %v4840_v9 }
 0x166   : > { %v3527_v12 = vpop.f32.mrf.mxu1  ;;  %v1906_v48 = vpop.f32.mrf.mxu0 }
 0x167   : > { %v3528_v54 = vadd.f32 %v3527_v12, %v3526_v63  ;;  %v4945_v52 = vadd.f32 %v3837_v10, %v1722_v46 }
 0x168   : > { %v3529_v15 = vpop.f32.mrf.mxu1  ;;  %v4950_v53 = vpop.f32.mrf.mxu0 }
 0x169   : > { %v1727_v17 = vadd.f32 %v3528_v54, %v4851_v62 }
 0x16a   : > { %v3530_v21 = vpop.f32.mrf.mxu1  ;;  %v1919_v1 = vpop.f32.mrf.mxu0 }
 0x16b   : > { %v3531_v58 = vadd.f32 %v3530_v21, %v3529_v15  ;;  %v4948_v37 = vadd.f32 %v1887_v22, %v1727_v17 }
 0x16c   : > { %v3532_v14 = vpop.f32.mrf.mxu1  ;;  %v4955_v38 = vpop.f32.mrf.mxu0 }
 0x16d   : > { %v1730_v51 = vadd.f32 %v3531_v58, %v4855_v61 }
 0x16e   : > { %v3533_v9 = vpop.f32.mrf.mxu1  ;;  %v1922_v35 = vpop.f32.mrf.mxu0 }
 0x16f   : > { %v3534_v23 = vadd.f32 %v3533_v9, %v3532_v14  ;;  %v4953_v34 = vadd.f32 %v1890_v41, %v1730_v51 }
 0x170   : > { %v3535_v10 = vpop.f32.mrf.mxu1  ;;  %v4960_v33 = vpop.f32.mrf.mxu0 }
 0x171   : > { %v1735_v62 = vadd.f32 %v3534_v23, %v4847_v57 }
 0x172   : > { %v3536_v13 = vpop.f32.mrf.mxu1  ;;  %v4963_v63 = vpop.f32.mrf.mxu0 }
 0x173   : > { %v3537_v24 = vadd.f32 %v3536_v13, %v3535_v10  ;;  %v4958_v22 = vadd.f32 %v3840_v56, %v1735_v62 }
 0x174   : > { %v3538_v28 = vpop.f32.mrf.mxu1  ;;  %v4967_v54 = vpop.f32.mrf.mxu0 }
 0x175   : > { %v1738_v61 = vadd.f32 %v3537_v24, %v4853_v16 }
 0x176   : > { %v3539_v19 = vpop.f32.mrf.mxu1  ;;  %v4970_v17 = vpop.f32.mrf.mxu0 }
 0x177   : > { %v3540_v41 = vadd.f32 %v3539_v19, %v3538_v28  ;;  %v4965_v46 = vadd.f32 %v3841_v2, %v1738_v61 }
 0x178   : > { %v3541_v12 = vpop.f32.mrf.mxu1  ;;  %v4974_v14 = vpop.f32.mrf.mxu0 }
 0x179   : > { %v1743_v57 = vadd.f32 %v3540_v41, %v4863_v49 }
 0x17a   : > { %v3542_v15 = vpop.f32.mrf.mxu1  ;;  %v4977_v9 = vpop.f32.mrf.mxu0 }
 0x17b   : > { %v3543_v56 = vadd.f32 %v3542_v15, %v3541_v12  ;;  %v4972_v21 = vadd.f32 %v1903_v36, %v1743_v57 }
 0x17c   : > { %v3544_v58 = vpop.f32.mrf.mxu1  ;;  %v4981_v62 = vpop.f32.mrf.mxu0 }
 0x17d   : > { %v1746_v16 = vadd.f32 %v3543_v56, %v4867_v42 }
 0x17e   : > { %v3545_v51 = vpop.f32.mrf.mxu1  ;;  %v4984_v24 = vpop.f32.mrf.mxu0 }
 0x17f   : > { %v3546_v2 = vadd.f32 %v3545_v51, %v3544_v58  ;;  %v4979_v23 = vadd.f32 %v1906_v48, %v1746_v16 }
 0x180   : > { %v3547_v10 = vpop.f32.mrf.mxu1  ;;  %v4988_v19 = vpop.f32.mrf.mxu0 }
 0x181   : > { %v1751_v49 = vadd.f32 %v3546_v2, %v4859_v55 }
 0x182   : > { %v3548_v13 = vpop.f32.mrf.mxu1  ;;  %v4991_v12 = vpop.f32.mrf.mxu0 }
 0x183   : > { %v3549_v36 = vadd.f32 %v3548_v13, %v3547_v10  ;;  %v4986_v28 = vadd.f32 %v3844_v45, %v1751_v49 }
 0x184   : > { %v3550_v61 = vpop.f32.mrf.mxu1  ;;  %v4995_v56 = vpop.f32.mrf.mxu0 }
 0x185   : > { %v1754_v42 = vadd.f32 %v3549_v36, %v4865_v47 }
 0x186   : > { %v3551_v41 = vpop.f32.mrf.mxu1  ;;  %v4998_v16 = vpop.f32.mrf.mxu0 }
 0x187   : > { %v3552_v48 = vadd.f32 %v3551_v41, %v3550_v61  ;;  %v4993_v57 = vadd.f32 %v3845_v11, %v1754_v42 }
 0x188   : > { %v3553_v15 = vpop.f32.mrf.mxu1  ;;  %v5002_v10 = vpop.f32.mrf.mxu0 }
 0x189   : > { %v1759_v55 = vadd.f32 %v3552_v48, %v4873_v5  ;;  %5348 = vst [vmem:[#allocation2_spill] sm:$0xff] %v5002_v10 }
 0x18a   : > { %v3554_v58 = vpop.f32.mrf.mxu1  ;;  %v5005_v13 = vpop.f32.mrf.mxu0 }
 0x18b   : > { %v3555_v45 = vadd.f32 %v3554_v58, %v3553_v15  ;;  %v5000_v51 = vadd.f32 %v1919_v1, %v1759_v55 }
 0x18c   : > { %v3556_v2 = vpop.f32.mrf.mxu1  ;;  %v5009_v42 = vpop.f32.mrf.mxu0 }
 0x18d   : > { %v1762_v47 = vadd.f32 %v3555_v45, %v4877_v29  ;;  %5349 = vst [vmem:[#allocation3_spill] sm:$0xff] %v5009_v42 }
 0x18e   : > { %v3557_v49 = vpop.f32.mrf.mxu1  ;;  %v5012_v48 = vpop.f32.mrf.mxu0 }
 0x18f   : > { %v3558_v11 = vadd.f32 %v3557_v49, %v3556_v2  ;;  %v5007_v36 = vadd.f32 %v1922_v35, %v1762_v47 }
 0x190   : > { %v3559_v61 = vpop.f32.mrf.mxu1  ;;  %v3650_v29 = vpop.f32.mrf.mxu0 }
 0x191   : > { %v1767_v5 = vadd.f32 %v3558_v11, %v4875_v31 }
 0x192   : > { %v3560_v41 = vpop.f32.mrf.mxu1  ;;  %v3651_v2 = vpop.f32.mrf.mxu0 }
 0x193   : > { %v3561_v1 = vadd.f32 %v3560_v41, %v3559_v61  ;;  %v5015_v15 = vadd.f32 %v4950_v53, %v1767_v5  ;;  %v5018_v47 = vadd.f32 %v3651_v2, %v3650_v29 }
 0x194   : > { %v3562_v55 = vpop.f32.mrf.mxu1  ;;  %v5023_v11 = vpop.f32.mrf.mxu0 }
 0x195   : > { %v1770_v58 = vadd.f32 %v3561_v1, %v4881_v27 }
 0x196   : > { %v3563_v45 = vpop.f32.mrf.mxu1  ;;  %v5026_v53 = vpop.f32.mrf.mxu0 }
 0x197   : > { %v3564_v35 = vadd.f32 %v3563_v45, %v3562_v55  ;;  %v5021_v49 = vadd.f32 %v4955_v38, %v1770_v58 }
 0x198   : > { %v3565_v31 = vpop.f32.mrf.mxu1  ;;  %v5031_v1 = vpop.f32.mrf.mxu0 }
 0x199   : > { %v1775_v61 = vadd.f32 %v3564_v35, %v4885_v26 }
 0x19a   : > { %v3566_v41 = vpop.f32.mrf.mxu1  ;;  %v5034_v38 = vpop.f32.mrf.mxu0 }
 0x19b   : > { %v3567_v5 = vadd.f32 %v3566_v41, %v3565_v31  ;;  %v5029_v42 = vadd.f32 %v4963_v63, %v1775_v61 }
 0x19c   : > { %v3568_v27 = vpop.f32.mrf.mxu1  ;;  %v5039_v2 = vpop.f32.mrf.mxu0 }
 0x19d   : > { %v1778_v55 = vadd.f32 %v3567_v5, %v4889_v20 }
 0x19e   : > { %v3569_v29 = vpop.f32.mrf.mxu1  ;;  %v5042_v63 = vpop.f32.mrf.mxu0 }
 0x19f   : > { %v3570_v58 = vadd.f32 %v3569_v29, %v3568_v27  ;;  %v5037_v45 = vadd.f32 %v4970_v17, %v1778_v55 }
 0x1a0   : > { %v3571_v26 = vpop.f32.mrf.mxu1  ;;  %v5047_v5 = vpop.f32.mrf.mxu0 }
 0x1a1   : > { %5350 = vst [vmem:[#allocation4_spill] sm:$0xff] %v5037_v45  ;;  %v1783_v35 = vadd.f32 %v3570_v58, %v4893_v8 }
 0x1a2   : > { %v3572_v31 = vpop.f32.mrf.mxu1  ;;  %v5050_v17 = vpop.f32.mrf.mxu0 }
 0x1a3   : > { %v3573_v61 = vadd.f32 %v3572_v31, %v3571_v26  ;;  %v5045_v41 = vadd.f32 %v4960_v33, %v1783_v35 }
 0x1a4   : > { %v3574_v20 = vpop.f32.mrf.mxu1  ;;  %v5055_v58 = vpop.f32.mrf.mxu0 }
 0x1a5   : > { %v1786_v27 = vadd.f32 %v3573_v61, %v4897_v30 }
 0x1a6   : > { %v3575_v29 = vpop.f32.mrf.mxu1  ;;  %v5058_v33 = vpop.f32.mrf.mxu0 }
 0x1a7   : > { %v3576_v55 = vadd.f32 %v3575_v29, %v3574_v20  ;;  %v5053_v10 = vadd.f32 %v4967_v54, %v1786_v27 }
 0x1a8   : > { %v3577_v8 = vpop.f32.mrf.mxu1  ;;  %v5063_v61 = vpop.f32.mrf.mxu0 }
 0x1a9   : > { %5351 = vst [vmem:[#allocation5_spill] sm:$0xff] %v5053_v10  ;;  %v1791_v26 = vadd.f32 %v3576_v55, %v4907_v59 }
 0x1aa   : > { %v3578_v31 = vpop.f32.mrf.mxu1  ;;  %v5066_v54 = vpop.f32.mrf.mxu0 }
 0x1ab   : > { %v3579_v35 = vadd.f32 %v3578_v31, %v3577_v8  ;;  %v5061_v45 = vadd.f32 %v4977_v9, %v1791_v26 }
 0x1ac   : > { %v3580_v30 = vpop.f32.mrf.mxu1  ;;  %v5071_v55 = vpop.f32.mrf.mxu0 }
 0x1ad   : > { %5352 = vst [vmem:[#allocation6_spill] sm:$0xff] %v5061_v45  ;;  %v1794_v20 = vadd.f32 %v3579_v35, %v4917_v4 }
 0x1ae   : > { %v3581_v29 = vpop.f32.mrf.mxu1  ;;  %v5074_v9 = vpop.f32.mrf.mxu0 }
 0x1af   : > { %v3582_v27 = vadd.f32 %v3581_v29, %v3580_v30  ;;  %v5069_v10 = vadd.f32 %v4984_v24, %v1794_v20 }
 0x1b0   : > { %v3583_v59 = vpop.f32.mrf.mxu1  ;;  %v5079_v35 = vpop.f32.mrf.mxu0 }
 0x1b1   : > { %5353 = vst [vmem:[#allocation7_spill] sm:$0xff] %v5069_v10  ;;  %v1799_v8 = vadd.f32 %v3582_v27, %v4925_v40 }
 0x1b2   : > { %v3584_v31 = vpop.f32.mrf.mxu1  ;;  %v5082_v24 = vpop.f32.mrf.mxu0 }
 0x1b3   : > { %v3585_v26 = vadd.f32 %v3584_v31, %v3583_v59  ;;  %v5077_v45 = vadd.f32 %v4974_v14, %v1799_v8 }
 0x1b4   : > { %v3586_v4 = vpop.f32.mrf.mxu1  ;;  %v5087_v27 = vpop.f32.mrf.mxu0 }
 0x1b5   : > { %5354 = vst [vmem:[#allocation8_spill] sm:$0xff] %v5077_v45  ;;  %v1802_v30 = vadd.f32 %v3585_v26, %v4933_v0 }
 0x1b6   : > { %v3587_v29 = vpop.f32.mrf.mxu1  ;;  %v5090_v14 = vpop.f32.mrf.mxu0 }
 0x1b7   : > { %v3588_v20 = vadd.f32 %v3587_v29, %v3586_v4  ;;  %v5085_v10 = vadd.f32 %v4981_v62, %v1802_v30 }
 0x1b8   : > { %v3589_v40 = vpop.f32.mrf.mxu1  ;;  %v5095_v26 = vpop.f32.mrf.mxu0 }
 0x1b9   : > { %5355 = vst [vmem:[#allocation9_spill] sm:$0xff] %v5085_v10  ;;  %v1807_v59 = vadd.f32 %v3588_v20, %v4905_v7 }
 0x1ba   : > { %v3590_v31 = vpop.f32.mrf.mxu1  ;;  %v5098_v62 = vpop.f32.mrf.mxu0 }
 0x1bb   : > { %v3591_v8 = vadd.f32 %v3590_v31, %v3589_v40  ;;  %v5093_v45 = vadd.f32 %v4991_v12, %v1807_v59 }
 0x1bc   : > { %v3592_v0 = vpop.f32.mrf.mxu1  ;;  %v5103_v20 = vpop.f32.mrf.mxu0 }
 0x1bd   : > { %5356 = vst [vmem:[#allocation10_spill] sm:$0xff] %v5093_v45  ;;  %v1810_v4 = vadd.f32 %v3591_v8, %v4913_v3 }
 0x1be   : > { %v3593_v29 = vpop.f32.mrf.mxu1  ;;  %v5106_v12 = vpop.f32.mrf.mxu0 }
 0x1bf   : > { %v3594_v30 = vadd.f32 %v3593_v29, %v3592_v0  ;;  %v5101_v10 = vadd.f32 %v4998_v16, %v1810_v4 }
 0x1c0   : > { %v3595_v7 = vpop.f32.mrf.mxu1  ;;  %v5111_v8 = vpop.f32.mrf.mxu0 }
 0x1c1   : > { %5357 = vst [vmem:[#allocation11_spill] sm:$0xff] %v5101_v10  ;;  %v1815_v40 = vadd.f32 %v3594_v30, %v4900_v6 }
 0x1c2   : > { %v3596_v31 = vpop.f32.mrf.mxu1  ;;  %v5114_v16 = vpop.f32.mrf.mxu0 }
 0x1c3   : > { %v3597_v59 = vadd.f32 %v3596_v31, %v3595_v7  ;;  %v5109_v45 = vadd.f32 %v4988_v19, %v1815_v40 }
 0x1c4   : > { %v3598_v3 = vpop.f32.mrf.mxu1  ;;  %v5119_v30 = vpop.f32.mrf.mxu0 }
 0x1c5   : > { %5358 = vst [vmem:[#allocation12_spill] sm:$0xff] %v5109_v45  ;;  %v1818_v0 = vadd.f32 %v3597_v59, %v4910_v43 }
 0x1c6   : > { %v3599_v29 = vpop.f32.mrf.mxu1  ;;  %v5122_v19 = vpop.f32.mrf.mxu0 }
 0x1c7   : > { %v3600_v4 = vadd.f32 %v3599_v29, %v3598_v3  ;;  %v5117_v10 = vadd.f32 %v4995_v56, %v1818_v0 }
 0x1c8   : > { %v3601_v6 = vpop.f32.mrf.mxu1  ;;  %v5127_v59 = vpop.f32.mrf.mxu0 }
 0x1c9   : > { %5359 = vst [vmem:[#allocation13_spill] sm:$0xff] %v5117_v10  ;;  %v1823_v7 = vadd.f32 %v3600_v4, %v4923_v39 }
 0x1ca   : > { %v3602_v31 = vpop.f32.mrf.mxu1  ;;  %v5130_v56 = vpop.f32.mrf.mxu0 }
 0x1cb   : > { %v3603_v40 = vadd.f32 %v3602_v31, %v3601_v6  ;;  %v5125_v45 = vadd.f32 %v5005_v13, %v1823_v7  ;;  %v3658_v31 = vadd.f32 %v5034_v38, %v5031_v1 }
 0x1cc   : > { %v3604_v43 = vpop.f32.mrf.mxu1  ;;  %v5135_v4 = vpop.f32.mrf.mxu0 }
 0x1cd   : > { %5360 = vst [vmem:[#allocation14_spill] sm:$0xff] %v5125_v45  ;;  %v1826_v3 = vadd.f32 %v3603_v40, %v4931_v44 }
 0x1ce   : > { %v3605_v29 = vpop.f32.mrf.mxu1  ;;  %v5140_v7 = vpop.f32.mrf.mxu0 }
 0x1cf   : > { %v3606_v0 = vadd.f32 %v3605_v29, %v3604_v43  ;;  %v5133_v10 = vadd.f32 %v5012_v48, %v1826_v3 }
 0x1d0   : > { %v3607_v39 = vpop.f32.mrf.mxu1  ;;  %v5144_v40 = vpop.f32.mrf.mxu0 }
 0x1d1   : > { %5361 = vst [vmem:[#allocation15_spill] sm:$0xff] %v5133_v10  ;;  %v5138_v6 = vadd.f32 %v3606_v0, %v4920_v25  ;;  %v3661_v25 = vadd.f32 %v5042_v63, %v5039_v2  ;;  %v3670_v63 = vadd.f32 %v5066_v54, %v5063_v61 }
 0x1d2   : > { %v3608_v13 = vpop.f32.mrf.mxu1  ;;  %v5149_v3 = vpop.f32.mrf.mxu0 }
 0x1d3   : > { %5362 = vst [vmem:[#allocation16_spill] sm:$0xff] %v5138_v6  ;;  %v3609_v44 = vadd.f32 %v3608_v13, %v3607_v39 }
 0x1d4   : > { %v3884_v45 = vpop.f32.mrf.mxu1  ;;  %v5154_v10 = vpop.f32.mrf.mxu0 }
 0x1d5   : > { %v5147_v43 = vadd.f32 %v3609_v44, %v4928_v18  ;;  %v2395_v48 = vadd.f32 %v3884_v45, %v3658_v31  ;;  %v3655_v18 = vadd.f32 %v5026_v53, %v5023_v11  ;;  %v5163_v45 = vld [vmem:[%s5336_s4] ss:$0 sm:$0xff] }
 0x1d6   : > { %v2386_v29 = vpop.f32.mrf.mxu1  ;;  %v5165_v2 = vpop.f32.mrf.mxu0 }
 0x1d7   : > { %v2387_v0 = vadd.f32 %v5018_v47, %v2386_v29  ;;  %v2515_v1 = vadd.f32 %v2395_v48, %v4942_v32  ;;  %v3664_v48 = vadd.f32 %v5050_v17, %v5047_v5  ;;  %v3673_v29 = vadd.f32 %v5074_v9, %v5071_v55 }
 0x1d8   : > { %v3885_v6 = vpop.f32.mrf.mxu1 }
 0x1d9   : > { %v2513_v38 = vadd.f32 %v2387_v0, %v4936_v60  ;;  %v2398_v39 = vadd.f32 %v3885_v6, %v3661_v25  ;;  %v5170_v60 = vpop.f32.mrf.mxu0  ;;  %v2554_v31 = vadd.f32 %v5163_v45, %v2515_v1 }
 0x1da   : > { %v2389_v47 = vpop.f32.mrf.mxu1 }
 0x1db   : > { %v2516_v32 = vadd.f32 %v2398_v39, %v4945_v52  ;;  %v2390_v13 = vadd.f32 %v3655_v18, %v2389_v47  ;;  %v2552_v11 = vadd.f32 %v5163_v45, %v2513_v38  ;;  %v5185_v61 = vpop.f32.mrf.mxu0  ;;  %v3667_v38 = vadd.f32 %v5058_v33, %v5055_v58 }
 0x1dc   : > { %v3888_v6 = vpop.f32.mrf.mxu1  ;;  %v2783_v58 = vmul.f32 %v2554_v31, %v2554_v31 }
 0x1dd   : > { %v2555_v53 = vadd.f32 %v5163_v45, %v2516_v32  ;;  %v2411_v44 = vadd.f32 %v3888_v6, %v3670_v63  ;;  %v2514_v52 = vadd.f32 %v2390_v13, %v4939_v50  ;;  %v5190_v5 = vpop.f32.mrf.mxu0  ;;  %v2781_v39 = vmul.f32 %v2552_v11, %v2552_v11 }
 0x1de   : > { %v2402_v54 = vpop.f32.mrf.mxu1  ;;  %v3682_v6 = vadd.f32 %v5098_v62, %v5095_v26 }
 0x1df   : > { %v3260_v25 = vpack.c.bf16 %v2555_v53, %v2554_v31  ;;  %v2553_v0 = vadd.f32 %v5163_v45, %v2514_v52  ;;  %v2403_v1 = vadd.f32 %v3664_v48, %v2402_v54  ;;  %v2519_v50 = vadd.f32 %v2411_v44, %v4958_v22  ;;  %v5197_v9 = vpop.f32.mrf.mxu0 }
 0x1e0   : > { %v3889_v17 = vpop.f32.mrf.mxu1  ;;  %v2784_v26 = vmul.f32 %v2555_v53, %v2555_v53 }
 0x1e1   : > { %3347 = vst [vmem:[%s5182_s14 + $0x8] sm:$0xff] %v3260_v25   ;;  %v2414_v18 = vadd.f32 %v3889_v17, %v3673_v29  ;;  %v3255_v47 = vpack.c.bf16 %v2553_v0, %v2552_v11  ;;  %v2744_v63 = vadd.f32 %v2553_v0, %v2552_v11  ;;  %v2782_v32 = vmul.f32 %v2553_v0, %v2553_v0  ;;  %v5204_v44 = vpop.f32.mrf.mxu0 }
 0x1e2   : > { %v2517_v55 = vadd.f32 %v2403_v1, %v4948_v37  ;;  %v2405_v13 = vpop.f32.mrf.mxu1  ;;  %v2558_v37 = vadd.f32 %v5163_v45, %v2519_v50 }
 0x1e3   : > { %v2520_v48 = vadd.f32 %v2414_v18, %v4965_v46  ;;  %v2406_v52 = vadd.f32 %v3667_v38, %v2405_v13  ;;  %3256 = vst [vmem:[%s5182_s14] sm:$0xff] %v3255_v47   ;;  %v2745_v33 = vadd.f32 %v2744_v63, %v2554_v31  ;;  %v2813_v54 = vadd.f32 %v2782_v32, %v2781_v39  ;;  %v5211_v1 = vpop.f32.mrf.mxu0 }
 0x1e4   : > { %v2556_v22 = vadd.f32 %v5163_v45, %v2517_v55  ;;  %v3892_v11 = vpop.f32.mrf.mxu1  ;;  %v3676_v46 = vadd.f32 %v5082_v24, %v5079_v35  ;;  %v3679_v38 = vadd.f32 %v5090_v14, %v5087_v27  ;;  %v3685_v39 = vadd.f32 %v5106_v12, %v5103_v20 }
 0x1e5   : > { %v2559_v29 = vadd.f32 %v5163_v45, %v2520_v48  ;;  %v2518_v25 = vadd.f32 %v2406_v52, %v4953_v34  ;;  %v2427_v0 = vadd.f32 %v3892_v11, %v3682_v6  ;;  %v2814_v62 = vadd.f32 %v2813_v54, %v2783_v58  ;;  %v5218_v63 = vpop.f32.mrf.mxu0 }
 0x1e6   : > { %v2746_v31 = vadd.f32 %v2745_v33, %v2555_v53  ;;  %v2418_v17 = vpop.f32.mrf.mxu1  ;;  %v2785_v47 = vmul.f32 %v2556_v22, %v2556_v22  ;;  %v3694_v52 = vadd.f32 %v5130_v56, %v5127_v59  ;;  %v2787_v54 = vmul.f32 %v2558_v37, %v2558_v37 }
 0x1e7   : > { %v3270_v50 = vpack.c.bf16 %v2559_v29, %v2558_v37  ;;  %v2557_v34 = vadd.f32 %v5163_v45, %v2518_v25  ;;  %v2815_v35 = vadd.f32 %v2814_v62, %v2784_v26  ;;  %v2419_v24 = vadd.f32 %v3676_v46, %v2418_v17  ;;  %v5223_v12 = vpop.f32.mrf.mxu0 }
 0x1e8   : > { %v2747_v18 = vadd.f32 %v2746_v31, %v2556_v22  ;;  %v3893_v53 = vpop.f32.mrf.mxu1  ;;  %v2523_v13 = vadd.f32 %v2427_v0, %v4986_v28  ;;  %v3688_v59 = vadd.f32 %v5114_v16, %v5111_v8 }
 0x1e9   : > { %3349 = vst [vmem:[%s5182_s14 + $0x18] sm:$0xff] %v3270_v50   ;;  %v3265_v32 = vpack.c.bf16 %v2557_v34, %v2556_v22  ;;  %v2786_v55 = vmul.f32 %v2557_v34, %v2557_v34  ;;  %v2430_v27 = vadd.f32 %v3893_v53, %v3685_v39  ;;  %v2816_v14 = vadd.f32 %v2815_v35, %v2785_v47  ;;  %v5230_v25 = vpop.f32.mrf.mxu0 }
 0x1ea   : > { %v2748_v6 = vadd.f32 %v2747_v18, %v2557_v34  ;;  %v2521_v20 = vadd.f32 %v2419_v24, %v4972_v21  ;;  %v2421_v48 = vpop.f32.mrf.mxu1  ;;  %v2562_v21 = vadd.f32 %v5163_v45, %v2523_v13  ;;  %v3697_v39 = vadd.f32 %v5140_v7, %v5135_v4 }
 0x1eb   : > { %3348 = vst [vmem:[%s5182_s14 + $0x10] sm:$0xff] %v3265_v32   ;;  %v2524_v58 = vadd.f32 %v2430_v27, %v4993_v57  ;;  %v2422_v33 = vadd.f32 %v3679_v38, %v2421_v48  ;;  %v2817_v11 = vadd.f32 %v2816_v14, %v2786_v55  ;;  %v2788_v57 = vmul.f32 %v2559_v29, %v2559_v29  ;;  %v3717_v31 = vpop.f32.mrf.mxu0 }
 0x1ec   : > { %v2749_v22 = vadd.f32 %v2748_v6, %v2558_v37  ;;  %v2560_v28 = vadd.f32 %v5163_v45, %v2521_v20  ;;  %v3896_v0 = vpop.f32.mrf.mxu1  ;;  %v3691_v38 = vadd.f32 %v5122_v19, %v5119_v30  ;;  %v3706_v13 = vadd.f32 %v5185_v61, %v5170_v60 }
 0x1ed   : > { %v2563_v46 = vadd.f32 %v5163_v45, %v2524_v58  ;;  %v2522_v26 = vadd.f32 %v2422_v33, %v4979_v23  ;;  %v2443_v62 = vadd.f32 %v3896_v0, %v3694_v52  ;;  %v2818_v56 = vadd.f32 %v2817_v11, %v2787_v54  ;;  %v5242_v16 = vpop.f32.mrf.mxu0 }
 0x1ee   : > { %v2750_v37 = vadd.f32 %v2749_v22, %v2559_v29  ;;  %v2434_v17 = vpop.f32.mrf.mxu1  ;;  %v2789_v18 = vmul.f32 %v2560_v28, %v2560_v28  ;;  %v2791_v6 = vmul.f32 %v2562_v21, %v2562_v21  ;;  %v3700_v60 = vadd.f32 %v5149_v3, %v5144_v40 }
 0x1ef   : > { %v3280_v50 = vpack.c.bf16 %v2563_v46, %v2562_v21  ;;  %v2561_v34 = vadd.f32 %v5163_v45, %v2522_v26  ;;  %v2819_v47 = vadd.f32 %v2818_v56, %v2788_v57  ;;  %v2435_v8 = vadd.f32 %v3688_v59, %v2434_v17  ;;  %v5247_v7 = vpop.f32.mrf.mxu0 }
 0x1f0   : > { %v2751_v23 = vadd.f32 %v2750_v37, %v2560_v28  ;;  %v3897_v35 = vpop.f32.mrf.mxu1  ;;  %v2527_v53 = vadd.f32 %v2443_v62, %v5015_v15  ;;  %v3709_v26 = vadd.f32 %v5197_v9, %v5190_v5 }
 0x1f1   : > { %3351 = vst [vmem:[%s5182_s14 + $0x28] sm:$0xff] %v3280_v50   ;;  %v3275_v29 = vpack.c.bf16 %v2561_v34, %v2560_v28  ;;  %v2790_v24 = vmul.f32 %v2561_v34, %v2561_v34  ;;  %v2446_v30 = vadd.f32 %v3897_v35, %v3697_v39  ;;  %v2820_v19 = vadd.f32 %v2819_v47, %v2789_v18  ;;  %v5254_v52 = vpop.f32.mrf.mxu0 }
 0x1f2   : > { %v2752_v32 = vadd.f32 %v2751_v23, %v2561_v34  ;;  %v2525_v4 = vadd.f32 %v2435_v8, %v5000_v51  ;;  %v2437_v55 = vpop.f32.mrf.mxu1  ;;  %v2566_v51 = vadd.f32 %v5163_v45, %v2527_v53  ;;  %v3718_v34 = vadd.f32 %v3717_v31, %v5230_v25  ;;  %v5363_v23 = vld [vmem:[#allocation5_spill] sm:$0xff] }
 0x1f3   : > { %3350 = vst [vmem:[%s5182_s14 + $0x20] sm:$0xff] %v3275_v29   ;;  %v2528_v27 = vadd.f32 %v2446_v30, %v5021_v49  ;;  %v2438_v14 = vadd.f32 %v3691_v38, %v2437_v55  ;;  %v2821_v48 = vadd.f32 %v2820_v19, %v2790_v24  ;;  %v2792_v49 = vmul.f32 %v2563_v46, %v2563_v46  ;;  %v5261_v28 = vpop.f32.mrf.mxu0 }
 0x1f4   : > { %v2753_v20 = vadd.f32 %v2752_v32, %v2562_v21  ;;  %v2564_v15 = vadd.f32 %v5163_v45, %v2525_v4  ;;  %v3900_v58 = vpop.f32.mrf.mxu1  ;;  %v3703_v21 = vadd.f32 %v5165_v2, %v5154_v10  ;;  %v2795_v8 = vmul.f32 %v2566_v51, %v2566_v51 }
 0x1f5   : > { %v2567_v33 = vadd.f32 %v5163_v45, %v2528_v27  ;;  %v2526_v54 = vadd.f32 %v2438_v14, %v5007_v36  ;;  %v2459_v22 = vadd.f32 %v3900_v58, %v3706_v13  ;;  %v2822_v61 = vadd.f32 %v2821_v48, %v2791_v6  ;;  %v5268_v56 = vpop.f32.mrf.mxu0 }
 0x1f6   : > { %v2754_v11 = vadd.f32 %v2753_v20, %v2563_v46  ;;  %v2450_v0 = vpop.f32.mrf.mxu1  ;;  %v2793_v57 = vmul.f32 %v2564_v15, %v2564_v15  ;;  %v3712_v25 = vadd.f32 %v5211_v1, %v5204_v44  ;;  %v3715_v6 = vadd.f32 %v5223_v12, %v5218_v63 }
 0x1f7   : > { %v3290_v62 = vpack.c.bf16 %v2567_v33, %v2566_v51  ;;  %v2565_v36 = vadd.f32 %v5163_v45, %v2526_v54  ;;  %v2823_v40 = vadd.f32 %v2822_v61, %v2792_v49  ;;  %v2451_v3 = vadd.f32 %v3700_v60, %v2450_v0  ;;  %v3726_v9 = vpop.f32.mrf.mxu0  ;;  %v5365_v49 = vld [vmem:[#allocation8_spill] sm:$0xff]  ;;  %v5366_v0 = vld [vmem:[#allocation6_spill] sm:$0xff] }
 0x1f8   : > { %v2755_v59 = vadd.f32 %v2754_v11, %v2564_v15  ;;  %v3901_v46 = vpop.f32.mrf.mxu1  ;;  %v2531_v38 = vadd.f32 %v2459_v22, %v5045_v41  ;;  %v2796_v31 = vmul.f32 %v2567_v33, %v2567_v33  ;;  %v3721_v20 = vadd.f32 %v5247_v7, %v5242_v16 }
 0x1f9   : > { %3353 = vst [vmem:[%s5182_s14 + $0x38] sm:$0xff] %v3290_v62   ;;  %v3285_v37 = vpack.c.bf16 %v2565_v36, %v2564_v15  ;;  %v2794_v17 = vmul.f32 %v2565_v36, %v2565_v36  ;;  %v2462_v10 = vadd.f32 %v3901_v46, %v3709_v26  ;;  %v2824_v2 = vadd.f32 %v2823_v40, %v2793_v57  ;;  %v3728_v53 = vpop.f32.mrf.mxu0  ;;  %v5367_v62 = vld [vmem:[#allocation9_spill] sm:$0xff] }
 0x1fa   : > { %v2756_v39 = vadd.f32 %v2755_v59, %v2565_v36  ;;  %v2529_v5 = vadd.f32 %v2451_v3, %v5029_v42  ;;  %v2453_v50 = vpop.f32.mrf.mxu1  ;;  %v2570_v30 = vadd.f32 %v5163_v45, %v2531_v38  ;;  %v5364_v42 = vld [vmem:[#allocation4_spill] sm:$0xff] }
 0x1fb   : > { %3352 = vst [vmem:[%s5182_s14 + $0x30] sm:$0xff] %v3285_v37   ;;  %v2532_v18 = vadd.f32 %v2462_v10, %v5363_v23  ;;  %v2454_v47 = vadd.f32 %v3703_v21, %v2453_v50  ;;  %v2825_v29 = vadd.f32 %v2824_v2, %v2794_v17  ;;  %v3729_v27 = vpop.f32.mrf.mxu0  ;;  %v5368_v2 = vld [vmem:[#allocation7_spill] sm:$0xff]  ;;  %v3724_v50 = vadd.f32 %v5261_v28, %v5254_v52 }
 0x1fc   : > { %v2757_v35 = vadd.f32 %v2756_v39, %v2566_v51  ;;  %v2568_v24 = vadd.f32 %v5163_v45, %v2529_v5  ;;  %v3904_v41 = vpop.f32.mrf.mxu1  ;;  %v3730_v26 = vadd.f32 %v3729_v27, %v3728_v53  ;;  %v2799_v57 = vmul.f32 %v2570_v30, %v2570_v30 }
 0x1fd   : > { %v2571_v19 = vadd.f32 %v5163_v45, %v2532_v18  ;;  %v2530_v32 = vadd.f32 %v2454_v47, %v5364_v42  ;;  %v2475_v4 = vadd.f32 %v3904_v41, %v3718_v34  ;;  %v2826_v55 = vadd.f32 %v2825_v29, %v2795_v8  ;;  %v3731_v1 = vpop.f32.mrf.mxu0 }
 0x1fe   : > { %v2758_v13 = vadd.f32 %v2757_v35, %v2567_v33  ;;  %v2466_v14 = vpop.f32.mrf.mxu1  ;;  %v2797_v51 = vmul.f32 %v2568_v24, %v2568_v24  ;;  %v3727_v35 = vadd.f32 %v3726_v9, %v5268_v56  ;;  %v5370_v56 = vld [vmem:[#allocation10_spill] sm:$0xff] }
 0x1ff   : > { %v3300_v48 = vpack.c.bf16 %v2571_v19, %v2570_v30  ;;  %v2569_v15 = vadd.f32 %v5163_v45, %v2530_v32  ;;  %v2827_v54 = vadd.f32 %v2826_v55, %v2796_v31  ;;  %v2467_v44 = vadd.f32 %v3712_v25, %v2466_v14  ;;  %v3732_v7 = vpop.f32.mrf.mxu0  ;;  %v5369_v31 = vld [vmem:[#allocation12_spill] sm:$0xff] }
 0x200   : > { %v2759_v58 = vadd.f32 %v2758_v13, %v2568_v24  ;;  %v3905_v22 = vpop.f32.mrf.mxu1  ;;  %v2535_v61 = vadd.f32 %v2475_v4, %v5365_v49  ;;  %v2800_v34 = vmul.f32 %v2571_v19, %v2571_v19  ;;  %v5372_v49 = vld [vmem:[#allocation11_spill] sm:$0xff] }
 0x201   : > { %3355 = vst [vmem:[%s5182_s14 + $0x48] sm:$0xff] %v3300_v48   ;;  %v3295_v33 = vpack.c.bf16 %v2569_v15, %v2568_v24  ;;  %v2798_v60 = vmul.f32 %v2569_v15, %v2569_v15  ;;  %v2478_v11 = vadd.f32 %v3905_v22, %v3721_v20  ;;  %v2828_v63 = vadd.f32 %v2827_v54, %v2797_v51  ;;  %v3734_v37 = vpop.f32.mrf.mxu0  ;;  %v5371_v20 = vld [vmem:[#allocation13_spill] sm:$0xff] }
 0x202   : > { %v2760_v12 = vadd.f32 %v2759_v58, %v2569_v15  ;;  %v2533_v16 = vadd.f32 %v2467_v44, %v5366_v0  ;;  %v2469_v21 = vpop.f32.mrf.mxu1  ;;  %v2574_v38 = vadd.f32 %v5163_v45, %v2535_v61  ;;  %v3733_v24 = vadd.f32 %v3732_v7, %v3731_v1 }
 0x203   : > { %3354 = vst [vmem:[%s5182_s14 + $0x40] sm:$0xff] %v3295_v33   ;;  %v2536_v36 = vadd.f32 %v2478_v11, %v5367_v62  ;;  %v2470_v59 = vadd.f32 %v3715_v6, %v2469_v21  ;;  %v2829_v3 = vadd.f32 %v2828_v63, %v2798_v60  ;;  %v3735_v47 = vpop.f32.mrf.mxu0 }
 0x204   : > { %v2761_v40 = vadd.f32 %v2760_v12, %v2570_v30  ;;  %v2572_v46 = vadd.f32 %v5163_v45, %v2533_v16  ;;  %v3908_v17 = vpop.f32.mrf.mxu1  ;;  %v2803_v58 = vmul.f32 %v2574_v38, %v2574_v38  ;;  %v3736_v12 = vadd.f32 %v3735_v47, %v3734_v37  ;;  %v5373_v37 = vld [vmem:[#allocation16_spill] sm:$0xff] }
 0x205   : > { %v2575_v10 = vadd.f32 %v5163_v45, %v2536_v36  ;;  %v2534_v39 = vadd.f32 %v2470_v59, %v5368_v2  ;;  %v2491_v5 = vadd.f32 %v3908_v17, %v3730_v26  ;;  %v2830_v23 = vadd.f32 %v2829_v3, %v2799_v57  ;;  %v3737_v4 = vpop.f32.mrf.mxu0 }
 0x206   : > { %v2762_v18 = vadd.f32 %v2761_v40, %v2571_v19  ;;  %v2482_v8 = vpop.f32.mrf.mxu1  ;;  %v2801_v30 = vmul.f32 %v2572_v46, %v2572_v46 }
 0x207   : > { %v3310_v29 = vpack.c.bf16 %v2575_v10, %v2574_v38  ;;  %v2573_v53 = vadd.f32 %v5163_v45, %v2534_v39  ;;  %v2831_v42 = vadd.f32 %v2830_v23, %v2800_v34  ;;  %v2483_v32 = vadd.f32 %v3724_v50, %v2482_v8  ;;  %v3738_v14 = vpop.f32.mrf.mxu0  ;;  %v5375_v23 = vld [vmem:[#allocation14_spill] sm:$0xff] }
 0x208   : > { %v2763_v41 = vadd.f32 %v2762_v18, %v2572_v46  ;;  %v3909_v25 = vpop.f32.mrf.mxu1  ;;  %v2539_v19 = vadd.f32 %v2491_v5, %v5369_v31  ;;  %v2804_v11 = vmul.f32 %v2575_v10, %v2575_v10  ;;  %v3739_v17 = vadd.f32 %v3738_v14, %v3737_v4 }
 0x209   : > { %3357 = vst [vmem:[%s5182_s14 + $0x58] sm:$0xff] %v3310_v29   ;;  %v3305_v52 = vpack.c.bf16 %v2573_v53, %v2572_v46  ;;  %v2802_v28 = vmul.f32 %v2573_v53, %v2573_v53  ;;  %v2494_v55 = vadd.f32 %v3909_v25, %v3733_v24  ;;  %v2832_v13 = vadd.f32 %v2831_v42, %v2801_v30  ;;  %v3740_v1 = vpop.f32.mrf.mxu0 }
 0x20a   : > { %v2764_v27 = vadd.f32 %v2763_v41, %v2573_v53  ;;  %v2537_v9 = vadd.f32 %v2483_v32, %v5370_v56  ;;  %v2485_v6 = vpop.f32.mrf.mxu1  ;;  %v2578_v33 = vadd.f32 %v5163_v45, %v2539_v19  ;;  %v5376_v32 = vld [vmem:[#allocation3_spill] sm:$0xff] }
 0x20b   : > { %3356 = vst [vmem:[%s5182_s14 + $0x50] sm:$0xff] %v3305_v52   ;;  %v2540_v48 = vadd.f32 %v2494_v55, %v5371_v20  ;;  %v2486_v15 = vadd.f32 %v3727_v35, %v2485_v6  ;;  %v2833_v54 = vadd.f32 %v2832_v13, %v2802_v28  ;;  %v3741_v16 = vpop.f32.mrf.mxu0  ;;  %v1995_v4 = vadd.f32 %v5376_v32, %v5147_v43  ;;  %v5377_v52 = vld [vmem:[#allocation15_spill] sm:$0xff] }
 0x20c   : > { %v2765_v51 = vadd.f32 %v2764_v27, %v2574_v38  ;;  %v2576_v44 = vadd.f32 %v5163_v45, %v2537_v9  ;;  %v3912_v22 = vpop.f32.mrf.mxu1  ;;  %v3742_v62 = vadd.f32 %v3741_v16, %v3740_v1  ;;  %v2807_v35 = vmul.f32 %v2578_v33, %v2578_v33 }
 0x20d   : > { %v2579_v60 = vadd.f32 %v5163_v45, %v2540_v48  ;;  %v2538_v61 = vadd.f32 %v2486_v15, %v5372_v49  ;;  %v2834_v63 = vadd.f32 %v2833_v54, %v2803_v58  ;;  %v3743_v3 = vpop.f32.mrf.mxu0 }
 0x20e   : > { %v2766_v0 = vadd.f32 %v2765_v51, %v2575_v10  ;;  %v2498_v7 = vpop.f32.mrf.mxu1  ;;  %v2805_v59 = vmul.f32 %v2576_v44, %v2576_v44  ;;  %v2507_v39 = vadd.f32 %v3912_v22, %v3742_v62  ;;  %v5374_v10 = vld [vmem:[#allocation2_spill] sm:$0xff] }
 0x20f   : > { %v3320_v21 = vpack.c.bf16 %v2579_v60, %v2578_v33  ;;  %v2577_v26 = vadd.f32 %v5163_v45, %v2538_v61  ;;  %v2835_v57 = vadd.f32 %v2834_v63, %v2804_v11  ;;  %v2499_v40 = vadd.f32 %v3736_v12, %v2498_v7  ;;  %v3744_v47 = vpop.f32.mrf.mxu0 }
 0x210   : > { %v2767_v36 = vadd.f32 %v2766_v0, %v2576_v44  ;;  %v3913_v46 = vpop.f32.mrf.mxu1  ;;  %v1992_v5 = vadd.f32 %v5374_v10, %v5373_v37  ;;  %v3745_v29 = vadd.f32 %v3744_v47, %v3743_v3  ;;  %v2808_v31 = vmul.f32 %v2579_v60, %v2579_v60 }
 0x211   : > { %3359 = vst [vmem:[%s5182_s14 + $0x68] sm:$0xff] %v3320_v21   ;;  %v3315_v38 = vpack.c.bf16 %v2577_v26, %v2576_v44  ;;  %v2806_v2 = vmul.f32 %v2577_v26, %v2577_v26  ;;  %v2836_v50 = vadd.f32 %v2835_v57, %v2805_v59  ;;  %v2541_v18 = vadd.f32 %v2499_v40, %v5375_v23 }
 0x212   : > { %v2768_v34 = vadd.f32 %v2767_v36, %v2577_v26  ;;  %v2501_v8 = vpop.f32.mrf.mxu1  ;;  %v2543_v30 = vadd.f32 %v2507_v39, %v1992_v5  ;;  %v2510_v25 = vadd.f32 %v3913_v46, %v3745_v29 }
 0x213   : > { %3358 = vst [vmem:[%s5182_s14 + $0x60] sm:$0xff] %v3315_v38   ;;  %v2502_v24 = vadd.f32 %v3739_v17, %v2501_v8  ;;  %v2837_v41 = vadd.f32 %v2836_v50, %v2806_v2  ;;  %v2580_v42 = vadd.f32 %v5163_v45, %v2541_v18 }
 0x214   : > { %v2769_v53 = vadd.f32 %v2768_v34, %v2578_v33  ;;  %v2544_v13 = vadd.f32 %v2510_v25, %v1995_v4  ;;  %v2582_v56 = vadd.f32 %v5163_v45, %v2543_v30 }
 0x215   : > { %v2542_v28 = vadd.f32 %v2502_v24, %v5377_v52  ;;  %v2838_v19 = vadd.f32 %v2837_v41, %v2807_v35  ;;  %v2809_v14 = vmul.f32 %v2580_v42, %v2580_v42 }
 0x216   : > { %v2770_v55 = vadd.f32 %v2769_v53, %v2579_v60  ;;  %v2583_v20 = vadd.f32 %v5163_v45, %v2544_v13  ;;  %v2811_v54 = vmul.f32 %v2582_v56, %v2582_v56 }
 0x217   : > { %v2581_v27 = vadd.f32 %v5163_v45, %v2542_v28  ;;  %v2839_v6 = vadd.f32 %v2838_v19, %v2808_v31 }
 0x218   : > { %v2771_v9 = vadd.f32 %v2770_v55, %v2580_v42  ;;  %v3330_v51 = vpack.c.bf16 %v2583_v20, %v2582_v56  ;;  %v2812_v22 = vmul.f32 %v2583_v20, %v2583_v20 }
 0x219   : > { %v3325_v48 = vpack.c.bf16 %v2581_v27, %v2580_v42  ;;  %v2810_v43 = vmul.f32 %v2581_v27, %v2581_v27  ;;  %v2840_v15 = vadd.f32 %v2839_v6, %v2809_v14 }
 0x21a   : > { %v2772_v58 = vadd.f32 %v2771_v9, %v2581_v27  ;;  %3361 = vst [vmem:[%s5182_s14 + $0x78] sm:$0xff] %v3330_v51  }
 0x21b   : > { %3360 = vst [vmem:[%s5182_s14 + $0x70] sm:$0xff] %v3325_v48   ;;  %v2841_v1 = vadd.f32 %v2840_v15, %v2810_v43 }
 0x21c   : > { %v2773_v44 = vadd.f32 %v2772_v58, %v2582_v56 }
 0x21d   : > { %v2842_v60 = vadd.f32 %v2841_v1, %v2811_v54 }
 0x21e   : > { %v2774_v33 = vadd.f32 %v2773_v44, %v2583_v20 }
 0x21f   : > { %v2843_v61 = vadd.f32 %v2842_v60, %v2812_v22 }
 0x220   : > { %v2775_v49 = vrot.slane %v2774_v33, 4 }
 0x221   : > { %v2844_v63 = vrot.slane %v2843_v61, 4 }
 0x222   : > { %v2776_v11 = vadd.f32 %v2775_v49, %v2774_v33 }
 0x223   : > { %v2845_v45 = vadd.f32 %v2844_v63, %v2843_v61 }
 0x224   : > { %v2777_v12 = vrot.slane %v2776_v11, 2 }
 0x225   : > { %v2846_v16 = vrot.slane %v2845_v45, 2 }
 0x226   : > { %v2778_v0 = vadd.f32 %v2777_v12, %v2776_v11 }
 0x227   : > { %v2847_v21 = vadd.f32 %v2846_v16, %v2845_v45 }
 0x228   : > { %v2779_v7 = vrot.slane %v2778_v0, 1 }
 0x229   : > { %v2848_v26 = vrot.slane %v2847_v21, 1 }
 0x22a   : > { %v2780_v62 = vadd.f32 %v2779_v7, %v2778_v0 }
 0x22b   : > { %v2849_v36 = vadd.f32 %v2848_v26, %v2847_v21 }
 0x22d   : > { %v2851_v59 = vsel %vm607_vm0, %v2780_v62, %v2849_v36 }
 0x22e   : > { %2852 = vst [vmem:[%s262_s17] sm:$0x3] %v2851_v59 }
 0x22f PF: > { %s17_s21 = sadd.s32 1, %s4019_s21  }
 0x230   : > { %p14_p4 = scmp.ge.s32.totalorder %s17_s21, 4  }
 0x232   :  { %16 = sbr.rel (!%p14_p4) target bundleno = 1 (0x1), region = 84 }

</bundles_post_ra>
